<compile_context>
chip_gen: v5e
topology: v5e:2x2
jax: 0.10.0
libtpu: 0.0.40
codegen_flags: <defaults>
</compile_context>

<pallas_src>
import functools

import jax
import jax.numpy as jnp
from jax.experimental import pallas as pl
from jax.experimental.pallas import tpu as pltpu

KS = 5        # conv kernel size
STRIDE = 2    # conv stride
BN_EPS = 1e-5
N_PAD = 128   # lane-padded width of the Q-value output


def conv_out_size(n, k=KS, s=STRIDE):
    return (n - (k - 1) - 1) // s + 1


# ----------------------------------------------------------------------------
# Pallas kernel: full fused forward for one sample per grid step
# ----------------------------------------------------------------------------
def _rnaq_kernel(x_ref, s1_ref, s2_ref, s3_ref,
                 m1_ref, m2_ref, m3_ref, wl_ref, b_ref, o_ref, *, dims):
    (owc1, owc2, owc3), oh3, n_pad = dims
    b_all = b_ref[...]                                    # (4, bmax)

    def conv_layer(x2d, sel_ref, m_ref, b_row):
        # x2d: (H, W*Cin) with lane index = w*Cin + ci (NHWC-flat rows).
        acc = None
        for kh in range(KS):                              # static unroll
            # Row gather (input rows 2*oh + kh) as a 0/1 matmul -> MXU only.
            rows = jnp.dot(sel_ref[kh], x2d, preferred_element_type=jnp.float32)
            # kw / Cin contraction + stride-2 column subsample, one matmul.
            part = jnp.dot(rows, m_ref[kh], preferred_element_type=jnp.float32)
            acc = part if acc is None else acc + part
        # (OH, OW*Cout): already the next layer's input layout.
        return jnp.maximum(acc + b_row, 0.0)

    y = conv_layer(x_ref[...], s1_ref, m1_ref, b_all[0:1, :owc1])
    y = conv_layer(y, s2_ref, m2_ref, b_all[1:2, :owc2])
    y = conv_layer(y, s3_ref, m3_ref, b_all[2:3, :owc3])

    # Fused linear layer: one matmul per remaining spatial row (oh3 is tiny).
    q = b_all[3:4, :n_pad]
    for oh in range(oh3):
        q = q + jnp.dot(y[oh:oh + 1, :], wl_ref[oh],
                        preferred_element_type=jnp.float32)
    o_ref[...] = q                                        # lane-dense (1, 128)


# ----------------------------------------------------------------------------
# Deterministic parameter init (shapes as declared in RNAQ.__init__)
# ----------------------------------------------------------------------------
def init_params(hauteur, largeur, nb_actions, key):
    wc = conv_out_size(conv_out_size(conv_out_size(largeur)))
    hc = conv_out_size(conv_out_size(conv_out_size(hauteur)))
    lin_in = wc * hc * 32

    def conv_block(k, c_in, c_out):
        k1, k2 = jax.random.split(k)
        w = 0.05 * jax.random.normal(k1, (c_out, c_in, KS, KS), jnp.float32)
        b = 0.01 * jax.random.normal(k2, (c_out,), jnp.float32)
        gamma = 1.0 + 0.1 * jnp.arange(c_out, dtype=jnp.float32) / c_out
        beta = 0.01 * jnp.arange(c_out, dtype=jnp.float32)
        mean = 0.02 * jnp.arange(c_out, dtype=jnp.float32)
        var = 1.0 + 0.05 * jnp.arange(c_out, dtype=jnp.float32) / c_out
        return dict(w=w, b=b, gamma=gamma, beta=beta, mean=mean, var=var)

    ks = jax.random.split(key, 5)
    return {
        "conv1": conv_block(ks[0], 3, 16),
        "conv2": conv_block(ks[1], 16, 32),
        "conv3": conv_block(ks[2], 32, 32),
        "lin_w": 0.05 * jax.random.normal(ks[3], (lin_in, nb_actions), jnp.float32),
        "lin_b": 0.01 * jax.random.normal(ks[4], (nb_actions,), jnp.float32),
    }


# ----------------------------------------------------------------------------
# One-time weight preparation: BN folding + conv lowering to band matrices
# ----------------------------------------------------------------------------
def fold_params(params, hauteur, largeur):
    def fold_conv(p):
        s = p["gamma"] / jnp.sqrt(p["var"] + BN_EPS)
        w = p["w"] * s[:, None, None, None]
        b = (p["b"] - p["mean"]) * s + p["beta"]
        return w, b

    def band_matrix(w_folded, w_in):
        """M[kh, w*Cin+ci, ow*Cout+co] = w_folded[co, ci, kh, w-2*ow] (0 outside)."""
        c_out, c_in = w_folded.shape[0], w_folded.shape[1]
        ow = conv_out_size(w_in)
        wi = jnp.arange(w_in)[:, None]
        oi = jnp.arange(ow)[None, :]
        kw = wi - STRIDE * oi                              # (W, OW)
        valid = (kw >= 0) & (kw < KS)
        kw_c = jnp.clip(kw, 0, KS - 1)
        wt = jnp.transpose(w_folded, (2, 3, 1, 0))         # (KH, KW, Cin, Cout)
        g = wt[:, kw_c, :, :]                              # (KH, W, OW, Cin, Cout)
        g = jnp.where(valid[None, :, :, None, None], g, 0.0)
        g = jnp.transpose(g, (0, 1, 3, 2, 4))              # (KH, W, Cin, OW, Cout)
        return g.reshape(KS, w_in * c_in, ow * c_out)

    def row_select(h_in):
        """sel[kh, oh, h] = 1 if h == STRIDE*oh + kh else 0."""
        oh = conv_out_size(h_in)
        khs = jnp.arange(KS)[:, None, None]
        ohs = jnp.arange(oh)[None, :, None]
        hs = jnp.arange(h_in)[None, None, :]
        return (hs == STRIDE * ohs + khs).astype(jnp.float32)

    w1, b1 = fold_conv(params["conv1"])
    w2, b2 = fold_conv(params["conv2"])
    w3, b3 = fold_conv(params["conv3"])

    wid0, hgt0 = largeur, hauteur
    wid1, hgt1 = conv_out_size(wid0), conv_out_size(hgt0)
    wid2, hgt2 = conv_out_size(wid1), conv_out_size(hgt1)
    wid3, hgt3 = conv_out_size(wid2), conv_out_size(hgt2)

    m1 = band_matrix(w1, wid0)
    m2 = band_matrix(w2, wid1)
    m3 = band_matrix(w3, wid2)
    s1 = row_select(hgt0)
    s2 = row_select(hgt1)
    s3 = row_select(hgt2)

    c3 = w3.shape[0]
    nb_actions = params["lin_w"].shape[1]
    assert nb_actions <= N_PAD

    # Linear weight: rows reordered from NCHW-flat (c, h, w) to the kernel's
    # (h, (w, c)) layout; columns zero-padded to 128 lanes (lane-dense store).
    wl = params["lin_w"].reshape(c3, hgt3, wid3, nb_actions)
    wl = jnp.transpose(wl, (1, 2, 0, 3)).reshape(hgt3, wid3 * c3, nb_actions)
    wl = jnp.pad(wl, ((0, 0), (0, 0), (0, N_PAD - nb_actions)))
    bl = jnp.pad(params["lin_b"], (0, N_PAD - nb_actions))

    # Per-layer biases, tiled across the fused (ow, cout) lanes, packed into
    # a single small slab (one VMEM block instead of four tiny ones).
    rows = [jnp.tile(b1, wid1), jnp.tile(b2, wid2), jnp.tile(b3, wid3), bl]
    bmax = max(int(r.shape[0]) for r in rows)
    biases = jnp.zeros((4, bmax), jnp.float32)
    for i, r in enumerate(rows):
        biases = biases.at[i, : r.shape[0]].set(r)

    return {"s1": s1, "s2": s2, "s3": s3,
            "m1": m1, "m2": m2, "m3": m3, "wl": wl, "biases": biases}


# ----------------------------------------------------------------------------
# Forward wrapper: one pallas_call for the whole network
# ----------------------------------------------------------------------------
def rnaq_forward(prep, x_nchw, *, nb_actions):
    s1, s2, s3 = prep["s1"], prep["s2"], prep["s3"]
    m1, m2, m3 = prep["m1"], prep["m2"], prep["m3"]
    wl, biases = prep["wl"], prep["biases"]

    bsz, cin, hgt, wid = x_nchw.shape
    # Layout plumbing only: NCHW -> (B, H, W*C) NHWC-flat rows.
    x2d = jnp.transpose(x_nchw, (0, 2, 3, 1)).reshape(bsz, hgt, wid * cin)

    owc1, owc2, owc3 = m1.shape[2], m2.shape[2], m3.shape[2]
    oh3 = wl.shape[0]
    n_pad = wl.shape[2]
    assert m1.shape[1] == wid * cin and m2.shape[1] == owc1 and m3.shape[1] == owc2
    assert s1.shape[2] == hgt and wl.shape[1] == owc3

    dims = ((owc1, owc2, owc3), oh3, n_pad)
    kernel = functools.partial(_rnaq_kernel, dims=dims)

    const = lambda b: (0, 0, 0)
    q_pad = pl.pallas_call(
        kernel,
        out_shape=jax.ShapeDtypeStruct((bsz, 1, n_pad), jnp.float32),
        grid=(bsz,),
        in_specs=[
            pl.BlockSpec((None, hgt, wid * cin), lambda b: (b, 0, 0)),
            pl.BlockSpec(s1.shape, const),
            pl.BlockSpec(s2.shape, const),
            pl.BlockSpec(s3.shape, const),
            pl.BlockSpec(m1.shape, const),
            pl.BlockSpec(m2.shape, const),
            pl.BlockSpec(m3.shape, const),
            pl.BlockSpec(wl.shape, const),
            pl.BlockSpec(biases.shape, lambda b: (0, 0)),
        ],
        out_specs=pl.BlockSpec((None, 1, n_pad), lambda b: (b, 0, 0)),
        compiler_params=pltpu.CompilerParams(
            dimension_semantics=("parallel",)),
    )(x2d, s1, s2, s3, m1, m2, m3, wl, biases)

    return q_pad[:, 0, :nb_actions]


# ----------------------------------------------------------------------------
# Plain-JAX reference (inference-mode BN) for a correctness check
# ----------------------------------------------------------------------------
def rnaq_reference(params, x_nchw):
    x = x_nchw
    for name in ("conv1", "conv2", "conv3"):
        p = params[name]
        y = jax.lax.conv_general_dilated(
            x, p["w"], window_strides=(STRIDE, STRIDE), padding="VALID",
            dimension_numbers=("NCHW", "OIHW", "NCHW"))
        y = y + p["b"][None, :, None, None]
        s = p["gamma"] / jnp.sqrt(p["var"] + BN_EPS)
        y = (y - p["mean"][None, :, None, None]) * s[None, :, None, None] \
            + p["beta"][None, :, None, None]
        x = jnp.maximum(y, 0.0)
    feat = x.reshape(x.shape[0], -1)
    return feat @ params["lin_w"] + params["lin_b"]


if __name__ == "__main__":
    # 3 input channels, 40x40 screen patch, 2 actions (CartPole), batch of 2.
    batch, hauteur, largeur, nb_actions = 2, 40, 40, 2

    key = jax.random.PRNGKey(0)
    k_params, k_x = jax.random.split(key)
    params = init_params(hauteur, largeur, nb_actions, k_params)
    x = jax.random.normal(k_x, (batch, 3, hauteur, largeur), jnp.float32)

    prep = fold_params(params, hauteur, largeur)       # one-time weight prep
    fwd = jax.jit(functools.partial(rnaq_forward, nb_actions=nb_actions))

    q = jax.block_until_ready(fwd(prep, x))
    q_ref = jax.block_until_ready(rnaq_reference(params, x))

    assert q.shape == (batch, nb_actions)
    assert bool(jnp.all(jnp.isfinite(q)))
    assert bool(jnp.allclose(q, q_ref, atol=1e-2, rtol=1e-2)), \
        f"max|diff|={float(jnp.max(jnp.abs(q - q_ref)))}"
    print("KERNEL_OK")
</pallas_src>

<mosaic_0001>
module attributes {stable_mosaic.version = 11 : i64} {
  func.func @_rnaq_kernel(%arg0: i32, %arg1: memref<1x40x120xf32, #tpu.memory_space<vmem>>, %arg2: memref<5x18x40xf32, #tpu.memory_space<vmem>>, %arg3: memref<5x7x18xf32, #tpu.memory_space<vmem>>, %arg4: memref<5x2x7xf32, #tpu.memory_space<vmem>>, %arg5: memref<5x120x288xf32, #tpu.memory_space<vmem>>, %arg6: memref<5x288x224xf32, #tpu.memory_space<vmem>>, %arg7: memref<5x224x64xf32, #tpu.memory_space<vmem>>, %arg8: memref<2x64x128xf32, #tpu.memory_space<vmem>>, %arg9: memref<4x288xf32, #tpu.memory_space<vmem>>, %arg10: memref<1x1x128xf32, #tpu.memory_space<vmem>>) attributes {dimension_semantics = [#tpu.dimension_semantics<parallel>], iteration_bounds = array<i64: 2>, scalar_prefetch = 0 : i64, scratch_operands = 0 : i64, tpu.core_type = #tpu.core_type<tc>, window_params = [{transform_indices = @transform_0, window_bounds = array<i64: 1, 40, 120>}, {pipeline_mode = #tpu.pipeline_mode<synchronous>, transform_indices = @transform_1, window_bounds = array<i64: 5, 18, 40>}, {pipeline_mode = #tpu.pipeline_mode<synchronous>, transform_indices = @transform_2, window_bounds = array<i64: 5, 7, 18>}, {pipeline_mode = #tpu.pipeline_mode<synchronous>, transform_indices = @transform_3, window_bounds = array<i64: 5, 2, 7>}, {pipeline_mode = #tpu.pipeline_mode<synchronous>, transform_indices = @transform_4, window_bounds = array<i64: 5, 120, 288>}, {pipeline_mode = #tpu.pipeline_mode<synchronous>, transform_indices = @transform_5, window_bounds = array<i64: 5, 288, 224>}, {pipeline_mode = #tpu.pipeline_mode<synchronous>, transform_indices = @transform_6, window_bounds = array<i64: 5, 224, 64>}, {pipeline_mode = #tpu.pipeline_mode<synchronous>, transform_indices = @transform_7, window_bounds = array<i64: 2, 64, 128>}, {pipeline_mode = #tpu.pipeline_mode<synchronous>, transform_indices = @transform_8, window_bounds = array<i64: 4, 288>}, {transform_indices = @transform_9, window_bounds = array<i64: 1, 1, 128>}]} {
    %c0 = arith.constant 0 : index
    %c0_0 = arith.constant 0 : index
    %0 = vector.load %arg9[%c0, %c0_0] : memref<4x288xf32, #tpu.memory_space<vmem>>, vector<4x288xf32>
    %c0_1 = arith.constant 0 : index
    %c0_2 = arith.constant 0 : index
    %c0_3 = arith.constant 0 : index
    %1 = vector.load %arg1[%c0_1, %c0_2, %c0_3] : memref<1x40x120xf32, #tpu.memory_space<vmem>>, vector<1x40x120xf32>
    %2 = vector.shape_cast %1 : vector<1x40x120xf32> to vector<40x120xf32>
    %3 = vector.extract_strided_slice %0 {offsets = [0, 0], sizes = [1, 288], strides = [1, 1]} : vector<4x288xf32> to vector<1x288xf32>
    %c0_4 = arith.constant 0 : index
    %c0_5 = arith.constant 0 : index
    %c0_6 = arith.constant 0 : index
    %4 = vector.load %arg2[%c0_4, %c0_5, %c0_6] : memref<5x18x40xf32, #tpu.memory_space<vmem>>, vector<1x18x40xf32>
    %5 = vector.shape_cast %4 : vector<1x18x40xf32> to vector<18x40xf32>
    %cst = arith.constant dense<0.000000e+00> : vector<18x120xf32>
    %6 = tpu.matmul %5, %2, %cst {dimension_numbers = #tpu.dot_dimension_numbers<[1], [0], [0], [1], [0, 0, 1, 1], [], []>} : vector<18x40xf32>, vector<40x120xf32>, vector<18x120xf32> -> vector<18x120xf32>
    %c0_7 = arith.constant 0 : index
    %c0_8 = arith.constant 0 : index
    %c0_9 = arith.constant 0 : index
    %7 = vector.load %arg5[%c0_7, %c0_8, %c0_9] : memref<5x120x288xf32, #tpu.memory_space<vmem>>, vector<1x120x288xf32>
    %8 = vector.shape_cast %7 : vector<1x120x288xf32> to vector<120x288xf32>
    %cst_10 = arith.constant dense<0.000000e+00> : vector<18x288xf32>
    %9 = tpu.matmul %6, %8, %cst_10 {dimension_numbers = #tpu.dot_dimension_numbers<[1], [0], [0], [1], [0, 0, 1, 1], [], []>} : vector<18x120xf32>, vector<120x288xf32>, vector<18x288xf32> -> vector<18x288xf32>
    %c1 = arith.constant 1 : index
    %c0_11 = arith.constant 0 : index
    %c0_12 = arith.constant 0 : index
    %10 = vector.load %arg2[%c1, %c0_11, %c0_12] : memref<5x18x40xf32, #tpu.memory_space<vmem>>, vector<1x18x40xf32>
    %11 = vector.shape_cast %10 : vector<1x18x40xf32> to vector<18x40xf32>
    %cst_13 = arith.constant dense<0.000000e+00> : vector<18x120xf32>
    %12 = tpu.matmul %11, %2, %cst_13 {dimension_numbers = #tpu.dot_dimension_numbers<[1], [0], [0], [1], [0, 0, 1, 1], [], []>} : vector<18x40xf32>, vector<40x120xf32>, vector<18x120xf32> -> vector<18x120xf32>
    %c1_14 = arith.constant 1 : index
    %c0_15 = arith.constant 0 : index
    %c0_16 = arith.constant 0 : index
    %13 = vector.load %arg5[%c1_14, %c0_15, %c0_16] : memref<5x120x288xf32, #tpu.memory_space<vmem>>, vector<1x120x288xf32>
    %14 = vector.shape_cast %13 : vector<1x120x288xf32> to vector<120x288xf32>
    %cst_17 = arith.constant dense<0.000000e+00> : vector<18x288xf32>
    %15 = tpu.matmul %12, %14, %cst_17 {dimension_numbers = #tpu.dot_dimension_numbers<[1], [0], [0], [1], [0, 0, 1, 1], [], []>} : vector<18x120xf32>, vector<120x288xf32>, vector<18x288xf32> -> vector<18x288xf32>
    %16 = arith.addf %9, %15 : vector<18x288xf32>
    %c2 = arith.constant 2 : index
    %c0_18 = arith.constant 0 : index
    %c0_19 = arith.constant 0 : index
    %17 = vector.load %arg2[%c2, %c0_18, %c0_19] : memref<5x18x40xf32, #tpu.memory_space<vmem>>, vector<1x18x40xf32>
    %18 = vector.shape_cast %17 : vector<1x18x40xf32> to vector<18x40xf32>
    %cst_20 = arith.constant dense<0.000000e+00> : vector<18x120xf32>
    %19 = tpu.matmul %18, %2, %cst_20 {dimension_numbers = #tpu.dot_dimension_numbers<[1], [0], [0], [1], [0, 0, 1, 1], [], []>} : vector<18x40xf32>, vector<40x120xf32>, vector<18x120xf32> -> vector<18x120xf32>
    %c2_21 = arith.constant 2 : index
    %c0_22 = arith.constant 0 : index
    %c0_23 = arith.constant 0 : index
    %20 = vector.load %arg5[%c2_21, %c0_22, %c0_23] : memref<5x120x288xf32, #tpu.memory_space<vmem>>, vector<1x120x288xf32>
    %21 = vector.shape_cast %20 : vector<1x120x288xf32> to vector<120x288xf32>
    %cst_24 = arith.constant dense<0.000000e+00> : vector<18x288xf32>
    %22 = tpu.matmul %19, %21, %cst_24 {dimension_numbers = #tpu.dot_dimension_numbers<[1], [0], [0], [1], [0, 0, 1, 1], [], []>} : vector<18x120xf32>, vector<120x288xf32>, vector<18x288xf32> -> vector<18x288xf32>
    %23 = arith.addf %16, %22 : vector<18x288xf32>
    %c3 = arith.constant 3 : index
    %c0_25 = arith.constant 0 : index
    %c0_26 = arith.constant 0 : index
    %24 = vector.load %arg2[%c3, %c0_25, %c0_26] : memref<5x18x40xf32, #tpu.memory_space<vmem>>, vector<1x18x40xf32>
    %25 = vector.shape_cast %24 : vector<1x18x40xf32> to vector<18x40xf32>
    %cst_27 = arith.constant dense<0.000000e+00> : vector<18x120xf32>
    %26 = tpu.matmul %25, %2, %cst_27 {dimension_numbers = #tpu.dot_dimension_numbers<[1], [0], [0], [1], [0, 0, 1, 1], [], []>} : vector<18x40xf32>, vector<40x120xf32>, vector<18x120xf32> -> vector<18x120xf32>
    %c3_28 = arith.constant 3 : index
    %c0_29 = arith.constant 0 : index
    %c0_30 = arith.constant 0 : index
    %27 = vector.load %arg5[%c3_28, %c0_29, %c0_30] : memref<5x120x288xf32, #tpu.memory_space<vmem>>, vector<1x120x288xf32>
    %28 = vector.shape_cast %27 : vector<1x120x288xf32> to vector<120x288xf32>
    %cst_31 = arith.constant dense<0.000000e+00> : vector<18x288xf32>
    %29 = tpu.matmul %26, %28, %cst_31 {dimension_numbers = #tpu.dot_dimension_numbers<[1], [0], [0], [1], [0, 0, 1, 1], [], []>} : vector<18x120xf32>, vector<120x288xf32>, vector<18x288xf32> -> vector<18x288xf32>
    %30 = arith.addf %23, %29 : vector<18x288xf32>
    %c4 = arith.constant 4 : index
    %c0_32 = arith.constant 0 : index
    %c0_33 = arith.constant 0 : index
    %31 = vector.load %arg2[%c4, %c0_32, %c0_33] : memref<5x18x40xf32, #tpu.memory_space<vmem>>, vector<1x18x40xf32>
    %32 = vector.shape_cast %31 : vector<1x18x40xf32> to vector<18x40xf32>
    %cst_34 = arith.constant dense<0.000000e+00> : vector<18x120xf32>
    %33 = tpu.matmul %32, %2, %cst_34 {dimension_numbers = #tpu.dot_dimension_numbers<[1], [0], [0], [1], [0, 0, 1, 1], [], []>} : vector<18x40xf32>, vector<40x120xf32>, vector<18x120xf32> -> vector<18x120xf32>
    %c4_35 = arith.constant 4 : index
    %c0_36 = arith.constant 0 : index
    %c0_37 = arith.constant 0 : index
    %34 = vector.load %arg5[%c4_35, %c0_36, %c0_37] : memref<5x120x288xf32, #tpu.memory_space<vmem>>, vector<1x120x288xf32>
    %35 = vector.shape_cast %34 : vector<1x120x288xf32> to vector<120x288xf32>
    %cst_38 = arith.constant dense<0.000000e+00> : vector<18x288xf32>
    %36 = tpu.matmul %33, %35, %cst_38 {dimension_numbers = #tpu.dot_dimension_numbers<[1], [0], [0], [1], [0, 0, 1, 1], [], []>} : vector<18x120xf32>, vector<120x288xf32>, vector<18x288xf32> -> vector<18x288xf32>
    %37 = arith.addf %30, %36 : vector<18x288xf32>
    %38 = vector.broadcast %3 : vector<1x288xf32> to vector<18x288xf32>
    %39 = arith.addf %37, %38 : vector<18x288xf32>
    %cst_39 = arith.constant 0.000000e+00 : f32
    %40 = vector.broadcast %cst_39 : f32 to vector<18x288xf32>
    %41 = arith.maximumf %39, %40 : vector<18x288xf32>
    %42 = vector.extract_strided_slice %0 {offsets = [1, 0], sizes = [1, 224], strides = [1, 1]} : vector<4x288xf32> to vector<1x224xf32>
    %c0_40 = arith.constant 0 : index
    %c0_41 = arith.constant 0 : index
    %c0_42 = arith.constant 0 : index
    %43 = vector.load %arg3[%c0_40, %c0_41, %c0_42] : memref<5x7x18xf32, #tpu.memory_space<vmem>>, vector<1x7x18xf32>
    %44 = vector.shape_cast %43 : vector<1x7x18xf32> to vector<7x18xf32>
    %cst_43 = arith.constant dense<0.000000e+00> : vector<7x288xf32>
    %45 = tpu.matmul %44, %41, %cst_43 {dimension_numbers = #tpu.dot_dimension_numbers<[1], [0], [0], [1], [0, 0, 1, 1], [], []>} : vector<7x18xf32>, vector<18x288xf32>, vector<7x288xf32> -> vector<7x288xf32>
    %c0_44 = arith.constant 0 : index
    %c0_45 = arith.constant 0 : index
    %c0_46 = arith.constant 0 : index
    %46 = vector.load %arg6[%c0_44, %c0_45, %c0_46] : memref<5x288x224xf32, #tpu.memory_space<vmem>>, vector<1x288x224xf32>
    %47 = vector.shape_cast %46 : vector<1x288x224xf32> to vector<288x224xf32>
    %cst_47 = arith.constant dense<0.000000e+00> : vector<7x224xf32>
    %48 = tpu.matmul %45, %47, %cst_47 {dimension_numbers = #tpu.dot_dimension_numbers<[1], [0], [0], [1], [0, 0, 1, 1], [], []>} : vector<7x288xf32>, vector<288x224xf32>, vector<7x224xf32> -> vector<7x224xf32>
    %c1_48 = arith.constant 1 : index
    %c0_49 = arith.constant 0 : index
    %c0_50 = arith.constant 0 : index
    %49 = vector.load %arg3[%c1_48, %c0_49, %c0_50] : memref<5x7x18xf32, #tpu.memory_space<vmem>>, vector<1x7x18xf32>
    %50 = vector.shape_cast %49 : vector<1x7x18xf32> to vector<7x18xf32>
    %cst_51 = arith.constant dense<0.000000e+00> : vector<7x288xf32>
    %51 = tpu.matmul %50, %41, %cst_51 {dimension_numbers = #tpu.dot_dimension_numbers<[1], [0], [0], [1], [0, 0, 1, 1], [], []>} : vector<7x18xf32>, vector<18x288xf32>, vector<7x288xf32> -> vector<7x288xf32>
    %c1_52 = arith.constant 1 : index
    %c0_53 = arith.constant 0 : index
    %c0_54 = arith.constant 0 : index
    %52 = vector.load %arg6[%c1_52, %c0_53, %c0_54] : memref<5x288x224xf32, #tpu.memory_space<vmem>>, vector<1x288x224xf32>
    %53 = vector.shape_cast %52 : vector<1x288x224xf32> to vector<288x224xf32>
    %cst_55 = arith.constant dense<0.000000e+00> : vector<7x224xf32>
    %54 = tpu.matmul %51, %53, %cst_55 {dimension_numbers = #tpu.dot_dimension_numbers<[1], [0], [0], [1], [0, 0, 1, 1], [], []>} : vector<7x288xf32>, vector<288x224xf32>, vector<7x224xf32> -> vector<7x224xf32>
    %55 = arith.addf %48, %54 : vector<7x224xf32>
    %c2_56 = arith.constant 2 : index
    %c0_57 = arith.constant 0 : index
    %c0_58 = arith.constant 0 : index
    %56 = vector.load %arg3[%c2_56, %c0_57, %c0_58] : memref<5x7x18xf32, #tpu.memory_space<vmem>>, vector<1x7x18xf32>
    %57 = vector.shape_cast %56 : vector<1x7x18xf32> to vector<7x18xf32>
    %cst_59 = arith.constant dense<0.000000e+00> : vector<7x288xf32>
    %58 = tpu.matmul %57, %41, %cst_59 {dimension_numbers = #tpu.dot_dimension_numbers<[1], [0], [0], [1], [0, 0, 1, 1], [], []>} : vector<7x18xf32>, vector<18x288xf32>, vector<7x288xf32> -> vector<7x288xf32>
    %c2_60 = arith.constant 2 : index
    %c0_61 = arith.constant 0 : index
    %c0_62 = arith.constant 0 : index
    %59 = vector.load %arg6[%c2_60, %c0_61, %c0_62] : memref<5x288x224xf32, #tpu.memory_space<vmem>>, vector<1x288x224xf32>
    %60 = vector.shape_cast %59 : vector<1x288x224xf32> to vector<288x224xf32>
    %cst_63 = arith.constant dense<0.000000e+00> : vector<7x224xf32>
    %61 = tpu.matmul %58, %60, %cst_63 {dimension_numbers = #tpu.dot_dimension_numbers<[1], [0], [0], [1], [0, 0, 1, 1], [], []>} : vector<7x288xf32>, vector<288x224xf32>, vector<7x224xf32> -> vector<7x224xf32>
    %62 = arith.addf %55, %61 : vector<7x224xf32>
    %c3_64 = arith.constant 3 : index
    %c0_65 = arith.constant 0 : index
    %c0_66 = arith.constant 0 : index
    %63 = vector.load %arg3[%c3_64, %c0_65, %c0_66] : memref<5x7x18xf32, #tpu.memory_space<vmem>>, vector<1x7x18xf32>
    %64 = vector.shape_cast %63 : vector<1x7x18xf32> to vector<7x18xf32>
    %cst_67 = arith.constant dense<0.000000e+00> : vector<7x288xf32>
    %65 = tpu.matmul %64, %41, %cst_67 {dimension_numbers = #tpu.dot_dimension_numbers<[1], [0], [0], [1], [0, 0, 1, 1], [], []>} : vector<7x18xf32>, vector<18x288xf32>, vector<7x288xf32> -> vector<7x288xf32>
    %c3_68 = arith.constant 3 : index
    %c0_69 = arith.constant 0 : index
    %c0_70 = arith.constant 0 : index
    %66 = vector.load %arg6[%c3_68, %c0_69, %c0_70] : memref<5x288x224xf32, #tpu.memory_space<vmem>>, vector<1x288x224xf32>
    %67 = vector.shape_cast %66 : vector<1x288x224xf32> to vector<288x224xf32>
    %cst_71 = arith.constant dense<0.000000e+00> : vector<7x224xf32>
    %68 = tpu.matmul %65, %67, %cst_71 {dimension_numbers = #tpu.dot_dimension_numbers<[1], [0], [0], [1], [0, 0, 1, 1], [], []>} : vector<7x288xf32>, vector<288x224xf32>, vector<7x224xf32> -> vector<7x224xf32>
    %69 = arith.addf %62, %68 : vector<7x224xf32>
    %c4_72 = arith.constant 4 : index
    %c0_73 = arith.constant 0 : index
    %c0_74 = arith.constant 0 : index
    %70 = vector.load %arg3[%c4_72, %c0_73, %c0_74] : memref<5x7x18xf32, #tpu.memory_space<vmem>>, vector<1x7x18xf32>
    %71 = vector.shape_cast %70 : vector<1x7x18xf32> to vector<7x18xf32>
    %cst_75 = arith.constant dense<0.000000e+00> : vector<7x288xf32>
    %72 = tpu.matmul %71, %41, %cst_75 {dimension_numbers = #tpu.dot_dimension_numbers<[1], [0], [0], [1], [0, 0, 1, 1], [], []>} : vector<7x18xf32>, vector<18x288xf32>, vector<7x288xf32> -> vector<7x288xf32>
    %c4_76 = arith.constant 4 : index
    %c0_77 = arith.constant 0 : index
    %c0_78 = arith.constant 0 : index
    %73 = vector.load %arg6[%c4_76, %c0_77, %c0_78] : memref<5x288x224xf32, #tpu.memory_space<vmem>>, vector<1x288x224xf32>
    %74 = vector.shape_cast %73 : vector<1x288x224xf32> to vector<288x224xf32>
    %cst_79 = arith.constant dense<0.000000e+00> : vector<7x224xf32>
    %75 = tpu.matmul %72, %74, %cst_79 {dimension_numbers = #tpu.dot_dimension_numbers<[1], [0], [0], [1], [0, 0, 1, 1], [], []>} : vector<7x288xf32>, vector<288x224xf32>, vector<7x224xf32> -> vector<7x224xf32>
    %76 = arith.addf %69, %75 : vector<7x224xf32>
    %77 = vector.broadcast %42 : vector<1x224xf32> to vector<7x224xf32>
    %78 = arith.addf %76, %77 : vector<7x224xf32>
    %cst_80 = arith.constant 0.000000e+00 : f32
    %79 = vector.broadcast %cst_80 : f32 to vector<7x224xf32>
    %80 = arith.maximumf %78, %79 : vector<7x224xf32>
    %81 = vector.extract_strided_slice %0 {offsets = [2, 0], sizes = [1, 64], strides = [1, 1]} : vector<4x288xf32> to vector<1x64xf32>
    %c0_81 = arith.constant 0 : index
    %c0_82 = arith.constant 0 : index
    %c0_83 = arith.constant 0 : index
    %82 = vector.load %arg4[%c0_81, %c0_82, %c0_83] : memref<5x2x7xf32, #tpu.memory_space<vmem>>, vector<1x2x7xf32>
    %83 = vector.shape_cast %82 : vector<1x2x7xf32> to vector<2x7xf32>
    %cst_84 = arith.constant dense<0.000000e+00> : vector<2x224xf32>
    %84 = tpu.matmul %83, %80, %cst_84 {dimension_numbers = #tpu.dot_dimension_numbers<[1], [0], [0], [1], [0, 0, 1, 1], [], []>} : vector<2x7xf32>, vector<7x224xf32>, vector<2x224xf32> -> vector<2x224xf32>
    %c0_85 = arith.constant 0 : index
    %c0_86 = arith.constant 0 : index
    %c0_87 = arith.constant 0 : index
    %85 = vector.load %arg7[%c0_85, %c0_86, %c0_87] : memref<5x224x64xf32, #tpu.memory_space<vmem>>, vector<1x224x64xf32>
    %86 = vector.shape_cast %85 : vector<1x224x64xf32> to vector<224x64xf32>
    %cst_88 = arith.constant dense<0.000000e+00> : vector<2x64xf32>
    %87 = tpu.matmul %84, %86, %cst_88 {dimension_numbers = #tpu.dot_dimension_numbers<[1], [0], [0], [1], [0, 0, 1, 1], [], []>} : vector<2x224xf32>, vector<224x64xf32>, vector<2x64xf32> -> vector<2x64xf32>
    %c1_89 = arith.constant 1 : index
    %c0_90 = arith.constant 0 : index
    %c0_91 = arith.constant 0 : index
    %88 = vector.load %arg4[%c1_89, %c0_90, %c0_91] : memref<5x2x7xf32, #tpu.memory_space<vmem>>, vector<1x2x7xf32>
    %89 = vector.shape_cast %88 : vector<1x2x7xf32> to vector<2x7xf32>
    %cst_92 = arith.constant dense<0.000000e+00> : vector<2x224xf32>
    %90 = tpu.matmul %89, %80, %cst_92 {dimension_numbers = #tpu.dot_dimension_numbers<[1], [0], [0], [1], [0, 0, 1, 1], [], []>} : vector<2x7xf32>, vector<7x224xf32>, vector<2x224xf32> -> vector<2x224xf32>
    %c1_93 = arith.constant 1 : index
    %c0_94 = arith.constant 0 : index
    %c0_95 = arith.constant 0 : index
    %91 = vector.load %arg7[%c1_93, %c0_94, %c0_95] : memref<5x224x64xf32, #tpu.memory_space<vmem>>, vector<1x224x64xf32>
    %92 = vector.shape_cast %91 : vector<1x224x64xf32> to vector<224x64xf32>
    %cst_96 = arith.constant dense<0.000000e+00> : vector<2x64xf32>
    %93 = tpu.matmul %90, %92, %cst_96 {dimension_numbers = #tpu.dot_dimension_numbers<[1], [0], [0], [1], [0, 0, 1, 1], [], []>} : vector<2x224xf32>, vector<224x64xf32>, vector<2x64xf32> -> vector<2x64xf32>
    %94 = arith.addf %87, %93 : vector<2x64xf32>
    %c2_97 = arith.constant 2 : index
    %c0_98 = arith.constant 0 : index
    %c0_99 = arith.constant 0 : index
    %95 = vector.load %arg4[%c2_97, %c0_98, %c0_99] : memref<5x2x7xf32, #tpu.memory_space<vmem>>, vector<1x2x7xf32>
    %96 = vector.shape_cast %95 : vector<1x2x7xf32> to vector<2x7xf32>
    %cst_100 = arith.constant dense<0.000000e+00> : vector<2x224xf32>
    %97 = tpu.matmul %96, %80, %cst_100 {dimension_numbers = #tpu.dot_dimension_numbers<[1], [0], [0], [1], [0, 0, 1, 1], [], []>} : vector<2x7xf32>, vector<7x224xf32>, vector<2x224xf32> -> vector<2x224xf32>
    %c2_101 = arith.constant 2 : index
    %c0_102 = arith.constant 0 : index
    %c0_103 = arith.constant 0 : index
    %98 = vector.load %arg7[%c2_101, %c0_102, %c0_103] : memref<5x224x64xf32, #tpu.memory_space<vmem>>, vector<1x224x64xf32>
    %99 = vector.shape_cast %98 : vector<1x224x64xf32> to vector<224x64xf32>
    %cst_104 = arith.constant dense<0.000000e+00> : vector<2x64xf32>
    %100 = tpu.matmul %97, %99, %cst_104 {dimension_numbers = #tpu.dot_dimension_numbers<[1], [0], [0], [1], [0, 0, 1, 1], [], []>} : vector<2x224xf32>, vector<224x64xf32>, vector<2x64xf32> -> vector<2x64xf32>
    %101 = arith.addf %94, %100 : vector<2x64xf32>
    %c3_105 = arith.constant 3 : index
    %c0_106 = arith.constant 0 : index
    %c0_107 = arith.constant 0 : index
    %102 = vector.load %arg4[%c3_105, %c0_106, %c0_107] : memref<5x2x7xf32, #tpu.memory_space<vmem>>, vector<1x2x7xf32>
    %103 = vector.shape_cast %102 : vector<1x2x7xf32> to vector<2x7xf32>
    %cst_108 = arith.constant dense<0.000000e+00> : vector<2x224xf32>
    %104 = tpu.matmul %103, %80, %cst_108 {dimension_numbers = #tpu.dot_dimension_numbers<[1], [0], [0], [1], [0, 0, 1, 1], [], []>} : vector<2x7xf32>, vector<7x224xf32>, vector<2x224xf32> -> vector<2x224xf32>
    %c3_109 = arith.constant 3 : index
    %c0_110 = arith.constant 0 : index
    %c0_111 = arith.constant 0 : index
    %105 = vector.load %arg7[%c3_109, %c0_110, %c0_111] : memref<5x224x64xf32, #tpu.memory_space<vmem>>, vector<1x224x64xf32>
    %106 = vector.shape_cast %105 : vector<1x224x64xf32> to vector<224x64xf32>
    %cst_112 = arith.constant dense<0.000000e+00> : vector<2x64xf32>
    %107 = tpu.matmul %104, %106, %cst_112 {dimension_numbers = #tpu.dot_dimension_numbers<[1], [0], [0], [1], [0, 0, 1, 1], [], []>} : vector<2x224xf32>, vector<224x64xf32>, vector<2x64xf32> -> vector<2x64xf32>
    %108 = arith.addf %101, %107 : vector<2x64xf32>
    %c4_113 = arith.constant 4 : index
    %c0_114 = arith.constant 0 : index
    %c0_115 = arith.constant 0 : index
    %109 = vector.load %arg4[%c4_113, %c0_114, %c0_115] : memref<5x2x7xf32, #tpu.memory_space<vmem>>, vector<1x2x7xf32>
    %110 = vector.shape_cast %109 : vector<1x2x7xf32> to vector<2x7xf32>
    %cst_116 = arith.constant dense<0.000000e+00> : vector<2x224xf32>
    %111 = tpu.matmul %110, %80, %cst_116 {dimension_numbers = #tpu.dot_dimension_numbers<[1], [0], [0], [1], [0, 0, 1, 1], [], []>} : vector<2x7xf32>, vector<7x224xf32>, vector<2x224xf32> -> vector<2x224xf32>
    %c4_117 = arith.constant 4 : index
    %c0_118 = arith.constant 0 : index
    %c0_119 = arith.constant 0 : index
    %112 = vector.load %arg7[%c4_117, %c0_118, %c0_119] : memref<5x224x64xf32, #tpu.memory_space<vmem>>, vector<1x224x64xf32>
    %113 = vector.shape_cast %112 : vector<1x224x64xf32> to vector<224x64xf32>
    %cst_120 = arith.constant dense<0.000000e+00> : vector<2x64xf32>
    %114 = tpu.matmul %111, %113, %cst_120 {dimension_numbers = #tpu.dot_dimension_numbers<[1], [0], [0], [1], [0, 0, 1, 1], [], []>} : vector<2x224xf32>, vector<224x64xf32>, vector<2x64xf32> -> vector<2x64xf32>
    %115 = arith.addf %108, %114 : vector<2x64xf32>
    %116 = vector.broadcast %81 : vector<1x64xf32> to vector<2x64xf32>
    %117 = arith.addf %115, %116 : vector<2x64xf32>
    %cst_121 = arith.constant 0.000000e+00 : f32
    %118 = vector.broadcast %cst_121 : f32 to vector<2x64xf32>
    %119 = arith.maximumf %117, %118 : vector<2x64xf32>
    %120 = vector.extract_strided_slice %0 {offsets = [3, 0], sizes = [1, 128], strides = [1, 1]} : vector<4x288xf32> to vector<1x128xf32>
    %121 = vector.extract_strided_slice %119 {offsets = [0, 0], sizes = [1, 64], strides = [1, 1]} : vector<2x64xf32> to vector<1x64xf32>
    %c0_122 = arith.constant 0 : index
    %c0_123 = arith.constant 0 : index
    %c0_124 = arith.constant 0 : index
    %122 = vector.load %arg8[%c0_122, %c0_123, %c0_124] : memref<2x64x128xf32, #tpu.memory_space<vmem>>, vector<1x64x128xf32>
    %123 = vector.shape_cast %122 : vector<1x64x128xf32> to vector<64x128xf32>
    %cst_125 = arith.constant dense<0.000000e+00> : vector<1x128xf32>
    %124 = tpu.matmul %121, %123, %cst_125 {dimension_numbers = #tpu.dot_dimension_numbers<[1], [0], [0], [1], [0, 0, 1, 1], [], []>} : vector<1x64xf32>, vector<64x128xf32>, vector<1x128xf32> -> vector<1x128xf32>
    %125 = arith.addf %120, %124 : vector<1x128xf32>
    %126 = vector.extract_strided_slice %119 {offsets = [1, 0], sizes = [1, 64], strides = [1, 1]} : vector<2x64xf32> to vector<1x64xf32>
    %c1_126 = arith.constant 1 : index
    %c0_127 = arith.constant 0 : index
    %c0_128 = arith.constant 0 : index
    %127 = vector.load %arg8[%c1_126, %c0_127, %c0_128] : memref<2x64x128xf32, #tpu.memory_space<vmem>>, vector<1x64x128xf32>
    %128 = vector.shape_cast %127 : vector<1x64x128xf32> to vector<64x128xf32>
    %cst_129 = arith.constant dense<0.000000e+00> : vector<1x128xf32>
    %129 = tpu.matmul %126, %128, %cst_129 {dimension_numbers = #tpu.dot_dimension_numbers<[1], [0], [0], [1], [0, 0, 1, 1], [], []>} : vector<1x64xf32>, vector<64x128xf32>, vector<1x128xf32> -> vector<1x128xf32>
    %130 = arith.addf %125, %129 : vector<1x128xf32>
    %c0_130 = arith.constant 0 : index
    %c0_131 = arith.constant 0 : index
    %c0_132 = arith.constant 0 : index
    %131 = vector.load %arg10[%c0_130, %c0_131, %c0_132] : memref<1x1x128xf32, #tpu.memory_space<vmem>>, vector<1x1x128xf32>
    %132 = vector.shape_cast %131 : vector<1x1x128xf32> to vector<1x128xf32>
    %133 = vector.shape_cast %130 : vector<1x128xf32> to vector<1x1x128xf32>
    tpu.vector_store %arg10[%c0_130, %c0_131, %c0_132], %133 {strides = array<i32>} : memref<1x1x128xf32, #tpu.memory_space<vmem>>, vector<1x1x128xf32>,
    return
  }
  func.func @transform_0(%arg0: i32) -> (i32, i32, i32) {
    %c0_i32 = arith.constant 0 : i32
    %c0_i32_0 = arith.constant 0 : i32
    %c0_i32_1 = arith.constant 0 : i32
    return %arg0, %c0_i32, %c0_i32_0 : i32, i32, i32
  }
  func.func @transform_1(%arg0: i32) -> (i32, i32, i32) {
    %c0_i32 = arith.constant 0 : i32
    %c0_i32_0 = arith.constant 0 : i32
    %c0_i32_1 = arith.constant 0 : i32
    %c0_i32_2 = arith.constant 0 : i32
    return %c0_i32, %c0_i32_0, %c0_i32_1 : i32, i32, i32
  }
  func.func @transform_2(%arg0: i32) -> (i32, i32, i32) {
    %c0_i32 = arith.constant 0 : i32
    %c0_i32_0 = arith.constant 0 : i32
    %c0_i32_1 = arith.constant 0 : i32
    %c0_i32_2 = arith.constant 0 : i32
    return %c0_i32, %c0_i32_0, %c0_i32_1 : i32, i32, i32
  }
  func.func @transform_3(%arg0: i32) -> (i32, i32, i32) {
    %c0_i32 = arith.constant 0 : i32
    %c0_i32_0 = arith.constant 0 : i32
    %c0_i32_1 = arith.constant 0 : i32
    %c0_i32_2 = arith.constant 0 : i32
    return %c0_i32, %c0_i32_0, %c0_i32_1 : i32, i32, i32
  }
  func.func @transform_4(%arg0: i32) -> (i32, i32, i32) {
    %c0_i32 = arith.constant 0 : i32
    %c0_i32_0 = arith.constant 0 : i32
    %c0_i32_1 = arith.constant 0 : i32
    %c0_i32_2 = arith.constant 0 : i32
    return %c0_i32, %c0_i32_0, %c0_i32_1 : i32, i32, i32
  }
  func.func @transform_5(%arg0: i32) -> (i32, i32, i32) {
    %c0_i32 = arith.constant 0 : i32
    %c0_i32_0 = arith.constant 0 : i32
    %c0_i32_1 = arith.constant 0 : i32
    %c0_i32_2 = arith.constant 0 : i32
    return %c0_i32, %c0_i32_0, %c0_i32_1 : i32, i32, i32
  }
  func.func @transform_6(%arg0: i32) -> (i32, i32, i32) {
    %c0_i32 = arith.constant 0 : i32
    %c0_i32_0 = arith.constant 0 : i32
    %c0_i32_1 = arith.constant 0 : i32
    %c0_i32_2 = arith.constant 0 : i32
    return %c0_i32, %c0_i32_0, %c0_i32_1 : i32, i32, i32
  }
  func.func @transform_7(%arg0: i32) -> (i32, i32, i32) {
    %c0_i32 = arith.constant 0 : i32
    %c0_i32_0 = arith.constant 0 : i32
    %c0_i32_1 = arith.constant 0 : i32
    %c0_i32_2 = arith.constant 0 : i32
    return %c0_i32, %c0_i32_0, %c0_i32_1 : i32, i32, i32
  }
  func.func @transform_8(%arg0: i32) -> (i32, i32) {
    %c0_i32 = arith.constant 0 : i32
    %c0_i32_0 = arith.constant 0 : i32
    %c0_i32_1 = arith.constant 0 : i32
    return %c0_i32, %c0_i32_0 : i32, i32
  }
  func.func @transform_9(%arg0: i32) -> (i32, i32, i32) {
    %c0_i32 = arith.constant 0 : i32
    %c0_i32_0 = arith.constant 0 : i32
    %c0_i32_1 = arith.constant 0 : i32
    return %arg0, %c0_i32, %c0_i32_0 : i32, i32, i32
  }
}

</mosaic_0001>

<bundles_post_ra>
// kernel: rnaq_forward.1
= control target key start
LH: loop header
LB: loop body
LE: loop exit
PB: predicated region body
PF: predicated region fallthrough
CT: control target
= control target key end

     0   :  { %14 = vsyncpa [#allocation3], 0  ;;  %s6927_s0 = inlined_call_operand.vmem [shape: f32[2,40,120], index: 0, kind: input, shape index: {}]   ;;  %s6928_s1 = inlined_call_operand.vmem [shape: f32[5,18,40], index: 1, kind: input, shape index: {}]   ;;  %s6929_s2 = inlined_call_operand.vmem [shape: f32[5,7,18], index: 2, kind: input, shape index: {}]   ;;  %s6930_s3 = inlined_call_operand.vmem [shape: f32[5,2,7], index: 3, kind: input, shape index: {}]   ;;  %s6931_s4 = inlined_call_operand.vmem [shape: f32[5,120,288], index: 4, kind: input, shape index: {}]   ;;  %s6932_s5 = inlined_call_operand.vmem [shape: f32[5,288,224], index: 5, kind: input, shape index: {}]   ;;  %s6933_s6 = inlined_call_operand.vmem [shape: f32[5,224,64], index: 6, kind: input, shape index: {}]   ;;  %s6934_s7 = inlined_call_operand.vmem [shape: f32[2,64,128], index: 7, kind: input, shape index: {}]   ;;  %s6935_s8 = inlined_call_operand.vmem [shape: f32[4,288], index: 8, kind: input, shape index: {}]   ;;  %s6936_s9 = inlined_call_operand.hbm [shape: f32[2,1,128], index: 9, kind: output, shape index: {}]  }
   0x1   :  { %16 = vsyncpa [#allocation3 + $0x1], 0  ;;  %s4220_s30 = smov 0   ;;  %s4222_s10 = smov 0  }
   0x2   :  { %s4224_s11 = smov 0   ;;  %s4226_s12 = smov 0  }
   0x3 LB: > { %s4241_s13 = sadd.s32 4294967295, %s4168_s12   ;;  %s3323_s14 = sadd.s32 4294967294, %s4168_s12   ;;  %s4168_s12 = sphi %s4226_s12, %s6944_s12   ;;  %s4164_s11 = sphi %s4224_s11, %s6943_s11   ;;  %s4160_s10 = sphi %s4222_s10, %s6942_s10   ;;  %s4156_s30 = sphi %s4220_s30, %s6941_s30  }
   0x4   : > { %s4245_s15 = sadd.s32 1, %s4168_s12   ;;  %s223_s16 = sadd.s32 1, %s4164_s11 }
   0x5   : > { %s220_s17 = ssub.s32 %s4168_s12, %s4245_s15  ;;  %p233_p0 = scmp.ne.s32.totalorder %s4164_s11, %s4160_s10 }
   0x6   : > { %p221_p1 = scmp.eq.s32.totalorder %s220_s17, 0  ;;  %p234_p2 = scmp.eq.s32.totalorder %s4241_s13, 1 }
   0x7   : > { %p239_p3 = scmp.ne.s32.totalorder %s4160_s10, %s4156_s30  ;;  %p240_p4 = scmp.eq.s32.totalorder %s3323_s14, 1 }
   0x8   : > { %s4256_s18 = scalar_select %p221_p1, %s4164_s11, %s223_s16  }
   0x9   : > { %p4258_p5 = por %p234_p2, %p233_p0  ;;  %p4262_p6 = por %p240_p4, %p239_p3 }
   0xa   : > { %6937 = sst [smem:[#allocation5_spill]] %s4256_s18  ;;  %p3326_p7 = scmp.ge.s32.totalorder %s4168_s12, 1 }
   0xb   : > { %p290_p8 = scmp.lt.s32.totalorder %s4168_s12, 3 }
   0xd   : > { %p291_p9 = pnand %p3326_p7, %p290_p8 }
   0xe   : > { %p325_p10 = scmp.lt.s32.totalorder (!%p291_p9), %s4241_s13, 1  ;;  %s323_s18 = sand.u32 (!%p291_p9), 1, %s4160_s10  }
   0xf   : > { %294 = sbr.rel (%p291_p9) target bundleno = 2064 (0x810), region = 56  ;;  %s3264_s22 = scalar_lea.hbm (!%p291_p9), %s6936_s9, %s4241_s13 }
  0x10   : > { %s3268_s24 = sshll.u32 (!%p291_p9), %s3264_s22, 4  ;;  %s3256_s25 = scalar_lea.sflag (!%p291_p9), [#allocation3], %s323_s18  ;;  %s3269_s24 = int_to_ptr.hbm [resolvable:$true] %s3268_s24 }
  0x11   : > { %s4120_s27 = sshra.s32 (!%p291_p9), %s3269_s24, 4  ;;  %s4126_s29 = scalar_lea.hbm (!%p291_p9), %s6936_s9, 2  ;;  %s4121_s27 = int_to_ptr.hbm [resolvable:$true] %s4120_s27 }
  0x12   : > { %s4122_s28 = scalar_lea.hbm (!%p291_p9), %s4121_s27, 1  ;;  %p4127_p0 = scmp.lt.s32.totalorder (!%p291_p9), %s4121_s27, %s6936_s9 }
  0x13   : > { %p4123_p11 = scmp.ne.s32.totalorder (!%p291_p9), %s4121_s27, %s4122_s28  ;;  %p4128_p1 = scmp.lt.s32.totalorder (!%p291_p9), %s4126_s29, %s4122_s28 }
  0x14   : > { %s326_s21 = scalar_select %p325_p10, %s4241_s13, 1  ;;  %v3379_v0 = vld [vmem:[%s6931_s4 + $0x2b8] sm:$0xff]  ;;  %v3380_v1 = vld [vmem:[%s6931_s4 + $0x2c0] sm:$0xff]  ;;  %v3377_v3 = vld [vmem:[%s6931_s4 + $0x2a8] sm:$0xff]  ;;  %vm340_vm0 = vcmask 326656   ;;  %vm506_vm1 = vcmask 982016  }
  0x15   : > { %v3376_v2 = vld [vmem:[%s6931_s4 + $0x2a0] sm:$0xff]  ;;  %517 = vmatpush.msra.mxu2 %v3379_v0  ;;  %543 = vmatpush.msra.mxu3 %v3380_v1  ;;  %v3373_v4 = vld [vmem:[%s6931_s4 + $0x288] sm:$0xff]  ;;  %v3374_v5 = vld [vmem:[%s6931_s4 + $0x290] sm:$0xff]  ;;  %vm1258_vm2 = vcmask 1041408   ;;  %vm1254_vm3 = vcmask 146432   ;;  %vm1538_vm4 = vcmask 261120   ;;  %p4124_p12 = pnand %p4123_p11, %p4258_p5  ;;  %p4129_p2 = por %p4128_p1, %p4127_p0 }
  0x16   : > { %s4065_s14 = smul.u32 40, %s326_s21  ;;  %v3370_v6 = vld [vmem:[%s6931_s4 + $0x270] sm:$0xff]  ;;  %v3371_v7 = vld [vmem:[%s6931_s4 + $0x278] sm:$0xff]  ;;  %v3368_v11 = vld [vmem:[%s6931_s4 + $0x260] sm:$0xff]  ;;  %vm2589_vm5 = vcmask 1046528   ;;  %vm2585_vm6 = vcmask 56320  }
  0x17   : > { %518 = vmatpush.msra.mxu2 %v3376_v2  ;;  %544 = vmatpush.msra.mxu3 %v3377_v3  ;;  %v3367_v10 = vld [vmem:[%s6931_s4 + $0x258] sm:$0xff]  ;;  %v3364_v13 = vld [vmem:[%s6931_s4 + $0x240] sm:$0xff]  ;;  %v3365_v14 = vld [vmem:[%s6931_s4 + $0x248] sm:$0xff]  ;;  %vm2738_vm7 = vcmask 785408   ;;  %vm3190_vm8 = vcmask 523264   ;;  %p4125_p13 = pneg %p4124_p12 }
  0x18   : > { %s329_s26 = scalar_lea.vmem %s6927_s0, %s4065_s14  ;;  %v3361_v16 = vld [vmem:[%s6931_s4 + $0x228] sm:$0xff]  ;;  %v3362_v17 = vld [vmem:[%s6931_s4 + $0x230] sm:$0xff]  ;;  %v3331_v19 = vld [vmem:[%s6928_s1 + $0x18] sm:$0xff] }
  0x19   : > { %v4297_v8 = vld [vmem:[%s329_s26 + $0x20] sm:$0xff]  ;;  %v4299_v9 = vld [vmem:[%s329_s26 + $0x18] sm:$0xff]  ;;  %519 = vmatpush.msra.mxu2 %v3373_v4  ;;  %545 = vmatpush.msra.mxu3 %v3374_v5  ;;  %v4309_v12 = vld [vmem:[%s329_s26 + $0x10] sm:$0xff]  ;;  %p4130_p3 = pnand %p4129_p2, %p4125_p13 }
  0x1a   : > { %445 = vmatpush.msra.mxu1 %v4297_v8  ;;  %361 = vmatpush.msra.mxu0 %v4297_v8  ;;  %v4319_v15 = vld [vmem:[%s329_s26 + $0x8] sm:$0xff]  ;;  %v4329_v18 = vld [vmem:[%s329_s26] sm:$0xff]  ;;  %v418_v22 = vld [vmem:[%s6931_s4 + $0x150] sm:$0xff]  ;;  %s324_s26 = scalar_lea.vmem [#allocation2], %s323_s18 }
  0x1b   : > { %520 = vmatpush.msra.mxu2 %v3370_v6  ;;  %546 = vmatpush.msra.mxu3 %v3371_v7  ;;  %v337_v20 = vld [vmem:[%s6928_s1] sm:$0xff]  ;;  %v3381_v21 = vld [vmem:[%s6931_s4 + $0x2c8] sm:$0xff]  ;;  %v3358_v23 = vld [vmem:[%s6931_s4 + $0x210] sm:$0xff]  ;;  %s3266_s23 = sshll.u32 %s324_s26, 4  ;;  %s3267_s23 = int_to_ptr.vmem [resolvable:$true] %s3266_s23 }
  0x1c   : > { %446 = vmatpush.msra.mxu1 %v4299_v9  ;;  %362 = vmatpush.msra.mxu0 %v4299_v9  ;;  %v3359_v24 = vld [vmem:[%s6931_s4 + $0x218] sm:$0xff]  ;;  %v3378_v25 = vld [vmem:[%s6931_s4 + $0x2b0] sm:$0xff]  ;;  %v3356_v28 = vld [vmem:[%s6931_s4 + $0x200] sm:$0xff] }
  0x1d   : > { %521 = vmatpush.msra.mxu2 %v3367_v10  ;;  %547 = vmatpush.msra.mxu3 %v3368_v11  ;;  %v415_v26 = vld [vmem:[%s6931_s4 + $0x138] sm:$0xff]  ;;  %v412_v30 = vld [vmem:[%s6931_s4 + $0x120] sm:$0xff]  ;;  %v3353_v32 = vld [vmem:[%s6931_s4 + $0x1e8] sm:$0xff] }
  0x1e   : > { %447 = vmatpush.msra.mxu1 %v4309_v12  ;;  %363 = vmatpush.msra.mxu0 %v4309_v12  ;;  %v3355_v27 = vld [vmem:[%s6931_s4 + $0x1f8] sm:$0xff]  ;;  %v3352_v31 = vld [vmem:[%s6931_s4 + $0x1e0] sm:$0xff]  ;;  %v409_v34 = vld [vmem:[%s6931_s4 + $0x108] sm:$0xff] }
  0x1f   : > { %522 = vmatpush.msra.mxu2 %v3364_v13  ;;  %548 = vmatpush.msra.mxu3 %v3365_v14  ;;  %v3375_v29 = vld [vmem:[%s6931_s4 + $0x298] sm:$0xff]  ;;  %v3372_v33 = vld [vmem:[%s6931_s4 + $0x280] sm:$0xff]  ;;  %v338_v36 = vld [vmem:[%s6928_s1 + $0x8] sm:$0xff] }
  0x20   : > { %448 = vmatpush.msra.mxu1 %v4319_v15  ;;  %364 = vmatpush.msra.mxu0 %v4319_v15  ;;  %v3332_v35 = vld [vmem:[%s6928_s1 + $0x20] sm:$0xff]  ;;  %v3369_v37 = vld [vmem:[%s6931_s4 + $0x268] sm:$0xff]  ;;  %v406_v38 = vld [vmem:[%s6931_s4 + $0xf0] sm:$0xff] }
  0x21   : > { %523 = vmatpush.msra.mxu2 %v3361_v16  ;;  %549 = vmatpush.msra.mxu3 %v3362_v17  ;;  %v3349_v39 = vld [vmem:[%s6931_s4 + $0x1c8] sm:$0xff]  ;;  %v3350_v40 = vld [vmem:[%s6931_s4 + $0x1d0] sm:$0xff]  ;;  %v403_v42 = vld [vmem:[%s6931_s4 + $0xd8] sm:$0xff] }
  0x22   : > { %449 = vmatpush.msra.mxu1 %v4329_v18  ;;  %365 = vmatpush.msra.mxu0 %v4329_v18  ;;  %v3366_v41 = vld [vmem:[%s6931_s4 + $0x250] sm:$0xff]  ;;  %v3347_v44 = vld [vmem:[%s6931_s4 + $0x1b8] sm:$0xff]  ;;  %v400_v46 = vld [vmem:[%s6931_s4 + $0xc0] sm:$0xff] }
  0x23   : > { %3334 = vmatmul.msk.f32.vlgmr.msra.gmra.mxu1 %vm340_vm0, %v3331_v19  ;;  %3328 = vmatmul.msk.f32.vlgmr.msra.gmra.mxu0 %vm340_vm0, %v337_v20  ;;  %v3346_v43 = vld [vmem:[%s6931_s4 + $0x1b0] sm:$0xff]  ;;  %v3363_v45 = vld [vmem:[%s6931_s4 + $0x238] sm:$0xff]  ;;  %v3344_v48 = vld [vmem:[%s6931_s4 + $0x1a0] sm:$0xff] }
  0x24   : > { %569 = vmatpush.msrb.mxu0 %v3381_v21  ;;  %604 = vmatpush.msrb.mxu1 %v418_v22  ;;  %v3343_v47 = vld [vmem:[%s6931_s4 + $0x198] sm:$0xff]  ;;  %v3360_v49 = vld [vmem:[%s6931_s4 + $0x220] sm:$0xff]  ;;  %v397_v50 = vld [vmem:[%s6931_s4 + $0xa8] sm:$0xff] }
  0x25   : > { %524 = vmatpush.msra.mxu2 %v3358_v23  ;;  %550 = vmatpush.msra.mxu3 %v3359_v24  ;;  %v3333_v51 = vld [vmem:[%s6928_s1 + $0x28] sm:$0x3]  ;;  %v339_v52 = vld [vmem:[%s6928_s1 + $0x10] sm:$0x3]  ;;  %v3340_v54 = vld [vmem:[%s6931_s4 + $0x180] sm:$0xff] }
  0x26   : > { %570 = vmatpush.msrb.mxu0 %v3378_v25  ;;  %605 = vmatpush.msrb.mxu1 %v415_v26  ;;  %v3357_v53 = vld [vmem:[%s6931_s4 + $0x208] sm:$0xff]  ;;  %v394_v56 = vld [vmem:[%s6931_s4 + $0x90] sm:$0xff]  ;;  %v391_v60 = vld [vmem:[%s6931_s4 + $0x78] sm:$0xff] }
  0x27   : > { %525 = vmatpush.msra.mxu2 %v3355_v27  ;;  %551 = vmatpush.msra.mxu3 %v3356_v28  ;;  %v3341_v55 = vld [vmem:[%s6931_s4 + $0x188] sm:$0xff]  ;;  %v3354_v57 = vld [vmem:[%s6931_s4 + $0x1f0] sm:$0xff]  ;;  %v3351_v61 = vld [vmem:[%s6931_s4 + $0x1d8] sm:$0xff] }
  0x28   : > { %571 = vmatpush.msrb.mxu0 %v3375_v29  ;;  %606 = vmatpush.msrb.mxu1 %v412_v30  ;;  %v3337_v58 = vld [vmem:[%s6931_s4 + $0x168] sm:$0xff]  ;;  %v3338_v59 = vld [vmem:[%s6931_s4 + $0x170] sm:$0xff]  ;;  %v419_v62 = vld [vmem:[%s6931_s4 + $0x158] sm:$0xff] }
  0x29   : > { %526 = vmatpush.msra.mxu2 %v3352_v31  ;;  %552 = vmatpush.msra.mxu3 %v3353_v32  ;;  %v420_v63 = vld [vmem:[%s6931_s4 + $0x160] sm:$0xff]  ;;  %v417_v3 = vld [vmem:[%s6931_s4 + $0x148] sm:$0xff]  ;;  %v3342_v5 = vld [vmem:[%s6931_s4 + $0x190] sm:$0xff] }
  0x2a   : > { %572 = vmatpush.msrb.mxu0 %v3372_v33  ;;  %607 = vmatpush.msrb.mxu1 %v409_v34  ;;  %v388_v0 = vld [vmem:[%s6931_s4 + $0x60] sm:$0xff]  ;;  %v3345_v4 = vld [vmem:[%s6931_s4 + $0x1a8] sm:$0xff]  ;;  %v3339_v6 = vld [vmem:[%s6931_s4 + $0x178] sm:$0xff] }
  0x2b   : > { %3335 = vmatmul.msk.f32.gmra.mxu1 %vm340_vm0, %v3332_v35  ;;  %3329 = vmatmul.msk.f32.gmra.mxu0 %vm340_vm0, %v338_v36  ;;  %v3348_v1 = vld [vmem:[%s6931_s4 + $0x1c0] sm:$0xff]  ;;  %v385_v7 = vld [vmem:[%s6931_s4 + $0x48] sm:$0xff]  ;;  %v414_v11 = vld [vmem:[%s6931_s4 + $0x130] sm:$0xff] }
  0x2c   : > { %573 = vmatpush.msrb.mxu0 %v3369_v37  ;;  %608 = vmatpush.msrb.mxu1 %v406_v38  ;;  %v416_v2 = vld [vmem:[%s6931_s4 + $0x140] sm:$0xff]  ;;  %v413_v10 = vld [vmem:[%s6931_s4 + $0x128] sm:$0xff]  ;;  %v382_v13 = vld [vmem:[%s6931_s4 + $0x30] sm:$0xff] }
  0x2d   : > { %527 = vmatpush.msra.mxu2 %v3349_v39  ;;  %553 = vmatpush.msra.mxu3 %v3350_v40  ;;  %v410_v14 = vld [vmem:[%s6931_s4 + $0x110] sm:$0xff]  ;;  %v411_v16 = vld [vmem:[%s6931_s4 + $0x118] sm:$0xff]  ;;  %v408_v20 = vld [vmem:[%s6931_s4 + $0x100] sm:$0xff] }
  0x2e   : > { %574 = vmatpush.msrb.mxu0 %v3366_v41  ;;  %609 = vmatpush.msrb.mxu1 %v403_v42  ;;  %v379_v17 = vld [vmem:[%s6931_s4 + $0x18] sm:$0xff]  ;;  %v376_v21 = vld [vmem:[%s6931_s4] sm:$0xff]  ;;  %v405_v23 = vld [vmem:[%s6931_s4 + $0xe8] sm:$0xff] }
  0x2f   : > { %528 = vmatpush.msra.mxu2 %v3346_v43  ;;  %554 = vmatpush.msra.mxu3 %v3347_v44  ;;  %v407_v19 = vld [vmem:[%s6931_s4 + $0xf8] sm:$0xff]  ;;  %v404_v22 = vld [vmem:[%s6931_s4 + $0xe0] sm:$0xff]  ;;  %v401_v24 = vld [vmem:[%s6931_s4 + $0xc8] sm:$0xff] }
  0x30   : > { %575 = vmatpush.msrb.mxu0 %v3363_v45  ;;  %610 = vmatpush.msrb.mxu1 %v400_v46  ;;  %v402_v25 = vld [vmem:[%s6931_s4 + $0xd0] sm:$0xff]  ;;  %v399_v27 = vld [vmem:[%s6931_s4 + $0xb8] sm:$0xff]  ;;  %v396_v29 = vld [vmem:[%s6931_s4 + $0xa0] sm:$0xff] }
  0x31   : > { %529 = vmatpush.msra.mxu2 %v3343_v47  ;;  %555 = vmatpush.msra.mxu3 %v3344_v48  ;;  %v398_v26 = vld [vmem:[%s6931_s4 + $0xb0] sm:$0xff]  ;;  %v395_v28 = vld [vmem:[%s6931_s4 + $0x98] sm:$0xff]  ;;  %v392_v30 = vld [vmem:[%s6931_s4 + $0x80] sm:$0xff] }
  0x32   : > { %576 = vmatpush.msrb.mxu0 %v3360_v49  ;;  %611 = vmatpush.msrb.mxu1 %v397_v50  ;;  %v393_v31 = vld [vmem:[%s6931_s4 + $0x88] sm:$0xff]  ;;  %v390_v33 = vld [vmem:[%s6931_s4 + $0x70] sm:$0xff]  ;;  %v387_v35 = vld [vmem:[%s6931_s4 + $0x58] sm:$0xff] }
  0x33   : > { %3336 = vmatmul.msk.f32.gmra.mxu1 %vm340_vm0, %v3333_v51  ;;  %3330 = vmatmul.msk.f32.gmra.mxu0 %vm340_vm0, %v339_v52  ;;  %v389_v32 = vld [vmem:[%s6931_s4 + $0x68] sm:$0xff]  ;;  %v386_v34 = vld [vmem:[%s6931_s4 + $0x50] sm:$0xff]  ;;  %v383_v36 = vld [vmem:[%s6931_s4 + $0x38] sm:$0xff] }
  0x34   : > { %577 = vmatpush.msrb.mxu0 %v3357_v53  ;;  %530 = vmatpush.msra.mxu2 %v3340_v54  ;;  %v384_v37 = vld [vmem:[%s6931_s4 + $0x40] sm:$0xff]  ;;  %v381_v39 = vld [vmem:[%s6931_s4 + $0x28] sm:$0xff]  ;;  %v378_v41 = vld [vmem:[%s6931_s4 + $0x10] sm:$0xff] }
  0x35   : > { %556 = vmatpush.msra.mxu3 %v3341_v55  ;;  %612 = vmatpush.msrb.mxu1 %v394_v56  ;;  %v380_v38 = vld [vmem:[%s6931_s4 + $0x20] sm:$0xff]  ;;  %v377_v40 = vld [vmem:[%s6931_s4 + $0x8] sm:$0xff]  ;;  %v3400_v48 = vld [vmem:[%s6928_s1 + $0x30] sm:$0xff] }
  0x36   : > { %578 = vmatpush.msrb.mxu0 %v3354_v57  ;;  %531 = vmatpush.msra.mxu2 %v3337_v58  ;;  %v3401_v49 = vld [vmem:[%s6928_s1 + $0x38] sm:$0xff]  ;;  %v3448_v50 = vld [vmem:[%s6931_s4 + $0x420] sm:$0xff]  ;;  %v3449_v51 = vld [vmem:[%s6931_s4 + $0x428] sm:$0xff] }
  0x37   : > { %557 = vmatpush.msra.mxu3 %v3338_v59  ;;  %613 = vmatpush.msrb.mxu1 %v391_v60  ;;  %v3445_v52 = vld [vmem:[%s6931_s4 + $0x408] sm:$0xff]  ;;  %v3446_v53 = vld [vmem:[%s6931_s4 + $0x410] sm:$0xff]  ;;  %v3443_v55 = vld [vmem:[%s6931_s4 + $0x3f8] sm:$0xff] }
  0x38   : > { %579 = vmatpush.msrb.mxu0 %v3351_v61  ;;  %630 = vmatpush.msrb.mxu2 %v419_v62  ;;  %v3442_v54 = vld [vmem:[%s6931_s4 + $0x3f0] sm:$0xff]  ;;  %v3447_v57 = vld [vmem:[%s6931_s4 + $0x418] sm:$0xff]  ;;  %v3402_v58 = vld [vmem:[%s6928_s1 + $0x40] sm:$0x3] }
  0x39   : > { %656 = vmatpush.msrb.mxu3 %v420_v63  ;;  %614 = vmatpush.msrb.mxu1 %v388_v0  ;;  %v3450_v56 = vld [vmem:[%s6931_s4 + $0x430] sm:$0xff]  ;;  %v3439_v59 = vld [vmem:[%s6931_s4 + $0x3d8] sm:$0xff]  ;;  %v3440_v60 = vld [vmem:[%s6931_s4 + $0x3e0] sm:$0xff] }
  0x3a   : > { %580 = vmatpush.msrb.mxu0 %v3348_v1  ;;  %631 = vmatpush.msrb.mxu2 %v416_v2  ;;  %v3436_v61 = vld [vmem:[%s6931_s4 + $0x3c0] sm:$0xff]  ;;  %v3437_v62 = vld [vmem:[%s6931_s4 + $0x3c8] sm:$0xff]  ;;  %v3461_v0 = vld [vmem:[%s6928_s1 + $0x50] sm:$0xff] }
  0x3b   : > { %657 = vmatpush.msrb.mxu3 %v417_v3  ;;  %615 = vmatpush.msrb.mxu1 %v385_v7  ;;  %v3460_v63 = vld [vmem:[%s6928_s1 + $0x48] sm:$0xff]  ;;  %v3462_v1 = vld [vmem:[%s6928_s1 + $0x58] sm:$0x3]  ;;  %v3444_v2 = vld [vmem:[%s6931_s4 + $0x400] sm:$0xff] }
  0x3c   : > { %581 = vmatpush.msrb.mxu0 %v3345_v4  ;;  %632 = vmatpush.msrb.mxu2 %v413_v10  ;;  %v3433_v3 = vld [vmem:[%s6931_s4 + $0x3a8] sm:$0xff]  ;;  %v3434_v4 = vld [vmem:[%s6931_s4 + $0x3b0] sm:$0xff]  ;;  %v3431_v7 = vld [vmem:[%s6931_s4 + $0x398] sm:$0xff] }
  0x3d   : > { %658 = vmatpush.msrb.mxu3 %v414_v11  ;;  %616 = vmatpush.msrb.mxu1 %v382_v13  ;;  %v3438_v10 = vld [vmem:[%s6931_s4 + $0x3d0] sm:$0xff]  ;;  %v3427_v11 = vld [vmem:[%s6931_s4 + $0x378] sm:$0xff]  ;;  %v3428_v13 = vld [vmem:[%s6931_s4 + $0x380] sm:$0xff] }
  0x3e   : > { %582 = vmatpush.msrb.mxu0 %v3342_v5  ;;  %633 = vmatpush.msrb.mxu2 %v410_v14  ;;  %v3441_v5 = vld [vmem:[%s6931_s4 + $0x3e8] sm:$0xff]  ;;  %v3435_v14 = vld [vmem:[%s6931_s4 + $0x3b8] sm:$0xff] }
  0x3f   : > { %659 = vmatpush.msrb.mxu3 %v411_v16  ;;  %617 = vmatpush.msrb.mxu1 %v379_v17  ;;  %v3424_v16 = vld [vmem:[%s6931_s4 + $0x360] sm:$0xff]  ;;  %v3425_v17 = vld [vmem:[%s6931_s4 + $0x368] sm:$0xff] }
  0x40   : > { %583 = vmatpush.msrb.mxu0 %v3339_v6  ;;  %634 = vmatpush.msrb.mxu2 %v407_v19  ;;  %v3430_v6 = vld [vmem:[%s6931_s4 + $0x390] sm:$0xff]  ;;  %v3432_v19 = vld [vmem:[%s6931_s4 + $0x3a0] sm:$0xff] }
  0x41   : > { %660 = vmatpush.msrb.mxu3 %v408_v20  ;;  %618 = vmatpush.msrb.mxu1 %v376_v21  ;;  %v3421_v20 = vld [vmem:[%s6931_s4 + $0x348] sm:$0xff]  ;;  %v3422_v21 = vld [vmem:[%s6931_s4 + $0x350] sm:$0xff] }
  0x42   : > { %705 = vmatpush.msra.mxu0 %v4297_v8  ;;  %635 = vmatpush.msrb.mxu2 %v404_v22  ;;  %v3429_v22 = vld [vmem:[%s6931_s4 + $0x388] sm:$0xff] }
  0x43   : > { %661 = vmatpush.msrb.mxu3 %v405_v23  ;;  %776 = vmatpush.msra.mxu1 %v3448_v50  ;;  %v3418_v23 = vld [vmem:[%s6931_s4 + $0x330] sm:$0xff]  ;;  %v3500_v50 = vld [vmem:[%s6931_s4 + $0x548] sm:$0xff] }
  0x44   : > { %706 = vmatpush.msra.mxu0 %v4299_v9  ;;  %636 = vmatpush.msrb.mxu2 %v401_v24  ;;  %v3419_v24 = vld [vmem:[%s6931_s4 + $0x338] sm:$0xff] }
  0x45   : > { %662 = vmatpush.msrb.mxu3 %v402_v25  ;;  %777 = vmatpush.msra.mxu1 %v3445_v52  ;;  %v3426_v25 = vld [vmem:[%s6931_s4 + $0x370] sm:$0xff]  ;;  %v3496_v52 = vld [vmem:[%s6931_s4 + $0x528] sm:$0xff] }
  0x46   : > { %707 = vmatpush.msra.mxu0 %v4309_v12  ;;  %637 = vmatpush.msrb.mxu2 %v398_v26  ;;  %v3415_v26 = vld [vmem:[%s6931_s4 + $0x318] sm:$0xff] }
  0x47   : > { %663 = vmatpush.msrb.mxu3 %v399_v27  ;;  %778 = vmatpush.msra.mxu1 %v3442_v54  ;;  %v3416_v27 = vld [vmem:[%s6931_s4 + $0x320] sm:$0xff]  ;;  %v3498_v54 = vld [vmem:[%s6931_s4 + $0x538] sm:$0xff] }
  0x48   : > { %708 = vmatpush.msra.mxu0 %v4319_v15  ;;  %638 = vmatpush.msrb.mxu2 %v395_v28  ;;  %v3423_v28 = vld [vmem:[%s6931_s4 + $0x358] sm:$0xff] }
  0x49   : > { %664 = vmatpush.msrb.mxu3 %v396_v29  ;;  %779 = vmatpush.msra.mxu1 %v3439_v59  ;;  %v3412_v29 = vld [vmem:[%s6931_s4 + $0x300] sm:$0xff]  ;;  %v3492_v59 = vld [vmem:[%s6931_s4 + $0x508] sm:$0xff] }
  0x4a   : > { %709 = vmatpush.msra.mxu0 %v4329_v18  ;;  %639 = vmatpush.msrb.mxu2 %v392_v30  ;;  %v3413_v30 = vld [vmem:[%s6931_s4 + $0x308] sm:$0xff] }
  0x4b   : > { %665 = vmatpush.msrb.mxu3 %v393_v31  ;;  %780 = vmatpush.msra.mxu1 %v3436_v61  ;;  %v3420_v31 = vld [vmem:[%s6931_s4 + $0x340] sm:$0xff]  ;;  %v3489_v61 = vld [vmem:[%s6931_s4 + $0x4f0] sm:$0xff] }
  0x4c   : > { %640 = vmatpush.msrb.mxu2 %v389_v32  ;;  %v3409_v32 = vld [vmem:[%s6931_s4 + $0x2e8] sm:$0xff] }
  0x4d   : > { %666 = vmatpush.msrb.mxu3 %v390_v33  ;;  %781 = vmatpush.msra.mxu1 %v3433_v3  ;;  %v3410_v33 = vld [vmem:[%s6931_s4 + $0x2f0] sm:$0xff]  ;;  %v3478_v3 = vld [vmem:[%s6931_s4 + $0x498] sm:$0xff] }
  0x4e   : > { %641 = vmatpush.msrb.mxu2 %v386_v34  ;;  %v3417_v34 = vld [vmem:[%s6931_s4 + $0x328] sm:$0xff] }
  0x4f   : > { %667 = vmatpush.msrb.mxu3 %v387_v35  ;;  %782 = vmatpush.msra.mxu1 %v3430_v6  ;;  %v3406_v35 = vld [vmem:[%s6931_s4 + $0x2d0] sm:$0xff]  ;;  %v3475_v6 = vld [vmem:[%s6931_s4 + $0x480] sm:$0xff] }
  0x50   : > { %642 = vmatpush.msrb.mxu2 %v383_v36  ;;  %v3407_v36 = vld [vmem:[%s6931_s4 + $0x2d8] sm:$0xff] }
  0x51   : > { %668 = vmatpush.msrb.mxu3 %v384_v37  ;;  %783 = vmatpush.msra.mxu1 %v3427_v11  ;;  %v3414_v37 = vld [vmem:[%s6931_s4 + $0x310] sm:$0xff]  ;;  %v3472_v11 = vld [vmem:[%s6931_s4 + $0x468] sm:$0xff] }
  0x52   : > { %643 = vmatpush.msrb.mxu2 %v380_v38  ;;  %v3508_v38 = vld [vmem:[%s6931_s4 + $0x588] sm:$0xff] }
  0x53   : > { %669 = vmatpush.msrb.mxu3 %v381_v39  ;;  %784 = vmatpush.msra.mxu1 %v3424_v16  ;;  %v3509_v39 = vld [vmem:[%s6931_s4 + $0x590] sm:$0xff] }
  0x54   : > { %644 = vmatpush.msrb.mxu2 %v377_v40  ;;  %v3510_v40 = vld [vmem:[%s6931_s4 + $0x598] sm:$0xff]  ;;  %v3469_v16 = vld [vmem:[%s6931_s4 + $0x450] sm:$0xff] }
  0x55   : > { %670 = vmatpush.msrb.mxu3 %v378_v41  ;;  %785 = vmatpush.msra.mxu1 %v3421_v20  ;;  %v3411_v41 = vld [vmem:[%s6931_s4 + $0x2f8] sm:$0xff] }
  0x57   : > { %786 = vmatpush.msra.mxu1 %v3418_v23  ;;  %v3468_v23 = vld [vmem:[%s6931_s4 + $0x448] sm:$0xff] }
  0x59   : > { %787 = vmatpush.msra.mxu1 %v3415_v26 }
  0x5b   : > { %788 = vmatpush.msra.mxu1 %v3412_v29  ;;  %v3521_v29 = vld [vmem:[%s6928_s1 + $0x68] sm:$0xff] }
  0x5d   : > { %789 = vmatpush.msra.mxu1 %v3409_v32 }
  0x5f   : > { %790 = vmatpush.msra.mxu1 %v3406_v35 }
  0xa0   : > { %v451_v42 = vpop.f32.mrf.mxu1  ;;  %v367_v43 = vpop.f32.mrf.mxu0 }
  0xa1   : > { %3382 = vmatmul.msk.f32.vlgmr.msra.gmra.mxu2 %vm506_vm1, %v451_v42  ;;  %3385 = vmatmul.msk.f32.vlgmr.msra.gmra.mxu3 %vm506_vm1, %v451_v42 }
  0xa2   : > { %3388 = vmatmul.msk.f32.vlgmr.msrb.gmra.mxu0 %vm506_vm1, %v451_v42  ;;  %3391 = vmatmul.msk.f32.vlgmr.msrb.gmra.mxu1 %vm506_vm1, %v367_v43  ;;  %v3505_v42 = vld [vmem:[%s6931_s4 + $0x570] sm:$0xff] }
  0xa3   : > { %886 = vmatpush.msrb.mxu0 %v4297_v8  ;;  %802 = vmatpush.msra.mxu2 %v3449_v51  ;;  %v3501_v51 = vld [vmem:[%s6931_s4 + $0x550] sm:$0xff] }
  0xa4   : > { %828 = vmatpush.msra.mxu3 %v3450_v56  ;;  %957 = vmatpush.msrb.mxu1 %v3508_v38  ;;  %v3495_v56 = vld [vmem:[%s6931_s4 + $0x520] sm:$0xff] }
  0xa5   : > { %887 = vmatpush.msrb.mxu0 %v4299_v9  ;;  %803 = vmatpush.msra.mxu2 %v3446_v53  ;;  %v3497_v53 = vld [vmem:[%s6931_s4 + $0x530] sm:$0xff]  ;;  %v3570_v38 = vld [vmem:[%s6931_s4 + $0x700] sm:$0xff] }
  0xa6   : > { %829 = vmatpush.msra.mxu3 %v3447_v57  ;;  %958 = vmatpush.msrb.mxu1 %v3505_v42  ;;  %v3490_v57 = vld [vmem:[%s6931_s4 + $0x4f8] sm:$0xff]  ;;  %v3562_v42 = vld [vmem:[%s6931_s4 + $0x6c0] sm:$0xff] }
  0xa7   : > { %888 = vmatpush.msrb.mxu0 %v4309_v12  ;;  %804 = vmatpush.msra.mxu2 %v3443_v55  ;;  %v3494_v55 = vld [vmem:[%s6931_s4 + $0x518] sm:$0xff] }
  0xa8   : > { %v454_v44 = vpop.f32.mrf.mxu1  ;;  %v370_v45 = vpop.f32.mrf.mxu0  ;;  %830 = vmatpush.msra.mxu3 %v3444_v2 }
  0xa9   : > { %3383 = vmatmul.msk.f32.gmra.mxu2 %vm506_vm1, %v454_v44  ;;  %3386 = vmatmul.msk.f32.gmra.mxu3 %vm506_vm1, %v454_v44 }
  0xaa   : > { %3389 = vmatmul.msk.f32.gmra.mxu0 %vm506_vm1, %v454_v44  ;;  %3392 = vmatmul.msk.f32.gmra.mxu1 %vm506_vm1, %v370_v45  ;;  %v3507_v44 = vld [vmem:[%s6931_s4 + $0x580] sm:$0xff] }
  0xab   : > { %889 = vmatpush.msrb.mxu0 %v4319_v15  ;;  %805 = vmatpush.msra.mxu2 %v3440_v60  ;;  %v3488_v60 = vld [vmem:[%s6931_s4 + $0x4e8] sm:$0xff] }
  0xac   : > { %831 = vmatpush.msra.mxu3 %v3441_v5  ;;  %v3480_v5 = vld [vmem:[%s6931_s4 + $0x4a8] sm:$0xff] }
  0xad   : > { %890 = vmatpush.msrb.mxu0 %v4329_v18  ;;  %806 = vmatpush.msra.mxu2 %v3437_v62  ;;  %v3485_v62 = vld [vmem:[%s6931_s4 + $0x4d0] sm:$0xff] }
  0xae   : > { %832 = vmatpush.msra.mxu3 %v3438_v10  ;;  %v3477_v10 = vld [vmem:[%s6931_s4 + $0x490] sm:$0xff] }
  0xaf   : > { %807 = vmatpush.msra.mxu2 %v3434_v4  ;;  %v3479_v4 = vld [vmem:[%s6931_s4 + $0x4a0] sm:$0xff] }
  0xb0   : > { %v457_v46 = vpop.f32.mrf.mxu1  ;;  %v373_v47 = vpop.f32.mrf.mxu0  ;;  %833 = vmatpush.msra.mxu3 %v3435_v14  ;;  %v3474_v14 = vld [vmem:[%s6931_s4 + $0x478] sm:$0xff] }
  0xb1   : > { %3384 = vmatmul.msk.f32.gmra.mxu2 %vm506_vm1, %v457_v46  ;;  %3387 = vmatmul.msk.f32.gmra.mxu3 %vm506_vm1, %v457_v46 }
  0xb2   : > { %3390 = vmatmul.msk.f32.gmra.mxu0 %vm506_vm1, %v457_v46  ;;  %3393 = vmatmul.msk.f32.gmra.mxu1 %vm506_vm1, %v373_v47  ;;  %v3502_v46 = vld [vmem:[%s6931_s4 + $0x558] sm:$0xff] }
  0xb3   : > { %808 = vmatpush.msra.mxu2 %v3431_v7  ;;  %834 = vmatpush.msra.mxu3 %v3432_v19  ;;  %v3476_v7 = vld [vmem:[%s6931_s4 + $0x488] sm:$0xff]  ;;  %v3471_v19 = vld [vmem:[%s6931_s4 + $0x460] sm:$0xff] }
  0xb4   : > { %959 = vmatpush.msrb.mxu1 %v3502_v46  ;;  %v3560_v46 = vld [vmem:[%s6931_s4 + $0x6b0] sm:$0xff] }
  0xb5   : > { %809 = vmatpush.msra.mxu2 %v3428_v13  ;;  %835 = vmatpush.msra.mxu3 %v3429_v22  ;;  %v3473_v13 = vld [vmem:[%s6931_s4 + $0x470] sm:$0xff]  ;;  %v3467_v22 = vld [vmem:[%s6931_s4 + $0x440] sm:$0xff] }
  0xb7   : > { %810 = vmatpush.msra.mxu2 %v3425_v17  ;;  %836 = vmatpush.msra.mxu3 %v3426_v25  ;;  %v3470_v17 = vld [vmem:[%s6931_s4 + $0x458] sm:$0xff] }
  0xb9   : > { %3394 = vmatmul.msk.f32.vlgmr.msrb.gmra.mxu2 %vm506_vm1, %v367_v43  ;;  %3397 = vmatmul.msk.f32.vlgmr.msrb.gmra.mxu3 %vm506_vm1, %v367_v43  ;;  %v3506_v43 = vld [vmem:[%s6931_s4 + $0x578] sm:$0xff] }
  0xba   : > { %3403 = vmatmul.msk.f32.vlgmr.msra.gmra.mxu0 %vm340_vm0, %v3400_v48  ;;  %811 = vmatpush.msra.mxu2 %v3422_v21  ;;  %v3504_v48 = vld [vmem:[%s6931_s4 + $0x568] sm:$0xff]  ;;  %v3466_v21 = vld [vmem:[%s6931_s4 + $0x438] sm:$0xff] }
  0xbb   : > { %837 = vmatpush.msra.mxu3 %v3423_v28  ;;  %983 = vmatpush.msra.mxu0 %v3509_v39  ;;  %v3565_v39 = vld [vmem:[%s6931_s4 + $0x6d8] sm:$0xff] }
  0xbc   : > { %812 = vmatpush.msra.mxu2 %v3419_v24 }
  0xbd   : > { %838 = vmatpush.msra.mxu3 %v3420_v31  ;;  %984 = vmatpush.msra.mxu0 %v3506_v43  ;;  %v3522_v31 = vld [vmem:[%s6928_s1 + $0x70] sm:$0x3]  ;;  %v3563_v43 = vld [vmem:[%s6931_s4 + $0x6c8] sm:$0xff] }
  0xbe   : > { %813 = vmatpush.msra.mxu2 %v3416_v27  ;;  %v3520_v27 = vld [vmem:[%s6928_s1 + $0x60] sm:$0xff] }
  0xbf   : > { %839 = vmatpush.msra.mxu3 %v3417_v34 }
  0xc0   : > { %814 = vmatpush.msra.mxu2 %v3413_v30 }
  0xc1   : > { %3395 = vmatmul.msk.f32.gmra.mxu2 %vm506_vm1, %v370_v45  ;;  %3398 = vmatmul.msk.f32.gmra.mxu3 %vm506_vm1, %v370_v45  ;;  %v3408_v45 = vld [vmem:[%s6931_s4 + $0x2e0] sm:$0xff] }
  0xc2   : > { %3404 = vmatmul.msk.f32.gmra.mxu0 %vm340_vm0, %v3401_v49  ;;  %815 = vmatpush.msra.mxu2 %v3410_v33  ;;  %v3499_v49 = vld [vmem:[%s6931_s4 + $0x540] sm:$0xff] }
  0xc3   : > { %840 = vmatpush.msra.mxu3 %v3414_v37  ;;  %960 = vmatpush.msrb.mxu1 %v3499_v49  ;;  %v3569_v37 = vld [vmem:[%s6931_s4 + $0x6f8] sm:$0xff] }
  0xc4   : > { %816 = vmatpush.msra.mxu2 %v3407_v36  ;;  %v3568_v36 = vld [vmem:[%s6931_s4 + $0x6f0] sm:$0xff]  ;;  %v3557_v49 = vld [vmem:[%s6931_s4 + $0x698] sm:$0xff] }
  0xc5   : > { %841 = vmatpush.msra.mxu3 %v3411_v41  ;;  %961 = vmatpush.msrb.mxu1 %v3496_v52  ;;  %v3567_v41 = vld [vmem:[%s6931_s4 + $0x6e8] sm:$0xff]  ;;  %v3554_v52 = vld [vmem:[%s6931_s4 + $0x680] sm:$0xff] }
  0xc6   : > { %1009 = vmatpush.msrb.mxu2 %v3510_v40  ;;  %v3566_v40 = vld [vmem:[%s6931_s4 + $0x6e0] sm:$0xff] }
  0xc7   : > { %842 = vmatpush.msra.mxu3 %v3408_v45  ;;  %v3559_v45 = vld [vmem:[%s6931_s4 + $0x6a8] sm:$0xff] }
  0xc8   : > { %1010 = vmatpush.msrb.mxu2 %v3507_v44  ;;  %v3564_v44 = vld [vmem:[%s6931_s4 + $0x6d0] sm:$0xff] }
  0xc9   : > { %3396 = vmatmul.msk.f32.gmra.mxu2 %vm506_vm1, %v373_v47  ;;  %3399 = vmatmul.msk.f32.gmra.mxu3 %vm506_vm1, %v373_v47  ;;  %v3503_v47 = vld [vmem:[%s6931_s4 + $0x560] sm:$0xff] }
  0xca   : > { %3405 = vmatmul.msk.f32.gmra.mxu0 %vm340_vm0, %v3402_v58  ;;  %1011 = vmatpush.msrb.mxu2 %v3504_v48  ;;  %v3491_v58 = vld [vmem:[%s6931_s4 + $0x500] sm:$0xff]  ;;  %v3556_v48 = vld [vmem:[%s6931_s4 + $0x690] sm:$0xff] }
  0xcb   : > { %985 = vmatpush.msra.mxu0 %v3503_v47  ;;  %1067 = vmatpush.msrb.mxu3 %v4297_v8  ;;  %v3493_v8 = vld [vmem:[%s6931_s4 + $0x510] sm:$0xff]  ;;  %v3561_v47 = vld [vmem:[%s6931_s4 + $0x6b8] sm:$0xff] }
  0xcc   : > { %1012 = vmatpush.msrb.mxu2 %v3501_v51  ;;  %962 = vmatpush.msrb.mxu1 %v3493_v8  ;;  %v3553_v51 = vld [vmem:[%s6931_s4 + $0x678] sm:$0xff]  ;;  %v3550_v8 = vld [vmem:[%s6931_s4 + $0x660] sm:$0xff] }
  0xcd   : > { %986 = vmatpush.msra.mxu0 %v3500_v50  ;;  %1068 = vmatpush.msrb.mxu3 %v4299_v9  ;;  %v3558_v50 = vld [vmem:[%s6931_s4 + $0x6a0] sm:$0xff] }
  0xce   : > { %1013 = vmatpush.msrb.mxu2 %v3498_v54  ;;  %963 = vmatpush.msrb.mxu1 %v3490_v57  ;;  %v3555_v54 = vld [vmem:[%s6931_s4 + $0x688] sm:$0xff] }
  0xcf   : > { %987 = vmatpush.msra.mxu0 %v3497_v53  ;;  %1069 = vmatpush.msrb.mxu3 %v4309_v12  ;;  %v3487_v12 = vld [vmem:[%s6931_s4 + $0x4e0] sm:$0xff]  ;;  %v3547_v57 = vld [vmem:[%s6931_s4 + $0x648] sm:$0xff] }
  0xd0   : > { %1014 = vmatpush.msrb.mxu2 %v3495_v56  ;;  %964 = vmatpush.msrb.mxu1 %v3487_v12  ;;  %v3552_v56 = vld [vmem:[%s6931_s4 + $0x670] sm:$0xff] }
  0xd1   : > { %988 = vmatpush.msra.mxu0 %v3494_v55  ;;  %1070 = vmatpush.msrb.mxu3 %v4319_v15  ;;  %v3484_v15 = vld [vmem:[%s6931_s4 + $0x4c8] sm:$0xff]  ;;  %v3544_v12 = vld [vmem:[%s6931_s4 + $0x630] sm:$0xff] }
  0xd2   : > { %3463 = vmatmul.msk.f32.vlgmr.msrb.gmra.mxu0 %vm340_vm0, %v3460_v63  ;;  %1015 = vmatpush.msrb.mxu2 %v3492_v59  ;;  %v3486_v63 = vld [vmem:[%s6931_s4 + $0x4d8] sm:$0xff]  ;;  %v3551_v55 = vld [vmem:[%s6931_s4 + $0x668] sm:$0xff] }
  0xd3   : > { %989 = vmatpush.msra.mxu0 %v3491_v58  ;;  %1071 = vmatpush.msrb.mxu3 %v4329_v18  ;;  %v3481_v18 = vld [vmem:[%s6931_s4 + $0x4b0] sm:$0xff]  ;;  %v3549_v59 = vld [vmem:[%s6931_s4 + $0x658] sm:$0xff] }
  0xd4   : > { %1016 = vmatpush.msrb.mxu2 %v3489_v61  ;;  %965 = vmatpush.msrb.mxu1 %v3484_v15  ;;  %v3548_v58 = vld [vmem:[%s6931_s4 + $0x650] sm:$0xff]  ;;  %v3546_v61 = vld [vmem:[%s6931_s4 + $0x640] sm:$0xff]  ;;  %v3541_v15 = vld [vmem:[%s6931_s4 + $0x618] sm:$0xff] }
  0xd5   : > { %990 = vmatpush.msra.mxu0 %v3488_v60  ;;  %v3545_v60 = vld [vmem:[%s6931_s4 + $0x638] sm:$0xff] }
  0xd6   : > { %1017 = vmatpush.msrb.mxu2 %v3486_v63  ;;  %966 = vmatpush.msrb.mxu1 %v3481_v18  ;;  %v3543_v63 = vld [vmem:[%s6931_s4 + $0x628] sm:$0xff] }
  0xd7   : > { %991 = vmatpush.msra.mxu0 %v3485_v62  ;;  %v3542_v62 = vld [vmem:[%s6931_s4 + $0x620] sm:$0xff] }
  0xd8   : > { %967 = vmatpush.msrb.mxu1 %v3478_v3  ;;  %v3540_v3 = vld [vmem:[%s6931_s4 + $0x610] sm:$0xff] }
  0xda   : > { %3464 = vmatmul.msk.f32.gmra.mxu0 %vm340_vm0, %v3461_v0  ;;  %v3482_v0 = vld [vmem:[%s6931_s4 + $0x4b8] sm:$0xff]  ;;  %968 = vmatpush.msrb.mxu1 %v3475_v6 }
  0xdb   : > { %992 = vmatpush.msra.mxu0 %v3482_v0  ;;  %v3538_v0 = vld [vmem:[%s6931_s4 + $0x600] sm:$0xff]  ;;  %v3537_v6 = vld [vmem:[%s6931_s4 + $0x5f8] sm:$0xff] }
  0xdc   : > { %969 = vmatpush.msrb.mxu1 %v3472_v11  ;;  %v3534_v11 = vld [vmem:[%s6931_s4 + $0x5e0] sm:$0xff] }
  0xdd   : > { %993 = vmatpush.msra.mxu0 %v3479_v4  ;;  %v3535_v4 = vld [vmem:[%s6931_s4 + $0x5e8] sm:$0xff] }
  0xde   : > { %970 = vmatpush.msrb.mxu1 %v3469_v16  ;;  %v3531_v16 = vld [vmem:[%s6931_s4 + $0x5c8] sm:$0xff] }
  0xdf   : > { %994 = vmatpush.msra.mxu0 %v3476_v7  ;;  %v3532_v7 = vld [vmem:[%s6931_s4 + $0x5d0] sm:$0xff] }
  0xe0   : > { %971 = vmatpush.msrb.mxu1 %v3466_v21  ;;  %v3528_v21 = vld [vmem:[%s6931_s4 + $0x5b0] sm:$0xff] }
  0xe1   : > { %995 = vmatpush.msra.mxu0 %v3473_v13  ;;  %v3529_v13 = vld [vmem:[%s6931_s4 + $0x5b8] sm:$0xff] }
  0xe2   : > { %3465 = vmatmul.msk.f32.gmra.mxu0 %vm340_vm0, %v3462_v1  ;;  %v3483_v1 = vld [vmem:[%s6931_s4 + $0x4c0] sm:$0xff] }
  0xe3   : > { %1018 = vmatpush.msrb.mxu2 %v3483_v1  ;;  %996 = vmatpush.msra.mxu0 %v3470_v17  ;;  %v3539_v1 = vld [vmem:[%s6931_s4 + $0x608] sm:$0xff]  ;;  %v3526_v17 = vld [vmem:[%s6931_s4 + $0x5a0] sm:$0xff] }
  0xe5   : > { %1019 = vmatpush.msrb.mxu2 %v3480_v5  ;;  %997 = vmatpush.msra.mxu0 %v3467_v22  ;;  %v3536_v5 = vld [vmem:[%s6931_s4 + $0x5f0] sm:$0xff] }
  0xe7   : > { %1020 = vmatpush.msrb.mxu2 %v3477_v10  ;;  %1190 = vmatpush.msrb.mxu0 %v3570_v38  ;;  %v3533_v10 = vld [vmem:[%s6931_s4 + $0x5d8] sm:$0xff] }
  0xe9   : > { %1021 = vmatpush.msrb.mxu2 %v3474_v14  ;;  %1191 = vmatpush.msrb.mxu0 %v3567_v41  ;;  %v3530_v14 = vld [vmem:[%s6931_s4 + $0x5c0] sm:$0xff] }
  0xeb   : > { %1022 = vmatpush.msrb.mxu2 %v3471_v19  ;;  %1192 = vmatpush.msrb.mxu0 %v3564_v44  ;;  %v3527_v19 = vld [vmem:[%s6931_s4 + $0x5a8] sm:$0xff] }
  0xed   : > { %1023 = vmatpush.msrb.mxu2 %v3468_v23  ;;  %1193 = vmatpush.msrb.mxu0 %v3561_v47 }
  0xef   : > { %1194 = vmatpush.msrb.mxu0 %v3558_v50 }
  0xf1   : > { %1195 = vmatpush.msrb.mxu0 %v3555_v54 }
  0xf3   : > { %1196 = vmatpush.msrb.mxu0 %v3552_v56 }
  0xf5   : > { %1197 = vmatpush.msrb.mxu0 %v3549_v59 }
  0xf7   : > { %1198 = vmatpush.msrb.mxu0 %v3546_v61  ;;  %v330_v61 = vld [vmem:[%s6935_s8] sm:$0xff] }
  0xf9   : > { %1199 = vmatpush.msrb.mxu0 %v3543_v63 }
  0xfb   : > { %1200 = vmatpush.msrb.mxu0 %v3540_v3 }
  0xfd   : > { %1201 = vmatpush.msrb.mxu0 %v3537_v6 }
  0xff   : > { %1202 = vmatpush.msrb.mxu0 %v3534_v11  ;;  %v1226_v11 = vperm.slane %v330_v61, 0 }
 0x101   : > { %1203 = vmatpush.msrb.mxu0 %v3531_v16 }
 0x103   : > { %1204 = vmatpush.msrb.mxu0 %v3528_v21 }
 0x11f   : > { %v4831_v9 = vpop.f32.mrf.mxu0 }
 0x124   : > { %v4950_v33 = vpop.f32.mrf.mxu3 }
 0x127   : > { %v4871_v2 = vpop.f32.mrf.mxu0 }
 0x12c   : > { %v4952_v34 = vpop.f32.mrf.mxu3 }
 0x12f   : > { %v4909_v20 = vpop.f32.mrf.mxu0 }
 0x134   : > { %v4954_v35 = vpop.f32.mrf.mxu3 }
 0x137   : > { %v711_v24 = vpop.f32.mrf.mxu0 }
 0x138   : > { %3451 = vmatmul.msk.f32.vlgmr.msra.gmra.mxu1 %vm506_vm1, %v711_v24  ;;  %3454 = vmatmul.msk.f32.vlgmr.msra.gmra.mxu2 %vm506_vm1, %v711_v24 }
 0x139   : > { %3457 = vmatmul.msk.f32.vlgmr.msra.gmra.mxu3 %vm506_vm1, %v711_v24  ;;  %1138 = vmatpush.msra.mxu1 %v3568_v36 }
 0x13a   : > { %1164 = vmatpush.msra.mxu3 %v3569_v37 }
 0x13b   : > { %1139 = vmatpush.msra.mxu1 %v3565_v39 }
 0x13c   : > { %1165 = vmatpush.msra.mxu3 %v3566_v40  ;;  %v5007_v53 = vpop.f32.mrf.mxu3 }
 0x13d   : > { %1140 = vmatpush.msra.mxu1 %v3562_v42  ;;  %v673_v3 = vadd.f32 %v5007_v53, %v4831_v9 }
 0x13e   : > { %1166 = vmatpush.msra.mxu3 %v3563_v43 }
 0x13f   : > { %v714_v25 = vpop.f32.mrf.mxu0  ;;  %1141 = vmatpush.msra.mxu1 %v3559_v45 }
 0x140   : > { %3452 = vmatmul.msk.f32.gmra.mxu1 %vm506_vm1, %v714_v25  ;;  %3455 = vmatmul.msk.f32.gmra.mxu2 %vm506_vm1, %v714_v25 }
 0x141   : > { %3458 = vmatmul.msk.f32.gmra.mxu3 %vm506_vm1, %v714_v25  ;;  %1142 = vmatpush.msra.mxu1 %v3556_v48 }
 0x142   : > { %1167 = vmatpush.msra.mxu3 %v3560_v46 }
 0x143   : > { %1143 = vmatpush.msra.mxu1 %v3553_v51 }
 0x144   : > { %1168 = vmatpush.msra.mxu3 %v3557_v49  ;;  %v5048_v18 = vpop.f32.mrf.mxu3 }
 0x145   : > { %1144 = vmatpush.msra.mxu1 %v3550_v8 }
 0x146   : > { %1169 = vmatpush.msra.mxu3 %v3554_v52 }
 0x147   : > { %v717_v26 = vpop.f32.mrf.mxu0  ;;  %1145 = vmatpush.msra.mxu1 %v3547_v57 }
 0x148   : > { %3453 = vmatmul.msk.f32.gmra.mxu1 %vm506_vm1, %v717_v26  ;;  %3456 = vmatmul.msk.f32.gmra.mxu2 %vm506_vm1, %v717_v26 }
 0x149   : > { %3459 = vmatmul.msk.f32.gmra.mxu3 %vm506_vm1, %v717_v26  ;;  %1146 = vmatpush.msra.mxu1 %v3544_v12 }
 0x14a   : > { %1170 = vmatpush.msra.mxu3 %v3551_v55 }
 0x14b   : > { %1147 = vmatpush.msra.mxu1 %v3541_v15 }
 0x14c   : > { %1171 = vmatpush.msra.mxu3 %v3548_v58  ;;  %v678_v22 = vpop.f32.mrf.mxu3 }
 0x14d   : > { %1148 = vmatpush.msra.mxu1 %v3538_v0 }
 0x14e   : > { %1172 = vmatpush.msra.mxu3 %v3545_v60  ;;  %v676_v60 = vadd.f32 %v5048_v18, %v4871_v2  ;;  %v679_v2 = vadd.f32 %v678_v22, %v4909_v20 }
 0x14f   : > { %v892_v28 = vpop.f32.mrf.mxu0  ;;  %1149 = vmatpush.msra.mxu1 %v3535_v4 }
 0x150   : > { %3511 = vmatmul.msk.f32.vlgmr.msrb.gmra.mxu1 %vm506_vm1, %v892_v28  ;;  %3514 = vmatmul.msk.f32.vlgmr.msra.gmra.mxu0 %vm506_vm1, %v892_v28 }
 0x151   : > { %3517 = vmatmul.msk.f32.vlgmr.msrb.gmra.mxu2 %vm506_vm1, %v892_v28  ;;  %3523 = vmatmul.msk.f32.vlgmr.msrb.gmra.mxu3 %vm340_vm0, %v3520_v27 }
 0x152   : > { %1173 = vmatpush.msra.mxu3 %v3542_v62  ;;  %1150 = vmatpush.msra.mxu1 %v3532_v7 }
 0x154   : > { %1174 = vmatpush.msra.mxu3 %v3539_v1  ;;  %1151 = vmatpush.msra.mxu1 %v3529_v13  ;;  %v331_v1 = vld [vmem:[%s6935_s8 + $0x8] sm:$0xf] }
 0x155   : > { %v1228_v16 = vperm.slane %v331_v1, 0  ;;  %v3647_v1 = vld [vmem:[%s6932_s5 + $0x3f0] sm:$0xff] }
 0x156   : > { %1175 = vmatpush.msra.mxu3 %v3536_v5  ;;  %1152 = vmatpush.msra.mxu1 %v3526_v17 }
 0x157   : > { %v895_v30 = vpop.f32.mrf.mxu0 }
 0x158   : > { %3512 = vmatmul.msk.f32.gmra.mxu1 %vm506_vm1, %v895_v30  ;;  %3515 = vmatmul.msk.f32.gmra.mxu0 %vm506_vm1, %v895_v30 }
 0x159   : > { %3518 = vmatmul.msk.f32.gmra.mxu2 %vm506_vm1, %v895_v30  ;;  %3524 = vmatmul.msk.f32.gmra.mxu3 %vm340_vm0, %v3521_v29  ;;  %v533_v29 = vpop.f32.mrf.mxu2  ;;  %v620_v30 = vpop.f32.mrf.mxu1 }
 0x15a   : > { %1176 = vmatpush.msra.mxu3 %v3533_v10  ;;  %v621_v15 = vadd.f32 %v620_v30, %v533_v29  ;;  %v1232_v29 = vperm.slane %v1226_v11, 0  ;;  %v3641_v11 = vld [vmem:[%s6932_s5 + $0x3c0] sm:$0xff] }
 0x15c   : > { %1177 = vmatpush.msra.mxu3 %v3530_v14 }
 0x15e   : > { %1178 = vmatpush.msra.mxu3 %v3527_v19 }
 0x15f   : > { %v898_v32 = vpop.f32.mrf.mxu0 }
 0x160   : > { %3513 = vmatmul.msk.f32.gmra.mxu1 %vm506_vm1, %v898_v32  ;;  %3516 = vmatmul.msk.f32.gmra.mxu0 %vm506_vm1, %v898_v32 }
 0x161   : > { %3519 = vmatmul.msk.f32.gmra.mxu2 %vm506_vm1, %v898_v32  ;;  %3525 = vmatmul.msk.f32.gmra.mxu3 %vm340_vm0, %v3522_v31  ;;  %v536_v31 = vpop.f32.mrf.mxu2  ;;  %v623_v32 = vpop.f32.mrf.mxu1 }
 0x162   : > { %v624_v59 = vadd.f32 %v623_v32, %v536_v31  ;;  %v1234_v32 = vperm.slane %v1228_v16, 0  ;;  %v3661_v16 = vld [vmem:[%s6932_s5 + $0x460] sm:$0xff] }
 0x169   : > { %v539_v36 = vpop.f32.mrf.mxu2  ;;  %v626_v37 = vpop.f32.mrf.mxu1 }
 0x16a   : > { %v627_v62 = vadd.f32 %v626_v37, %v539_v36 }
 0x171   : > { %v646_v38 = vpop.f32.mrf.mxu2 }
 0x172   : > { %v647_v63 = vadd.f32 %v646_v38, %v4950_v33  ;;  %v1227_v38 = vperm.slane %v330_v61, 4 }
 0x179   : > { %v649_v40 = vpop.f32.mrf.mxu2 }
 0x17a   : > { %v650_v4 = vadd.f32 %v649_v40, %v4952_v34 }
 0x181   : > { %v652_v42 = vpop.f32.mrf.mxu2 }
 0x182   : > { %v653_v19 = vadd.f32 %v652_v42, %v4954_v35 }
 0x1b5   : > { %v792_v39 = vpop.f32.mrf.mxu1 }
 0x1b6   : > { %v853_v5 = vadd.f32 %v792_v39, %v621_v15 }
 0x1bb   : > { %v818_v44 = vpop.f32.mrf.mxu2 }
 0x1bc   : > { %v844_v23 = vpop.f32.mrf.mxu3  ;;  %v854_v53 = vadd.f32 %v818_v44, %v647_v63  ;;  %v3649_v63 = vld [vmem:[%s6932_s5 + $0x400] sm:$0xff] }
 0x1bd   : > { %v795_v41 = vpop.f32.mrf.mxu1  ;;  %v855_v13 = vadd.f32 %v844_v23, %v673_v3  ;;  %v3623_v3 = vld [vmem:[%s6932_s5 + $0x330] sm:$0xff] }
 0x1be   : > { %v856_v0 = vadd.f32 %v795_v41, %v624_v59  ;;  %1542 = vmatpush.msrb.mxu3 %v3623_v3  ;;  %v3650_v3 = vld [vmem:[%s6932_s5 + $0x408] sm:$0xff] }
 0x1c3   : > { %v821_v46 = vpop.f32.mrf.mxu2 }
 0x1c4   : > { %v847_v24 = vpop.f32.mrf.mxu3 }
 0x1c5   : > { %v798_v43 = vpop.f32.mrf.mxu1  ;;  %v858_v18 = vadd.f32 %v847_v24, %v676_v60  ;;  %v857_v24 = vadd.f32 %v821_v46, %v650_v4  ;;  %v1253_v60 = vld [vmem:[%s6929_s2] sm:$0x7f] }
 0x1c6   : > { %v859_v6 = vadd.f32 %v798_v43, %v627_v62 }
 0x1cb   : > { %v824_v49 = vpop.f32.mrf.mxu2 }
 0x1cc   : > { %v850_v25 = vpop.f32.mrf.mxu3  ;;  %v860_v23 = vadd.f32 %v824_v49, %v653_v19  ;;  %v3653_v49 = vld [vmem:[%s6932_s5 + $0x420] sm:$0xff] }
 0x1cd   : > { %v973_v45 = vpop.f32.mrf.mxu1  ;;  %v999_v47 = vpop.f32.mrf.mxu0  ;;  %v861_v33 = vadd.f32 %v850_v25, %v679_v2  ;;  %v3621_v2 = vld [vmem:[%s6932_s5 + $0x320] sm:$0xff] }
 0x1ce   : > { %v1034_v21 = vadd.f32 %v973_v45, %v853_v5  ;;  %v1035_v40 = vadd.f32 %v999_v47, %v854_v53  ;;  %1543 = vmatpush.msrb.mxu3 %v3621_v2  ;;  %v3619_v5 = vld [vmem:[%s6932_s5 + $0x310] sm:$0xff]  ;;  %v3637_v19 = vld [vmem:[%s6932_s5 + $0x3a0] sm:$0xff]  ;;  %v3624_v53 = vld [vmem:[%s6932_s5 + $0x338] sm:$0xff] }
 0x1cf   : > { %v3601_v2 = vld [vmem:[%s6932_s5 + $0x280] sm:$0xff] }
 0x1d0   : > { %1544 = vmatpush.msrb.mxu3 %v3619_v5  ;;  %v1330_v5 = vld [vmem:[%s6932_s5 + $0x10] sm:$0xff] }
 0x1d4   : > { %v1073_v26 = vpop.f32.mrf.mxu3  ;;  %v1025_v52 = vpop.f32.mrf.mxu2 }
 0x1d5   : > { %3571 = vmatmul.msk.f32.vlgmr.msra.gmra.mxu1 %vm506_vm1, %v1073_v26  ;;  %3574 = vmatmul.msk.f32.vlgmr.msra.gmra.mxu3 %vm506_vm1, %v1073_v26  ;;  %v976_v48 = vpop.f32.mrf.mxu1  ;;  %v1002_v50 = vpop.f32.mrf.mxu0  ;;  %v1036_v34 = vadd.f32 %v1025_v52, %v855_v13  ;;  %v3663_v13 = vld [vmem:[%s6932_s5 + $0x470] sm:$0xff] }
 0x1d6   : > { %3577 = vmatmul.msk.f32.vlgmr.msrb.gmra.mxu0 %vm506_vm1, %v1073_v26  ;;  %v1037_v7 = vadd.f32 %v976_v48, %v856_v0  ;;  %v1038_v37 = vadd.f32 %v1002_v50, %v857_v24  ;;  %v3655_v48 = vld [vmem:[%s6932_s5 + $0x430] sm:$0xff] }
 0x1d7   : > { %1562 = vmatpush.msra.mxu0 %v3655_v48  ;;  %v3631_v24 = vld [vmem:[%s6932_s5 + $0x370] sm:$0xff]  ;;  %v1340_v48 = vld [vmem:[%s6932_s5 + $0x60] sm:$0xff] }
 0x1d9   : > { %1563 = vmatpush.msra.mxu0 %v3653_v49  ;;  %v1338_v49 = vld [vmem:[%s6932_s5 + $0x50] sm:$0xff] }
 0x1dc   : > { %v1076_v27 = vpop.f32.mrf.mxu3  ;;  %v1028_v56 = vpop.f32.mrf.mxu2 }
 0x1dd   : > { %3572 = vmatmul.msk.f32.gmra.mxu1 %vm506_vm1, %v1076_v27  ;;  %3575 = vmatmul.msk.f32.gmra.mxu3 %vm506_vm1, %v1076_v27  ;;  %v979_v51 = vpop.f32.mrf.mxu1  ;;  %v1005_v54 = vpop.f32.mrf.mxu0  ;;  %v1039_v14 = vadd.f32 %v1028_v56, %v858_v18  ;;  %v3651_v56 = vld [vmem:[%s6932_s5 + $0x410] sm:$0xff]  ;;  %v3645_v18 = vld [vmem:[%s6932_s5 + $0x3e0] sm:$0xff] }
 0x1de   : > { %3578 = vmatmul.msk.f32.gmra.mxu0 %vm506_vm1, %v1076_v27  ;;  %v1040_v26 = vadd.f32 %v979_v51, %v859_v6  ;;  %v1041_v43 = vadd.f32 %v1005_v54, %v860_v23  ;;  %v3586_v6 = vld [vmem:[%s6929_s2 + $0x8] sm:$0x7f]  ;;  %v3616_v23 = vld [vmem:[%s6932_s5 + $0x2f8] sm:$0xff] }
 0x1df   : > { %1564 = vmatpush.msra.mxu0 %v3651_v56  ;;  %v3605_v56 = vld [vmem:[%s6932_s5 + $0x2a0] sm:$0xff] }
 0x1e1   : > { %1565 = vmatpush.msra.mxu0 %v3649_v63  ;;  %v3604_v63 = vld [vmem:[%s6932_s5 + $0x298] sm:$0xff] }
 0x1e3   : > { %1566 = vmatpush.msra.mxu0 %v3647_v1  ;;  %v1332_v1 = vld [vmem:[%s6932_s5 + $0x20] sm:$0xff] }
 0x1e4   : > { %v1079_v28 = vpop.f32.mrf.mxu3  ;;  %v1031_v10 = vpop.f32.mrf.mxu2 }
 0x1e5   : > { %3573 = vmatmul.msk.f32.gmra.mxu1 %vm506_vm1, %v1079_v28  ;;  %3576 = vmatmul.msk.f32.gmra.mxu3 %vm506_vm1, %v1079_v28  ;;  %v1042_v27 = vadd.f32 %v1031_v10, %v861_v33  ;;  %v3617_v10 = vld [vmem:[%s6932_s5 + $0x300] sm:$0xff]  ;;  %v3615_v33 = vld [vmem:[%s6932_s5 + $0x2f0] sm:$0xff] }
 0x1e6   : > { %3579 = vmatmul.msk.f32.gmra.mxu0 %vm506_vm1, %v1079_v28  ;;  %1545 = vmatpush.msrb.mxu3 %v3617_v10  ;;  %v3600_v10 = vld [vmem:[%s6932_s5 + $0x278] sm:$0xff] }
 0x1e7   : > { %1567 = vmatpush.msra.mxu0 %v3645_v18  ;;  %v3602_v18 = vld [vmem:[%s6932_s5 + $0x288] sm:$0xff] }
 0x1e8   : > { %1546 = vmatpush.msrb.mxu3 %v3615_v33  ;;  %v3597_v33 = vld [vmem:[%s6932_s5 + $0x260] sm:$0xff] }
 0x252   : > { %v1154_v8 = vpop.f32.mrf.mxu1 }
 0x253   : > { %v1206_v55 = vpop.f32.mrf.mxu0  ;;  %v1215_v28 = vadd.f32 %v1154_v8, %v1034_v21  ;;  %v1233_v8 = vperm.slane %v1227_v38, 0  ;;  %v3659_v21 = vld [vmem:[%s6932_s5 + $0x450] sm:$0xff]  ;;  %v1356_v38 = vld [vmem:[%s6932_s5 + $0xe0] sm:$0xff] }
 0x254   : > { %v1217_v25 = vadd.f32 %v1206_v55, %v1036_v34  ;;  %v3609_v34 = vld [vmem:[%s6932_s5 + $0x2c0] sm:$0xff] }
 0x255   : > { %v1235_v44 = vadd.f32 %v1232_v29, %v1215_v28  ;;  %v3620_v28 = vld [vmem:[%s6932_s5 + $0x318] sm:$0xff] }
 0x256   : > { %v1237_v50 = vadd.f32 %v1234_v32, %v1217_v25  ;;  %v3625_v25 = vld [vmem:[%s6932_s5 + $0x340] sm:$0xff] }
 0x257   : > { %v5139_v59 = vmax.f32 %v1235_v44, 0.0  ;;  %v1344_v44 = vld [vmem:[%s6932_s5 + $0x80] sm:$0xff] }
 0x258   : > { %v1180_v57 = vpop.f32.mrf.mxu3  ;;  %v5145_v61 = vmax.f32 %v1237_v50, 0.0  ;;  %v3656_v50 = vld [vmem:[%s6932_s5 + $0x438] sm:$0xff] }
 0x259   : > { %v1216_v52 = vadd.f32 %v1180_v57, %v1035_v40  ;;  %v1352_v40 = vld [vmem:[%s6932_s5 + $0xc0] sm:$0xff] }
 0x25a   : > { %v1157_v58 = vpop.f32.mrf.mxu1 }
 0x25b   : > { %v1209_v12 = vpop.f32.mrf.mxu0  ;;  %v1218_v9 = vadd.f32 %v1157_v58, %v1037_v7  ;;  %v1236_v15 = vadd.f32 %v1233_v8, %v1216_v52  ;;  %v3643_v7 = vld [vmem:[%s6932_s5 + $0x3d0] sm:$0xff]  ;;  %v3608_v52 = vld [vmem:[%s6932_s5 + $0x2b8] sm:$0xff] }
 0x25c   : > { %v1220_v20 = vadd.f32 %v1209_v12, %v1039_v14  ;;  %1568 = vmatpush.msra.mxu0 %v3643_v7  ;;  %v3639_v14 = vld [vmem:[%s6932_s5 + $0x3b0] sm:$0xff] }
 0x25d   : > { %v1238_v35 = vadd.f32 %v1232_v29, %v1218_v9  ;;  %v5169_v4 = vmax.f32 %v1236_v15, 0.0  ;;  %v3635_v9 = vld [vmem:[%s6932_s5 + $0x390] sm:$0xff] }
 0x25e   : > { %v1240_v41 = vadd.f32 %v1234_v32, %v1220_v20  ;;  %1569 = vmatpush.msra.mxu0 %v3641_v11  ;;  %v3633_v20 = vld [vmem:[%s6932_s5 + $0x380] sm:$0xff]  ;;  %v3603_v15 = vld [vmem:[%s6932_s5 + $0x290] sm:$0xff] }
 0x25f   : > { %v5128_v54 = vmax.f32 %v1238_v35, 0.0  ;;  %v3610_v35 = vld [vmem:[%s6932_s5 + $0x2c8] sm:$0xff]  ;;  %v3599_v7 = vld [vmem:[%s6932_s5 + $0x270] sm:$0xff]  ;;  %v1328_v11 = vld [vmem:[%s6932_s5] sm:$0xff] }
 0x260   : > { %v1183_v17 = vpop.f32.mrf.mxu3  ;;  %v5135_v58 = vmax.f32 %v1240_v41, 0.0  ;;  %1570 = vmatpush.msra.mxu0 %v3639_v14  ;;  %v1350_v41 = vld [vmem:[%s6932_s5 + $0xb0] sm:$0xff]  ;;  %v3598_v14 = vld [vmem:[%s6932_s5 + $0x268] sm:$0xff] }
 0x261   : > { %v1219_v45 = vadd.f32 %v1183_v17, %v1038_v37  ;;  %v3613_v17 = vld [vmem:[%s6932_s5 + $0x2e0] sm:$0xff]  ;;  %v3612_v37 = vld [vmem:[%s6932_s5 + $0x2d8] sm:$0xff] }
 0x262   : > { %v1160_v22 = vpop.f32.mrf.mxu1  ;;  %1547 = vmatpush.msrb.mxu3 %v3613_v17  ;;  %1571 = vmatpush.msra.mxu0 %v3637_v19  ;;  %v3595_v17 = vld [vmem:[%s6932_s5 + $0x250] sm:$0xff]  ;;  %v3596_v19 = vld [vmem:[%s6932_s5 + $0x258] sm:$0xff] }
 0x263   : > { %v1221_v30 = vadd.f32 %v1160_v22, %v1040_v26  ;;  %v1212_v31 = vpop.f32.mrf.mxu0  ;;  %v1239_v57 = vadd.f32 %v1233_v8, %v1219_v45  ;;  %v3611_v26 = vld [vmem:[%s6932_s5 + $0x2d0] sm:$0xff]  ;;  %v3622_v22 = vld [vmem:[%s6932_s5 + $0x328] sm:$0xff] }
 0x264   : > { %v1223_v36 = vadd.f32 %v1212_v31, %v1042_v27  ;;  %v3657_v27 = vld [vmem:[%s6932_s5 + $0x440] sm:$0xff]  ;;  %1548 = vmatpush.msrb.mxu3 %v3611_v26  ;;  %1572 = vmatpush.msra.mxu0 %v3635_v9  ;;  %v3627_v31 = vld [vmem:[%s6932_s5 + $0x350] sm:$0xff]  ;;  %v3594_v9 = vld [vmem:[%s6932_s5 + $0x248] sm:$0xff] }
 0x265   : > { %v1241_v39 = vadd.f32 %v1232_v29, %v1221_v30  ;;  %v5156_v0 = vmax.f32 %v1239_v57, 0.0  ;;  %v3629_v29 = vld [vmem:[%s6932_s5 + $0x360] sm:$0xff]  ;;  %v3618_v30 = vld [vmem:[%s6932_s5 + $0x308] sm:$0xff]  ;;  %v1342_v45 = vld [vmem:[%s6932_s5 + $0x70] sm:$0xff] }
 0x266   : > { %v1243_v42 = vadd.f32 %v1234_v32, %v1223_v36  ;;  %1549 = vmatpush.msrb.mxu3 %v3609_v34  ;;  %1573 = vmatpush.msra.mxu0 %v3633_v20  ;;  %v3614_v32 = vld [vmem:[%s6932_s5 + $0x2e8] sm:$0xff]  ;;  %v1358_v36 = vld [vmem:[%s6932_s5 + $0xf0] sm:$0xff]  ;;  %v3593_v26 = vld [vmem:[%s6932_s5 + $0x240] sm:$0xff] }
 0x267   : > { %v5118_v46 = vmax.f32 %v1241_v39, 0.0  ;;  %v1354_v39 = vld [vmem:[%s6932_s5 + $0xd0] sm:$0xff]  ;;  %v3606_v57 = vld [vmem:[%s6932_s5 + $0x2a8] sm:$0xff]  ;;  %v3664_v34 = vld [vmem:[%s6932_s5 + $0x478] sm:$0xff] }
 0x268   : > { %v5126_v51 = vmax.f32 %v1243_v42, 0.0  ;;  %v1186_v47 = vpop.f32.mrf.mxu3  ;;  %1574 = vmatpush.msra.mxu0 %v3631_v24  ;;  %v1348_v42 = vld [vmem:[%s6932_s5 + $0xa0] sm:$0xff]  ;;  %v3638_v20 = vld [vmem:[%s6932_s5 + $0x3a8] sm:$0xff] }
 0x269   : > { %v1222_v55 = vadd.f32 %v1186_v47, %v1041_v43  ;;  %3580 = vmatpush.msk.msra.mxu2 %vm1258_vm2, %v5118_v46  ;;  %v1346_v43 = vld [vmem:[%s6932_s5 + $0x90] sm:$0xff]  ;;  %v1396_v24 = vld [vmem:[%s6932_s5 + $0x220] sm:$0xff] }
 0x26a   : > { %3584 = vmatpush.msk.msrb.mxu1 %vm1258_vm2, %v5126_v51  ;;  %1575 = vmatpush.msra.mxu0 %v3629_v29  ;;  %v3607_v47 = vld [vmem:[%s6932_s5 + $0x2b0] sm:$0xff]  ;;  %v3660_v29 = vld [vmem:[%s6932_s5 + $0x458] sm:$0xff] }
 0x26b   : > { %v1242_v12 = vadd.f32 %v1233_v8, %v1222_v55  ;;  %1282 = vmatpush.msra.mxu2 %v5128_v54  ;;  %v1336_v8 = vld [vmem:[%s6932_s5 + $0x40] sm:$0xff]  ;;  %1550 = vmatpush.msrb.mxu3 %v3607_v47  ;;  %v3654_v55 = vld [vmem:[%s6932_s5 + $0x428] sm:$0xff] }
 0x26c   : > { %1322 = vmatpush.msrb.mxu1 %v5135_v58  ;;  %1576 = vmatpush.msra.mxu0 %v3627_v31  ;;  %v3634_v31 = vld [vmem:[%s6932_s5 + $0x388] sm:$0xff]  ;;  %v1388_v47 = vld [vmem:[%s6932_s5 + $0x1e0] sm:$0xff] }
 0x26d   : > { %v5148_v62 = vmax.f32 %v1242_v12, 0.0  ;;  %1283 = vmatpush.msra.mxu2 %v5139_v59  ;;  %v1334_v12 = vld [vmem:[%s6932_s5 + $0x30] sm:$0xff]  ;;  %1551 = vmatpush.msrb.mxu3 %v3605_v56  ;;  %v1384_v56 = vld [vmem:[%s6932_s5 + $0x1c0] sm:$0xff] }
 0x26e   : > { %1323 = vmatpush.msrb.mxu1 %v5145_v61  ;;  %3581 = vmatmul.msk.f32.vlgmr.msra.gmra.mxu2 %vm1254_vm3, %v1253_v60 }
 0x26f   : > { %3585 = vmatmul.msk.f32.vlgmr.msrb.gmra.mxu1 %vm1254_vm3, %v1253_v60  ;;  %3582 = vmatpush.msk.msrb.mxu2 %vm1258_vm2, %v5148_v62 }
 0x270   : > { %3589 = vmatpush.msk.msra.mxu1 %vm1258_vm2, %v5148_v62  ;;  %1577 = vmatpush.msra.mxu0 %v3625_v25  ;;  %v1392_v25 = vld [vmem:[%s6932_s5 + $0x200] sm:$0xff] }
 0x271   : > { %1302 = vmatpush.msrb.mxu2 %v5156_v0  ;;  %1552 = vmatpush.msrb.mxu3 %v3603_v15 }
 0x272   : > { %1439 = vmatpush.msra.mxu1 %v5156_v0  ;;  %1665 = vmatpush.msrb.mxu0 %v1358_v36  ;;  %v3630_v36 = vld [vmem:[%s6932_s5 + $0x368] sm:$0xff] }
 0x273   : > { %1303 = vmatpush.msrb.mxu2 %v5169_v4  ;;  %1553 = vmatpush.msrb.mxu3 %v3601_v2  ;;  %v1357_v2 = vld [vmem:[%s6932_s5 + $0xe8] sm:$0xff] }
 0x274   : > { %1440 = vmatpush.msra.mxu1 %v5169_v4  ;;  %1666 = vmatpush.msrb.mxu0 %v1356_v38  ;;  %v3626_v38 = vld [vmem:[%s6932_s5 + $0x348] sm:$0xff] }
 0x275   : > { %3587 = vmatpush.msk.msra.mxu2 %vm1258_vm2, %v5118_v46  ;;  %1554 = vmatpush.msrb.mxu3 %v3599_v7  ;;  %v1379_v7 = vld [vmem:[%s6932_s5 + $0x198] sm:$0xff] }
 0x276   : > { %3583 = vmatmul.msk.f32.vlgmr.msrb.gmra.mxu2 %vm1254_vm3, %v1253_v60  ;;  %1594 = vmatpush.msrb.mxu1 %v3663_v13  ;;  %v3652_v60 = vld [vmem:[%s6932_s5 + $0x418] sm:$0xff]  ;;  %v3646_v13 = vld [vmem:[%s6932_s5 + $0x3e8] sm:$0xff] }
 0x277   : > { %1419 = vmatpush.msra.mxu2 %v5128_v54  ;;  %3590 = vmatmul.msk.f32.vlgmr.msra.gmra.mxu1 %vm1254_vm3, %v3586_v6 }
 0x278   : > { %1595 = vmatpush.msrb.mxu1 %v3661_v16  ;;  %1667 = vmatpush.msrb.mxu0 %v1354_v39  ;;  %v3644_v16 = vld [vmem:[%s6932_s5 + $0x3d8] sm:$0xff] }
 0x279   : > { %1420 = vmatpush.msra.mxu2 %v5139_v59  ;;  %1555 = vmatpush.msrb.mxu3 %v3597_v33  ;;  %v1374_v33 = vld [vmem:[%s6932_s5 + $0x170] sm:$0xff] }
 0x27a   : > { %1596 = vmatpush.msrb.mxu1 %v3659_v21  ;;  %1668 = vmatpush.msrb.mxu0 %v1352_v40  ;;  %v3642_v21 = vld [vmem:[%s6932_s5 + $0x3c8] sm:$0xff]  ;;  %v1399_v40 = vld [vmem:[%s6932_s5 + $0x238] sm:$0xff] }
 0x27b   : > { %3591 = vmatpush.msk.msrb.mxu2 %vm1258_vm2, %v5126_v51  ;;  %1556 = vmatpush.msrb.mxu3 %v3595_v17  ;;  %v1372_v17 = vld [vmem:[%s6932_s5 + $0x160] sm:$0xff] }
 0x27c   : > { %1597 = vmatpush.msrb.mxu1 %v3657_v27  ;;  %1669 = vmatpush.msrb.mxu0 %v1350_v41  ;;  %v1398_v27 = vld [vmem:[%s6932_s5 + $0x230] sm:$0xff] }
 0x27d   : > { %1459 = vmatpush.msrb.mxu2 %v5135_v58  ;;  %1557 = vmatpush.msrb.mxu3 %v3593_v26  ;;  %v1370_v26 = vld [vmem:[%s6932_s5 + $0x150] sm:$0xff] }
 0x27e   : > { %3588 = vmatmul.msk.f32.vlgmr.msra.gmra.mxu2 %vm1254_vm3, %v3586_v6  ;;  %1670 = vmatpush.msrb.mxu0 %v1348_v42  ;;  %v1397_v42 = vld [vmem:[%s6932_s5 + $0x228] sm:$0xff] }
 0x27f   : > { %1460 = vmatpush.msrb.mxu2 %v5145_v61  ;;  %1622 = vmatpush.msra.mxu1 %v3656_v50 }
 0x280   : > { %1671 = vmatpush.msrb.mxu0 %v1346_v43  ;;  %1654 = vmatpush.msra.mxu3 %v3664_v34  ;;  %v1395_v43 = vld [vmem:[%s6932_s5 + $0x218] sm:$0xff]  ;;  %v1368_v34 = vld [vmem:[%s6932_s5 + $0x140] sm:$0xff] }
 0x281   : > { %1602 = vmatpush.msra.mxu2 %v3624_v53  ;;  %1623 = vmatpush.msra.mxu1 %v3654_v55  ;;  %v3640_v53 = vld [vmem:[%s6932_s5 + $0x3b8] sm:$0xff] }
 0x282   : > { %1672 = vmatpush.msrb.mxu0 %v1344_v44  ;;  %v1387_v55 = vld [vmem:[%s6932_s5 + $0x1d8] sm:$0xff] }
 0x283   : > { %1603 = vmatpush.msra.mxu2 %v3622_v22  ;;  %1624 = vmatpush.msra.mxu1 %v3652_v60  ;;  %v3662_v22 = vld [vmem:[%s6932_s5 + $0x468] sm:$0xff]  ;;  %v1359_v60 = vld [vmem:[%s6932_s5 + $0xf8] sm:$0xff] }
 0x284   : > { %1673 = vmatpush.msrb.mxu0 %v1342_v45  ;;  %1655 = vmatpush.msra.mxu3 %v3662_v22  ;;  %v1393_v45 = vld [vmem:[%s6932_s5 + $0x208] sm:$0xff]  ;;  %v1366_v22 = vld [vmem:[%s6932_s5 + $0x130] sm:$0xff] }
 0x285   : > { %1604 = vmatpush.msra.mxu2 %v3620_v28  ;;  %1625 = vmatpush.msra.mxu1 %v3650_v3  ;;  %v3636_v28 = vld [vmem:[%s6932_s5 + $0x398] sm:$0xff]  ;;  %v1380_v3 = vld [vmem:[%s6932_s5 + $0x1a0] sm:$0xff] }
 0x286   : > { %3592 = vmatmul.msk.f32.vlgmr.msrb.gmra.mxu2 %vm1254_vm3, %v3586_v6  ;;  %1674 = vmatpush.msrb.mxu0 %v1340_v48  ;;  %v3648_v6 = vld [vmem:[%s6932_s5 + $0x3f8] sm:$0xff]  ;;  %v1390_v48 = vld [vmem:[%s6932_s5 + $0x1f0] sm:$0xff] }
 0x287   : > { %1605 = vmatpush.msra.mxu2 %v3618_v30  ;;  %1626 = vmatpush.msra.mxu1 %v3648_v6  ;;  %v1394_v30 = vld [vmem:[%s6932_s5 + $0x210] sm:$0xff]  ;;  %v1355_v6 = vld [vmem:[%s6932_s5 + $0xd8] sm:$0xff] }
 0x288   : > { %1675 = vmatpush.msrb.mxu0 %v1338_v49  ;;  %1656 = vmatpush.msra.mxu3 %v3660_v29  ;;  %v1391_v49 = vld [vmem:[%s6932_s5 + $0x1f8] sm:$0xff]  ;;  %v1364_v29 = vld [vmem:[%s6932_s5 + $0x120] sm:$0xff] }
 0x289   : > { %1606 = vmatpush.msra.mxu2 %v3616_v23  ;;  %1627 = vmatpush.msra.mxu1 %v3646_v13  ;;  %v3658_v23 = vld [vmem:[%s6932_s5 + $0x448] sm:$0xff] }
 0x28a   : > { %1676 = vmatpush.msrb.mxu0 %v1336_v8  ;;  %1657 = vmatpush.msra.mxu3 %v3658_v23  ;;  %v1386_v8 = vld [vmem:[%s6932_s5 + $0x1d0] sm:$0xff]  ;;  %v1377_v13 = vld [vmem:[%s6932_s5 + $0x188] sm:$0xff] }
 0x28b   : > { %1607 = vmatpush.msra.mxu2 %v3614_v32  ;;  %1628 = vmatpush.msra.mxu1 %v3644_v16  ;;  %v3632_v32 = vld [vmem:[%s6932_s5 + $0x378] sm:$0xff]  ;;  %v1362_v23 = vld [vmem:[%s6932_s5 + $0x110] sm:$0xff] }
 0x28c   : > { %1677 = vmatpush.msrb.mxu0 %v1334_v12  ;;  %v1382_v12 = vld [vmem:[%s6932_s5 + $0x1b0] sm:$0xff]  ;;  %v1375_v16 = vld [vmem:[%s6932_s5 + $0x178] sm:$0xff] }
 0x28d   : > { %1608 = vmatpush.msra.mxu2 %v3612_v37  ;;  %1629 = vmatpush.msra.mxu1 %v3642_v21  ;;  %v3628_v37 = vld [vmem:[%s6932_s5 + $0x358] sm:$0xff]  ;;  %v1373_v21 = vld [vmem:[%s6932_s5 + $0x168] sm:$0xff] }
 0x28e   : > { %1678 = vmatpush.msrb.mxu0 %v1332_v1  ;;  %v5512_v1 = vld [vmem:[%s6929_s2 + $0x10] sm:$0x7f] }
 0x28f   : > { %1609 = vmatpush.msra.mxu2 %v3610_v35  ;;  %1630 = vmatpush.msra.mxu1 %v3640_v53  ;;  %v1371_v53 = vld [vmem:[%s6932_s5 + $0x158] sm:$0xff] }
 0x290   : > { %1679 = vmatpush.msrb.mxu0 %v1330_v5  ;;  %v1378_v5 = vld [vmem:[%s6932_s5 + $0x190] sm:$0xff] }
 0x291   : > { %1610 = vmatpush.msra.mxu2 %v3608_v52  ;;  %1631 = vmatpush.msra.mxu1 %v3638_v20  ;;  %v1389_v52 = vld [vmem:[%s6932_s5 + $0x1e8] sm:$0xff] }
 0x292   : > { %1680 = vmatpush.msrb.mxu0 %v1328_v11  ;;  %v1353_v11 = vld [vmem:[%s6932_s5 + $0xc8] sm:$0xff] }
 0x293   : > { %1611 = vmatpush.msra.mxu2 %v3606_v57  ;;  %1632 = vmatpush.msra.mxu1 %v3636_v28  ;;  %v1385_v57 = vld [vmem:[%s6932_s5 + $0x1c8] sm:$0xff]  ;;  %v1367_v28 = vld [vmem:[%s6932_s5 + $0x138] sm:$0xff] }
 0x294   : > { %v1369_v20 = vld [vmem:[%s6932_s5 + $0x148] sm:$0xff] }
 0x295   : > { %1612 = vmatpush.msra.mxu2 %v3604_v63  ;;  %1633 = vmatpush.msra.mxu1 %v3634_v31  ;;  %v1383_v63 = vld [vmem:[%s6932_s5 + $0x1b8] sm:$0xff]  ;;  %v1365_v31 = vld [vmem:[%s6932_s5 + $0x128] sm:$0xff] }
 0x297   : > { %1613 = vmatpush.msra.mxu2 %v3602_v18  ;;  %1634 = vmatpush.msra.mxu1 %v3632_v32  ;;  %v1381_v18 = vld [vmem:[%s6932_s5 + $0x1a8] sm:$0xff]  ;;  %v1363_v32 = vld [vmem:[%s6932_s5 + $0x118] sm:$0xff] }
 0x299   : > { %1614 = vmatpush.msra.mxu2 %v3600_v10  ;;  %1635 = vmatpush.msra.mxu1 %v3630_v36  ;;  %v1376_v10 = vld [vmem:[%s6932_s5 + $0x180] sm:$0xff] }
 0x29a   : > { %v1360_v36 = vld [vmem:[%s6932_s5 + $0x100] sm:$0xff] }
 0x29b   : > { %1615 = vmatpush.msra.mxu2 %v3598_v14  ;;  %1636 = vmatpush.msra.mxu1 %v3628_v37  ;;  %v1351_v14 = vld [vmem:[%s6932_s5 + $0xb8] sm:$0xff]  ;;  %v1337_v37 = vld [vmem:[%s6932_s5 + $0x48] sm:$0xff] }
 0x29d   : > { %1616 = vmatpush.msra.mxu2 %v3596_v19  ;;  %1637 = vmatpush.msra.mxu1 %v3626_v38  ;;  %v1349_v19 = vld [vmem:[%s6932_s5 + $0xa8] sm:$0xff] }
 0x29e   : > { %v1361_v38 = vld [vmem:[%s6932_s5 + $0x108] sm:$0xff] }
 0x29f   : > { %1617 = vmatpush.msra.mxu2 %v3594_v9  ;;  %v1347_v9 = vld [vmem:[%s6932_s5 + $0x98] sm:$0xff] }
 0x2a1   : > { %1717 = vmatpush.msrb.mxu2 %v1398_v27  ;;  %v1345_v27 = vld [vmem:[%s6932_s5 + $0x88] sm:$0xff] }
 0x2a3   : > { %1718 = vmatpush.msrb.mxu2 %v1396_v24  ;;  %v1343_v24 = vld [vmem:[%s6932_s5 + $0x78] sm:$0xff] }
 0x2a5   : > { %1719 = vmatpush.msrb.mxu2 %v1394_v30  ;;  %v1341_v30 = vld [vmem:[%s6932_s5 + $0x68] sm:$0xff] }
 0x2a7   : > { %1720 = vmatpush.msrb.mxu2 %v1392_v25  ;;  %v1339_v25 = vld [vmem:[%s6932_s5 + $0x58] sm:$0xff] }
 0x2ec   : > { %v5448_v35 = vpop.f32.mrf.mxu1 }
 0x2f1   : > { %v5450_v39 = vpop.f32.mrf.mxu2 }
 0x2f4   : > { %v5455_v41 = vpop.f32.mrf.mxu1 }
 0x2f5   : > { %1578 = vmatmul.f32.vlgmr.msra.gmra.mxu0 %v5455_v41 }
 0x2f6   : > { %1777 = vmatpush.msra.mxu0 %v1399_v40  ;;  %v1335_v40 = vld [vmem:[%s6932_s5 + $0x38] sm:$0xff] }
 0x2f8   : > { %1778 = vmatpush.msra.mxu0 %v1397_v42  ;;  %v1333_v42 = vld [vmem:[%s6932_s5 + $0x28] sm:$0xff] }
 0x2f9   : > { %v5464_v44 = vpop.f32.mrf.mxu2 }
 0x2fa   : > { %1779 = vmatpush.msra.mxu0 %v1395_v43  ;;  %v3703_v43 = vld [vmem:[%s6932_s5 + $0x558] sm:$0xff] }
 0x2fc   : > { %1780 = vmatpush.msra.mxu0 %v1393_v45  ;;  %v3701_v45 = vld [vmem:[%s6932_s5 + $0x548] sm:$0xff] }
 0x2fd   : > { %1681 = vmatmul.f32.vlgmr.msrb.gmra.mxu0 %v5450_v39 }
 0x2fe   : > { %3672 = vmatpush.msk.msrb.mxu0 %vm1258_vm2, %v5148_v62 }
 0x300   : > { %1824 = vmatpush.msrb.mxu0 %v5156_v0 }
 0x301   : > { %v1422_v50 = vpop.f32.mrf.mxu2 }
 0x302   : > { %1825 = vmatpush.msrb.mxu0 %v5169_v4  ;;  %1558 = vmatmul.f32.vlgmr.msrb.gmra.mxu3 %v1422_v50 }
 0x303   : > { %1618 = vmatmul.f32.vlgmr.msra.gmra.mxu2 %v1422_v50  ;;  %1685 = vmatpush.msrb.mxu3 %v1390_v48  ;;  %v1329_v48 = vld [vmem:[%s6932_s5 + $0x8] sm:$0xff]  ;;  %v3738_v50 = vld [vmem:[%s6932_s5 + $0x670] sm:$0xff] }
 0x304   : > { %1745 = vmatpush.msra.mxu2 %v1391_v49  ;;  %v3699_v49 = vld [vmem:[%s6932_s5 + $0x538] sm:$0xff] }
 0x305   : > { %3668 = vmatmul.msk.f32.vlgmr.msra.gmra.mxu0 %vm1538_vm4, %v5448_v35  ;;  %1686 = vmatpush.msrb.mxu3 %v1388_v47  ;;  %v3697_v47 = vld [vmem:[%s6932_s5 + $0x528] sm:$0xff] }
 0x306   : > { %1746 = vmatpush.msra.mxu2 %v1389_v52  ;;  %v3736_v52 = vld [vmem:[%s6932_s5 + $0x660] sm:$0xff] }
 0x307   : > { %1687 = vmatpush.msrb.mxu3 %v1386_v8  ;;  %v3695_v8 = vld [vmem:[%s6932_s5 + $0x518] sm:$0xff] }
 0x308   : > { %1747 = vmatpush.msra.mxu2 %v1387_v55  ;;  %v3693_v55 = vld [vmem:[%s6932_s5 + $0x508] sm:$0xff] }
 0x309   : > { %1688 = vmatpush.msrb.mxu3 %v1384_v56  ;;  %v1462_v15 = vpop.f32.mrf.mxu2  ;;  %v3732_v56 = vld [vmem:[%s6932_s5 + $0x640] sm:$0xff] }
 0x30a   : > { %1748 = vmatpush.msra.mxu2 %v1385_v57  ;;  %3665 = vmatmul.msk.f32.vlgmr.msrb.gmra.mxu1 %vm1538_vm4, %v1462_v15  ;;  %v3691_v57 = vld [vmem:[%s6932_s5 + $0x4f8] sm:$0xff] }
 0x30b   : > { %3666 = vmatmul.msk.f32.vlgmr.msra.gmra.mxu3 %vm1538_vm4, %v1462_v15  ;;  %1725 = vmatpush.msrb.mxu1 %v1359_v60  ;;  %v3689_v60 = vld [vmem:[%s6932_s5 + $0x4e8] sm:$0xff]  ;;  %v3728_v15 = vld [vmem:[%s6932_s5 + $0x620] sm:$0xff] }
 0x30c   : > { %1689 = vmatpush.msrb.mxu3 %v1382_v12  ;;  %1749 = vmatpush.msra.mxu2 %v1383_v63  ;;  %v3730_v12 = vld [vmem:[%s6932_s5 + $0x630] sm:$0xff]  ;;  %v3687_v63 = vld [vmem:[%s6932_s5 + $0x4d8] sm:$0xff] }
 0x30d   : > { %3673 = vmatmul.msk.f32.vlgmr.msrb.gmra.mxu0 %vm1254_vm3, %v5512_v1  ;;  %1726 = vmatpush.msrb.mxu1 %v1357_v2  ;;  %v3724_v2 = vld [vmem:[%s6932_s5 + $0x600] sm:$0xff] }
 0x30e   : > { %1690 = vmatpush.msrb.mxu3 %v1380_v3  ;;  %1750 = vmatpush.msra.mxu2 %v1381_v18  ;;  %v3685_v3 = vld [vmem:[%s6932_s5 + $0x4c8] sm:$0xff]  ;;  %v3683_v18 = vld [vmem:[%s6932_s5 + $0x4b8] sm:$0xff] }
 0x30f   : > { %1727 = vmatpush.msrb.mxu1 %v1355_v6  ;;  %3667 = vmatmul.msk.f32.vlgmr.msrb.gmra.mxu2 %vm1538_vm4, %v5448_v35  ;;  %v3707_v35 = vld [vmem:[%s6932_s5 + $0x578] sm:$0xff]  ;;  %v3681_v6 = vld [vmem:[%s6932_s5 + $0x4a8] sm:$0xff] }
 0x310   : > { %1691 = vmatpush.msrb.mxu3 %v1378_v5  ;;  %1751 = vmatpush.msra.mxu2 %v1379_v7  ;;  %v3722_v5 = vld [vmem:[%s6932_s5 + $0x5f0] sm:$0xff]  ;;  %v3720_v7 = vld [vmem:[%s6932_s5 + $0x5e0] sm:$0xff] }
 0x311   : > { %1728 = vmatpush.msrb.mxu1 %v1353_v11  ;;  %v3718_v11 = vld [vmem:[%s6932_s5 + $0x5d0] sm:$0xff] }
 0x312   : > { %1692 = vmatpush.msrb.mxu3 %v1376_v10  ;;  %1752 = vmatpush.msra.mxu2 %v1377_v13  ;;  %v3679_v10 = vld [vmem:[%s6932_s5 + $0x498] sm:$0xff]  ;;  %v3677_v13 = vld [vmem:[%s6932_s5 + $0x488] sm:$0xff] }
 0x313   : > { %1638 = vmatmul.f32.vlgmr.msra.gmra.mxu1 %v5455_v41  ;;  %v3705_v41 = vld [vmem:[%s6932_s5 + $0x568] sm:$0xff] }
 0x314   : > { %1693 = vmatpush.msrb.mxu3 %v1374_v33  ;;  %1729 = vmatpush.msrb.mxu1 %v1351_v14  ;;  %v3716_v33 = vld [vmem:[%s6932_s5 + $0x5c0] sm:$0xff]  ;;  %v3714_v14 = vld [vmem:[%s6932_s5 + $0x5b0] sm:$0xff] }
 0x315   : > { %1753 = vmatpush.msra.mxu2 %v1375_v16  ;;  %v3712_v16 = vld [vmem:[%s6932_s5 + $0x5a0] sm:$0xff] }
 0x316   : > { %1694 = vmatpush.msrb.mxu3 %v1372_v17  ;;  %1730 = vmatpush.msrb.mxu1 %v1349_v19  ;;  %v3710_v17 = vld [vmem:[%s6932_s5 + $0x590] sm:$0xff]  ;;  %v3708_v19 = vld [vmem:[%s6932_s5 + $0x580] sm:$0xff] }
 0x317   : > { %1754 = vmatpush.msra.mxu2 %v1373_v21  ;;  %v3706_v21 = vld [vmem:[%s6932_s5 + $0x570] sm:$0xff] }
 0x318   : > { %1695 = vmatpush.msrb.mxu3 %v1370_v26  ;;  %1731 = vmatpush.msrb.mxu1 %v1347_v9  ;;  %v3704_v26 = vld [vmem:[%s6932_s5 + $0x560] sm:$0xff]  ;;  %v3702_v9 = vld [vmem:[%s6932_s5 + $0x550] sm:$0xff] }
 0x319   : > { %1755 = vmatpush.msra.mxu2 %v1371_v53  ;;  %1926 = vmatpush.msra.mxu0 %v3706_v21  ;;  %v3746_v53 = vld [vmem:[%s6932_s5 + $0x6b0] sm:$0xff] }
 0x31a   : > { %1696 = vmatpush.msrb.mxu3 %v1368_v34  ;;  %1732 = vmatpush.msrb.mxu1 %v1345_v27  ;;  %v3700_v34 = vld [vmem:[%s6932_s5 + $0x540] sm:$0xff]  ;;  %v3698_v27 = vld [vmem:[%s6932_s5 + $0x530] sm:$0xff] }
 0x31b   : > { %1756 = vmatpush.msra.mxu2 %v1369_v20  ;;  %1927 = vmatpush.msra.mxu0 %v3704_v26  ;;  %v3696_v20 = vld [vmem:[%s6932_s5 + $0x520] sm:$0xff] }
 0x31c   : > { %1697 = vmatpush.msrb.mxu3 %v1366_v22  ;;  %1733 = vmatpush.msrb.mxu1 %v1343_v24  ;;  %v3744_v22 = vld [vmem:[%s6932_s5 + $0x6a0] sm:$0xff] }
 0x31d   : > { %1757 = vmatpush.msra.mxu2 %v1367_v28  ;;  %1928 = vmatpush.msra.mxu0 %v3702_v9  ;;  %v3694_v28 = vld [vmem:[%s6932_s5 + $0x510] sm:$0xff] }
 0x31e   : > { %1698 = vmatpush.msrb.mxu3 %v1364_v29  ;;  %1734 = vmatpush.msrb.mxu1 %v1341_v30  ;;  %v3742_v29 = vld [vmem:[%s6932_s5 + $0x690] sm:$0xff]  ;;  %v3740_v30 = vld [vmem:[%s6932_s5 + $0x680] sm:$0xff] }
 0x31f   : > { %1758 = vmatpush.msra.mxu2 %v1365_v31  ;;  %1929 = vmatpush.msra.mxu0 %v3700_v34  ;;  %v3692_v31 = vld [vmem:[%s6932_s5 + $0x500] sm:$0xff] }
 0x320   : > { %1699 = vmatpush.msrb.mxu3 %v1362_v23  ;;  %1735 = vmatpush.msrb.mxu1 %v1339_v25  ;;  %v3739_v23 = vld [vmem:[%s6932_s5 + $0x678] sm:$0xff]  ;;  %v3690_v25 = vld [vmem:[%s6932_s5 + $0x4f0] sm:$0xff] }
 0x321   : > { %1759 = vmatpush.msra.mxu2 %v1363_v32  ;;  %1930 = vmatpush.msra.mxu0 %v3698_v27  ;;  %v3737_v32 = vld [vmem:[%s6932_s5 + $0x668] sm:$0xff] }
 0x322   : > { %1700 = vmatpush.msrb.mxu3 %v1360_v36  ;;  %1736 = vmatpush.msrb.mxu1 %v1337_v37  ;;  %v3688_v37 = vld [vmem:[%s6932_s5 + $0x4e0] sm:$0xff] }
 0x323   : > { %1760 = vmatpush.msra.mxu2 %v1361_v38  ;;  %1701 = vmatmul.f32.vlgmr.msrb.gmra.mxu3 %v5464_v44  ;;  %v3735_v38 = vld [vmem:[%s6932_s5 + $0x658] sm:$0xff] }
 0x324   : > { %1761 = vmatmul.f32.vlgmr.msra.gmra.mxu2 %v5464_v44  ;;  %3670 = vmatpush.msk.msra.mxu3 %vm1258_vm2, %v5118_v46  ;;  %v1331_v44 = vld [vmem:[%s6932_s5 + $0x18] sm:$0xff] }
 0x325   : > { %1986 = vmatpush.msrb.mxu2 %v3707_v35  ;;  %1737 = vmatpush.msrb.mxu1 %v1335_v40  ;;  %v3686_v35 = vld [vmem:[%s6932_s5 + $0x4d0] sm:$0xff]  ;;  %v3733_v40 = vld [vmem:[%s6932_s5 + $0x648] sm:$0xff] }
 0x326   : > { %1804 = vmatpush.msra.mxu3 %v5128_v54  ;;  %1931 = vmatpush.msra.mxu0 %v3696_v20 }
 0x327   : > { %1987 = vmatpush.msrb.mxu2 %v3705_v41  ;;  %1738 = vmatpush.msrb.mxu1 %v1333_v42  ;;  %v3684_v41 = vld [vmem:[%s6932_s5 + $0x4c0] sm:$0xff]  ;;  %v3731_v42 = vld [vmem:[%s6932_s5 + $0x638] sm:$0xff] }
 0x328   : > { %1805 = vmatpush.msra.mxu3 %v5139_v59  ;;  %1932 = vmatpush.msra.mxu0 %v3694_v28  ;;  %v3788_v28 = vld [vmem:[%s6932_s5 + $0x7b8] sm:$0xff] }
 0x329   : > { %1988 = vmatpush.msrb.mxu2 %v3703_v43  ;;  %1739 = vmatpush.msrb.mxu1 %v1331_v44  ;;  %v3682_v43 = vld [vmem:[%s6932_s5 + $0x4b0] sm:$0xff]  ;;  %v3729_v44 = vld [vmem:[%s6932_s5 + $0x628] sm:$0xff] }
 0x32a   : > { %3674 = vmatpush.msk.msrb.mxu3 %vm1258_vm2, %v5126_v51  ;;  %1933 = vmatpush.msra.mxu0 %v3692_v31  ;;  %v3784_v31 = vld [vmem:[%s6932_s5 + $0x798] sm:$0xff] }
 0x32b   : > { %1989 = vmatpush.msrb.mxu2 %v3701_v45  ;;  %1740 = vmatpush.msrb.mxu1 %v1329_v48  ;;  %v3680_v45 = vld [vmem:[%s6932_s5 + $0x4a0] sm:$0xff] }
 0x32c   : > { %1844 = vmatpush.msrb.mxu3 %v5135_v58  ;;  %1741 = vmatmul.f32.vlgmr.msrb.gmra.mxu1 %v5450_v39  ;;  %v3734_v39 = vld [vmem:[%s6932_s5 + $0x650] sm:$0xff] }
 0x32d   : > { %3671 = vmatmul.msk.f32.vlgmr.msra.gmra.mxu3 %vm1254_vm3, %v5512_v1  ;;  %1990 = vmatpush.msrb.mxu2 %v3699_v49  ;;  %v3727_v49 = vld [vmem:[%s6932_s5 + $0x618] sm:$0xff] }
 0x32e   : > { %1845 = vmatpush.msrb.mxu3 %v5145_v61  ;;  %1978 = vmatpush.msra.mxu1 %v3746_v53 }
 0x32f   : > { %1991 = vmatpush.msrb.mxu2 %v3697_v47  ;;  %1934 = vmatpush.msra.mxu0 %v3690_v25  ;;  %v3819_v25 = vld [vmem:[%s6932_s5 + $0x8b0] sm:$0xff] }
 0x330   : > { %1946 = vmatpush.msra.mxu3 %v3738_v50  ;;  %1979 = vmatpush.msra.mxu1 %v3744_v22  ;;  %v3678_v50 = vld [vmem:[%s6932_s5 + $0x490] sm:$0xff] }
 0x331   : > { %1992 = vmatpush.msrb.mxu2 %v3695_v8  ;;  %1935 = vmatpush.msra.mxu0 %v3688_v37  ;;  %v3817_v37 = vld [vmem:[%s6932_s5 + $0x8a0] sm:$0xff] }
 0x332   : > { %1947 = vmatpush.msra.mxu3 %v3736_v52  ;;  %1980 = vmatpush.msra.mxu1 %v3742_v29 }
 0x333   : > { %1993 = vmatpush.msrb.mxu2 %v3693_v55  ;;  %1936 = vmatpush.msra.mxu0 %v3686_v35  ;;  %v3815_v35 = vld [vmem:[%s6932_s5 + $0x890] sm:$0xff] }
 0x334   : > { %1948 = vmatpush.msra.mxu3 %v3734_v39  ;;  %1981 = vmatpush.msra.mxu1 %v3740_v30  ;;  %v3786_v30 = vld [vmem:[%s6932_s5 + $0x7a8] sm:$0xff] }
 0x335   : > { %3675 = vmatmul.msk.f32.vlgmr.msrb.gmra.mxu3 %vm1254_vm3, %v5512_v1  ;;  %1994 = vmatpush.msrb.mxu2 %v3691_v57  ;;  %v3726_v1 = vld [vmem:[%s6932_s5 + $0x610] sm:$0xff]  ;;  %v3676_v57 = vld [vmem:[%s6932_s5 + $0x480] sm:$0xff] }
 0x336   : > { %1949 = vmatpush.msra.mxu3 %v3732_v56  ;;  %2006 = vmatpush.msrb.mxu1 %v3739_v23  ;;  %v3725_v56 = vld [vmem:[%s6932_s5 + $0x608] sm:$0xff] }
 0x337   : > { %1995 = vmatpush.msrb.mxu2 %v3689_v60  ;;  %1937 = vmatpush.msra.mxu0 %v3684_v41  ;;  %v3782_v23 = vld [vmem:[%s6932_s5 + $0x788] sm:$0xff]  ;;  %v3813_v41 = vld [vmem:[%s6932_s5 + $0x880] sm:$0xff] }
 0x338   : > { %1950 = vmatpush.msra.mxu3 %v3730_v12  ;;  %2007 = vmatpush.msrb.mxu1 %v3737_v32 }
 0x339   : > { %1996 = vmatpush.msrb.mxu2 %v3687_v63  ;;  %1938 = vmatpush.msra.mxu0 %v3682_v43  ;;  %v3747_v63 = vld [vmem:[%s6932_s5 + $0x6b8] sm:$0xff]  ;;  %v3785_v43 = vld [vmem:[%s6932_s5 + $0x7a0] sm:$0xff] }
 0x33a   : > { %1951 = vmatpush.msra.mxu3 %v3728_v15  ;;  %2008 = vmatpush.msrb.mxu1 %v3735_v38  ;;  %v3723_v15 = vld [vmem:[%s6932_s5 + $0x5f8] sm:$0xff]  ;;  %v3778_v38 = vld [vmem:[%s6932_s5 + $0x768] sm:$0xff] }
 0x33b   : > { %1997 = vmatpush.msrb.mxu2 %v3685_v3  ;;  %1939 = vmatpush.msra.mxu0 %v3680_v45  ;;  %v3811_v45 = vld [vmem:[%s6932_s5 + $0x870] sm:$0xff] }
 0x33c   : > { %1952 = vmatpush.msra.mxu3 %v3726_v1  ;;  %2009 = vmatpush.msrb.mxu1 %v3733_v40  ;;  %v3721_v1 = vld [vmem:[%s6932_s5 + $0x5e8] sm:$0xff]  ;;  %v3776_v40 = vld [vmem:[%s6932_s5 + $0x758] sm:$0xff] }
 0x33d   : > { %1998 = vmatpush.msrb.mxu2 %v3683_v18  ;;  %1940 = vmatpush.msra.mxu0 %v3678_v50  ;;  %v3809_v50 = vld [vmem:[%s6932_s5 + $0x860] sm:$0xff] }
 0x33e   : > { %1953 = vmatpush.msra.mxu3 %v3724_v2  ;;  %2010 = vmatpush.msrb.mxu1 %v3731_v42  ;;  %v5850_v2 = vld [vmem:[%s6929_s2 + $0x18] sm:$0x7f]  ;;  %v3787_v42 = vld [vmem:[%s6932_s5 + $0x7b0] sm:$0xff] }
 0x33f   : > { %1999 = vmatpush.msrb.mxu2 %v3681_v6  ;;  %1941 = vmatpush.msra.mxu0 %v3676_v57  ;;  %v3766_v57 = vld [vmem:[%s6932_s5 + $0x708] sm:$0xff] }
 0x340   : > { %1954 = vmatpush.msra.mxu3 %v3722_v5  ;;  %2011 = vmatpush.msrb.mxu1 %v3729_v44  ;;  %v3745_v5 = vld [vmem:[%s6932_s5 + $0x6a8] sm:$0xff] }
 0x341   : > { %2000 = vmatpush.msrb.mxu2 %v3679_v10  ;;  %2038 = vmatpush.msrb.mxu0 %v3747_v63  ;;  %v3743_v10 = vld [vmem:[%s6932_s5 + $0x698] sm:$0xff]  ;;  %v3774_v44 = vld [vmem:[%s6932_s5 + $0x748] sm:$0xff]  ;;  %v3775_v63 = vld [vmem:[%s6932_s5 + $0x750] sm:$0xff] }
 0x342   : > { %1955 = vmatpush.msra.mxu3 %v3720_v7  ;;  %2012 = vmatpush.msrb.mxu1 %v3727_v49  ;;  %v3719_v7 = vld [vmem:[%s6932_s5 + $0x5d8] sm:$0xff]  ;;  %v3783_v49 = vld [vmem:[%s6932_s5 + $0x790] sm:$0xff] }
 0x343   : > { %2001 = vmatpush.msrb.mxu2 %v3677_v13  ;;  %2039 = vmatpush.msrb.mxu0 %v3745_v5  ;;  %v3717_v13 = vld [vmem:[%s6932_s5 + $0x5c8] sm:$0xff]  ;;  %v3760_v5 = vld [vmem:[%s6932_s5 + $0x6d8] sm:$0xff] }
 0x344   : > { %1956 = vmatpush.msra.mxu3 %v3718_v11  ;;  %2013 = vmatpush.msrb.mxu1 %v3725_v56  ;;  %v3805_v56 = vld [vmem:[%s6932_s5 + $0x840] sm:$0xff] }
 0x345   : > { %3755 = vmatpush.msk.msra.mxu2 %vm1258_vm2, %v5126_v51  ;;  %2040 = vmatpush.msrb.mxu0 %v3743_v10  ;;  %v3758_v10 = vld [vmem:[%s6932_s5 + $0x6c8] sm:$0xff] }
 0x346   : > { %1957 = vmatpush.msra.mxu3 %v3716_v33  ;;  %2014 = vmatpush.msrb.mxu1 %v3723_v15  ;;  %v3741_v33 = vld [vmem:[%s6932_s5 + $0x688] sm:$0xff]  ;;  %v3764_v15 = vld [vmem:[%s6932_s5 + $0x6f8] sm:$0xff] }
 0x347   : > { %2107 = vmatpush.msra.mxu2 %v5135_v58  ;;  %2041 = vmatpush.msrb.mxu0 %v3741_v33  ;;  %v3767_v33 = vld [vmem:[%s6932_s5 + $0x710] sm:$0xff] }
 0x348   : > { %1958 = vmatpush.msra.mxu3 %v3714_v14  ;;  %2015 = vmatpush.msrb.mxu1 %v3721_v1  ;;  %v3715_v14 = vld [vmem:[%s6932_s5 + $0x5b8] sm:$0xff]  ;;  %v3801_v1 = vld [vmem:[%s6932_s5 + $0x820] sm:$0xff] }
 0x349   : > { %2108 = vmatpush.msra.mxu2 %v5145_v61 }
 0x34a   : > { %1959 = vmatpush.msra.mxu3 %v3712_v16  ;;  %2016 = vmatpush.msrb.mxu1 %v3719_v7  ;;  %v3713_v16 = vld [vmem:[%s6932_s5 + $0x5a8] sm:$0xff]  ;;  %v3797_v7 = vld [vmem:[%s6932_s5 + $0x800] sm:$0xff] }
 0x34c   : > { %1960 = vmatpush.msra.mxu3 %v3710_v17  ;;  %2017 = vmatpush.msrb.mxu1 %v3717_v13  ;;  %v3711_v17 = vld [vmem:[%s6932_s5 + $0x598] sm:$0xff]  ;;  %v3795_v13 = vld [vmem:[%s6932_s5 + $0x7f0] sm:$0xff] }
 0x34e   : > { %1961 = vmatpush.msra.mxu3 %v3708_v19  ;;  %2018 = vmatpush.msrb.mxu1 %v3715_v14  ;;  %v3709_v19 = vld [vmem:[%s6932_s5 + $0x588] sm:$0xff]  ;;  %v3793_v14 = vld [vmem:[%s6932_s5 + $0x7e0] sm:$0xff] }
 0x350   : > { %3751 = vmatpush.msk.msrb.mxu3 %vm1258_vm2, %v5118_v46  ;;  %2019 = vmatpush.msrb.mxu1 %v3713_v16  ;;  %v3765_v16 = vld [vmem:[%s6932_s5 + $0x700] sm:$0xff] }
 0x352   : > { %2067 = vmatpush.msrb.mxu3 %v5128_v54  ;;  %2020 = vmatpush.msrb.mxu1 %v3711_v17  ;;  %v3791_v17 = vld [vmem:[%s6932_s5 + $0x7d0] sm:$0xff] }
 0x354   : > { %2068 = vmatpush.msrb.mxu3 %v5139_v59  ;;  %2021 = vmatpush.msrb.mxu1 %v3709_v19  ;;  %v3763_v19 = vld [vmem:[%s6932_s5 + $0x6f0] sm:$0xff] }
 0x372   : > { %v1579_v24 = vpop.f32.mrf.mxu0 }
 0x37a   : > { %v1682_v36 = vpop.f32.mrf.mxu0 }
 0x382   : > { %v1782_v48 = vpop.f32.mrf.mxu0 }
 0x385   : > { %v1559_v47 = vpop.f32.mrf.mxu3 }
 0x386   : > { %v1580_v52 = vadd.f32 %v1579_v24, %v1559_v47  ;;  %v1619_v60 = vpop.f32.mrf.mxu2  ;;  %v3770_v47 = vld [vmem:[%s6932_s5 + $0x728] sm:$0xff] }
 0x387   : > { %v1599_v8 = vpop.f32.mrf.mxu1 }
 0x388   : > { %v1600_v39 = vadd.f32 %v1599_v8, %v1580_v52  ;;  %v3781_v52 = vld [vmem:[%s6932_s5 + $0x780] sm:$0xff]  ;;  %v3807_v8 = vld [vmem:[%s6932_s5 + $0x850] sm:$0xff] }
 0x38a   : > { %v5829_v55 = vpop.f32.mrf.mxu0  ;;  %v1683_v12 = vadd.f32 %v1682_v36, %v1600_v39  ;;  %v3780_v36 = vld [vmem:[%s6932_s5 + $0x778] sm:$0xff] }
 0x38b   : > { %1962 = vmatmul.f32.vlgmr.msra.gmra.mxu3 %v5829_v55  ;;  %v3768_v39 = vld [vmem:[%s6932_s5 + $0x718] sm:$0xff] }
 0x38c   : > { %2189 = vmatpush.msra.mxu3 %v3787_v42  ;;  %v3831_v42 = vld [vmem:[%s6929_s2 + $0x20] sm:$0x7f] }
 0x38e   : > { %v1659_v18 = vpop.f32.mrf.mxu3  ;;  %2190 = vmatpush.msra.mxu3 %v3785_v43  ;;  %v3790_v43 = vld [vmem:[%s6932_s5 + $0x7c8] sm:$0xff] }
 0x390   : > { %v1639_v3 = vpop.f32.mrf.mxu1  ;;  %2191 = vmatpush.msra.mxu3 %v3783_v49  ;;  %v3902_v49 = vld [vmem:[%s6932_s5 + $0xb00] sm:$0xff] }
 0x391   : > { %v1640_v6 = vadd.f32 %v1639_v3, %v1619_v60  ;;  %v3803_v60 = vld [vmem:[%s6932_s5 + $0x830] sm:$0xff]  ;;  %v3762_v3 = vld [vmem:[%s6932_s5 + $0x6e8] sm:$0xff] }
 0x392   : > { %v1722_v21 = vpop.f32.mrf.mxu2  ;;  %2192 = vmatpush.msra.mxu3 %v3781_v52 }
 0x393   : > { %3752 = vmatmul.msk.f32.vlgmr.msrb.gmra.mxu3 %vm1254_vm3, %v5850_v2  ;;  %v1660_v11 = vadd.f32 %v1659_v18, %v1640_v6  ;;  %v3799_v18 = vld [vmem:[%s6932_s5 + $0x810] sm:$0xff] }
 0x394   : > { %v3771_v6 = vld [vmem:[%s6932_s5 + $0x730] sm:$0xff] }
 0x3a6   : > { %v1702_v26 = vpop.f32.mrf.mxu3 }
 0x3a7   : > { %v1703_v9 = vadd.f32 %v1702_v26, %v1683_v12  ;;  %v1762_v20 = vpop.f32.mrf.mxu2  ;;  %v3777_v12 = vld [vmem:[%s6932_s5 + $0x760] sm:$0xff]  ;;  %v3828_v26 = vld [vmem:[%s6932_s5 + $0x8f8] sm:$0xff] }
 0x3a9   : > { %v5881_v53 = vadd.f32 %v1722_v21, %v1703_v9  ;;  %v1742_v34 = vpop.f32.mrf.mxu1  ;;  %v3761_v21 = vld [vmem:[%s6932_s5 + $0x6e0] sm:$0xff]  ;;  %v3826_v9 = vld [vmem:[%s6932_s5 + $0x8e8] sm:$0xff] }
 0x3aa   : > { %v1743_v27 = vadd.f32 %v1742_v34, %v1660_v11  ;;  %v3769_v11 = vld [vmem:[%s6932_s5 + $0x720] sm:$0xff] }
 0x3ab   : > { %v3825_v34 = vld [vmem:[%s6932_s5 + $0x8e0] sm:$0xff] }
 0x3ac   : > { %v1763_v22 = vadd.f32 %v1762_v20, %v1743_v27  ;;  %v3823_v27 = vld [vmem:[%s6932_s5 + $0x8d0] sm:$0xff]  ;;  %v3821_v20 = vld [vmem:[%s6932_s5 + $0x8c0] sm:$0xff] }
 0x3ae   : > { %v5883_v24 = vadd.f32 %v1782_v48, %v1763_v22  ;;  %v3772_v48 = vld [vmem:[%s6932_s5 + $0x738] sm:$0xff] }
 0x3af   : > { %v3820_v22 = vld [vmem:[%s6932_s5 + $0x8b8] sm:$0xff] }
 0x3b0   : > { %v1807_v29 = vpop.f32.mrf.mxu3 }
 0x3b1   : > { %1942 = vmatmul.f32.vlgmr.msra.gmra.mxu0 %v1807_v29  ;;  %2002 = vmatmul.f32.vlgmr.msrb.gmra.mxu2 %v1807_v29  ;;  %v3816_v29 = vld [vmem:[%s6932_s5 + $0x898] sm:$0xff] }
 0x3b2   : > { %3753 = vmatpush.msk.msra.mxu0 %vm1258_vm2, %v5148_v62  ;;  %2249 = vmatpush.msrb.mxu2 %v3788_v28  ;;  %v3818_v28 = vld [vmem:[%s6932_s5 + $0x8a8] sm:$0xff] }
 0x3b4   : > { %2087 = vmatpush.msra.mxu0 %v5156_v0  ;;  %2250 = vmatpush.msrb.mxu2 %v3786_v30  ;;  %v3814_v30 = vld [vmem:[%s6932_s5 + $0x888] sm:$0xff] }
 0x3b6   : > { %2088 = vmatpush.msra.mxu0 %v5169_v4  ;;  %2251 = vmatpush.msrb.mxu2 %v3784_v31 }
 0x3b8   : > { %2252 = vmatpush.msrb.mxu2 %v3782_v23  ;;  %v1847_v32 = vpop.f32.mrf.mxu3  ;;  %v3812_v23 = vld [vmem:[%s6932_s5 + $0x878] sm:$0xff] }
 0x3b9   : > { %3748 = vmatmul.msk.f32.vlgmr.msra.gmra.mxu1 %vm1538_vm4, %v1847_v32  ;;  %3749 = vmatmul.msk.f32.vlgmr.msrb.gmra.mxu0 %vm1538_vm4, %v1847_v32  ;;  %v3808_v32 = vld [vmem:[%s6932_s5 + $0x858] sm:$0xff] }
 0x3ba   : > { %3756 = vmatmul.msk.f32.vlgmr.msra.gmra.mxu2 %vm1254_vm3, %v5850_v2  ;;  %2209 = vmatpush.msra.mxu1 %v3819_v25  ;;  %v3810_v25 = vld [vmem:[%s6932_s5 + $0x868] sm:$0xff] }
 0x3bb   : > { %2253 = vmatpush.msrb.mxu2 %v3780_v36  ;;  %v3806_v36 = vld [vmem:[%s6932_s5 + $0x848] sm:$0xff] }
 0x3bc   : > { %2210 = vmatpush.msra.mxu1 %v3817_v37 }
 0x3bd   : > { %2254 = vmatpush.msrb.mxu2 %v3778_v38  ;;  %v3804_v38 = vld [vmem:[%s6932_s5 + $0x838] sm:$0xff] }
 0x3be   : > { %2211 = vmatpush.msra.mxu1 %v3815_v35  ;;  %v3802_v35 = vld [vmem:[%s6932_s5 + $0x828] sm:$0xff] }
 0x3bf   : > { %2255 = vmatpush.msrb.mxu2 %v3776_v40  ;;  %v3800_v40 = vld [vmem:[%s6932_s5 + $0x818] sm:$0xff] }
 0x3c0   : > { %2212 = vmatpush.msra.mxu1 %v3813_v41  ;;  %v3796_v41 = vld [vmem:[%s6932_s5 + $0x7f8] sm:$0xff] }
 0x3c1   : > { %2256 = vmatpush.msrb.mxu2 %v3774_v44  ;;  %2022 = vmatmul.f32.vlgmr.msrb.gmra.mxu1 %v5829_v55  ;;  %v3779_v55 = vld [vmem:[%s6932_s5 + $0x770] sm:$0xff] }
 0x3c2   : > { %3754 = vmatmul.msk.f32.vlgmr.msra.gmra.mxu0 %vm1254_vm3, %v5850_v2  ;;  %2213 = vmatpush.msra.mxu1 %v3811_v45  ;;  %v3773_v2 = vld [vmem:[%s6932_s5 + $0x740] sm:$0xff]  ;;  %v3908_v44 = vld [vmem:[%s6932_s5 + $0xb30] sm:$0xff] }
 0x3c3   : > { %2257 = vmatpush.msrb.mxu2 %v3772_v48  ;;  %2193 = vmatpush.msra.mxu3 %v3779_v55  ;;  %v3906_v45 = vld [vmem:[%s6932_s5 + $0xb20] sm:$0xff]  ;;  %v3904_v48 = vld [vmem:[%s6932_s5 + $0xb10] sm:$0xff] }
 0x3c4   : > { %2214 = vmatpush.msra.mxu1 %v3809_v50  ;;  %v3901_v50 = vld [vmem:[%s6932_s5 + $0xaf8] sm:$0xff] }
 0x3c5   : > { %2258 = vmatpush.msrb.mxu2 %v3770_v47  ;;  %2194 = vmatpush.msra.mxu3 %v3777_v12 }
 0x3c6   : > { %2215 = vmatpush.msra.mxu1 %v3807_v8  ;;  %v3899_v8 = vld [vmem:[%s6932_s5 + $0xae8] sm:$0xff] }
 0x3c7   : > { %2259 = vmatpush.msrb.mxu2 %v3768_v39  ;;  %2195 = vmatpush.msra.mxu3 %v3775_v63  ;;  %v3897_v39 = vld [vmem:[%s6932_s5 + $0xad8] sm:$0xff] }
 0x3c8   : > { %2216 = vmatpush.msra.mxu1 %v3805_v56  ;;  %v3869_v63 = vld [vmem:[%s6932_s5 + $0x9f8] sm:$0xff] }
 0x3c9   : > { %2260 = vmatpush.msrb.mxu2 %v3766_v57  ;;  %2196 = vmatpush.msra.mxu3 %v3773_v2  ;;  %v3868_v2 = vld [vmem:[%s6932_s5 + $0x9f0] sm:$0xff] }
 0x3ca   : > { %2217 = vmatpush.msra.mxu1 %v3803_v60 }
 0x3cb   : > { %2261 = vmatpush.msrb.mxu2 %v3764_v15  ;;  %2197 = vmatpush.msra.mxu3 %v3771_v6  ;;  %v3900_v15 = vld [vmem:[%s6932_s5 + $0xaf0] sm:$0xff]  ;;  %v3867_v6 = vld [vmem:[%s6932_s5 + $0x9e8] sm:$0xff] }
 0x3cc   : > { %2218 = vmatpush.msra.mxu1 %v3801_v1 }
 0x3cd   : > { %2262 = vmatpush.msrb.mxu2 %v3762_v3  ;;  %2198 = vmatpush.msra.mxu3 %v3769_v11 }
 0x3ce   : > { %2219 = vmatpush.msra.mxu1 %v3799_v18 }
 0x3cf   : > { %2263 = vmatpush.msrb.mxu2 %v3760_v5  ;;  %2199 = vmatpush.msra.mxu3 %v3767_v33  ;;  %v3864_v33 = vld [vmem:[%s6932_s5 + $0x9d0] sm:$0xff] }
 0x3d0   : > { %2220 = vmatpush.msra.mxu1 %v3797_v7  ;;  %v3866_v7 = vld [vmem:[%s6932_s5 + $0x9e0] sm:$0xff] }
 0x3d1   : > { %2264 = vmatpush.msrb.mxu2 %v3758_v10  ;;  %2200 = vmatpush.msra.mxu3 %v3765_v16  ;;  %v3896_v10 = vld [vmem:[%s6932_s5 + $0xad0] sm:$0xff] }
 0x3d2   : > { %2221 = vmatpush.msra.mxu1 %v3795_v13  ;;  %v3865_v13 = vld [vmem:[%s6932_s5 + $0x9d8] sm:$0xff] }
 0x3d3   : > { %3834 = vmatpush.msk.msra.mxu2 %vm1258_vm2, %v5148_v62  ;;  %v3789_v62 = vld [vmem:[%s6932_s5 + $0x7c0] sm:$0xff]  ;;  %2201 = vmatpush.msra.mxu3 %v3763_v19  ;;  %v3892_v19 = vld [vmem:[%s6932_s5 + $0xab0] sm:$0xff] }
 0x3d4   : > { %2222 = vmatpush.msra.mxu1 %v3793_v14  ;;  %v3894_v14 = vld [vmem:[%s6932_s5 + $0xac0] sm:$0xff] }
 0x3d5   : > { %2350 = vmatpush.msra.mxu2 %v5156_v0  ;;  %v3759_v0 = vld [vmem:[%s6932_s5 + $0x6d0] sm:$0xff]  ;;  %2202 = vmatpush.msra.mxu3 %v3761_v21  ;;  %v3890_v21 = vld [vmem:[%s6932_s5 + $0xaa0] sm:$0xff] }
 0x3d6   : > { %2223 = vmatpush.msra.mxu1 %v3791_v17  ;;  %v3862_v17 = vld [vmem:[%s6932_s5 + $0x9c0] sm:$0xff] }
 0x3d7   : > { %2351 = vmatpush.msra.mxu2 %v5169_v4  ;;  %2203 = vmatpush.msra.mxu3 %v3759_v0  ;;  %v3757_v4 = vld [vmem:[%s6932_s5 + $0x6c0] sm:$0xff]  ;;  %v3863_v0 = vld [vmem:[%s6932_s5 + $0x9c8] sm:$0xff] }
 0x3d8   : > { %2224 = vmatpush.msra.mxu1 %v3789_v62  ;;  %v3858_v62 = vld [vmem:[%s6932_s5 + $0x9a0] sm:$0xff] }
 0x3d9   : > { %2204 = vmatpush.msra.mxu3 %v3757_v4  ;;  %v3895_v4 = vld [vmem:[%s6932_s5 + $0xac8] sm:$0xff] }
 0x3da   : > { %3832 = vmatpush.msk.msrb.mxu1 %vm1258_vm2, %v5118_v46  ;;  %v3824_v46 = vld [vmem:[%s6932_s5 + $0x8d8] sm:$0xff] }
 0x3db   : > { %2301 = vmatpush.msrb.mxu3 %v3828_v26  ;;  %v3856_v26 = vld [vmem:[%s6932_s5 + $0x990] sm:$0xff] }
 0x3dc   : > { %2330 = vmatpush.msrb.mxu1 %v5128_v54  ;;  %v3822_v54 = vld [vmem:[%s6932_s5 + $0x8c8] sm:$0xff] }
 0x3dd   : > { %2302 = vmatpush.msrb.mxu3 %v3826_v9  ;;  %v3888_v9 = vld [vmem:[%s6932_s5 + $0xa90] sm:$0xff] }
 0x3de   : > { %2331 = vmatpush.msrb.mxu1 %v5139_v59  ;;  %v3827_v59 = vld [vmem:[%s6932_s5 + $0x8f0] sm:$0xff] }
 0x3df   : > { %2303 = vmatpush.msrb.mxu3 %v3824_v46  ;;  %2241 = vmatpush.msrb.mxu0 %v3827_v59  ;;  %v3861_v46 = vld [vmem:[%s6932_s5 + $0x9b8] sm:$0xff]  ;;  %v3854_v59 = vld [vmem:[%s6932_s5 + $0x980] sm:$0xff] }
 0x3e1   : > { %2304 = vmatpush.msrb.mxu3 %v3822_v54  ;;  %2242 = vmatpush.msrb.mxu0 %v3825_v34  ;;  %v3893_v54 = vld [vmem:[%s6932_s5 + $0xab8] sm:$0xff]  ;;  %v3852_v34 = vld [vmem:[%s6932_s5 + $0x970] sm:$0xff] }
 0x3e3   : > { %2243 = vmatpush.msrb.mxu0 %v3823_v27  ;;  %v3850_v27 = vld [vmem:[%s6932_s5 + $0x960] sm:$0xff] }
 0x3e5   : > { %2244 = vmatpush.msrb.mxu0 %v3821_v20  ;;  %v3886_v20 = vld [vmem:[%s6932_s5 + $0xa80] sm:$0xff] }
 0x3e7   : > { %2269 = vmatpush.msra.mxu0 %v3820_v22  ;;  %v3859_v22 = vld [vmem:[%s6932_s5 + $0x9a8] sm:$0xff] }
 0x3e9   : > { %2270 = vmatpush.msra.mxu0 %v3818_v28  ;;  %v3891_v28 = vld [vmem:[%s6932_s5 + $0xaa8] sm:$0xff] }
 0x3eb   : > { %2271 = vmatpush.msra.mxu0 %v3816_v29  ;;  %v3884_v29 = vld [vmem:[%s6932_s5 + $0xa70] sm:$0xff] }
 0x3ed   : > { %2272 = vmatpush.msra.mxu0 %v3814_v30  ;;  %v3857_v30 = vld [vmem:[%s6932_s5 + $0x998] sm:$0xff] }
 0x3ef   : > { %2273 = vmatpush.msra.mxu0 %v3812_v23  ;;  %v3882_v23 = vld [vmem:[%s6932_s5 + $0xa60] sm:$0xff] }
 0x3f1   : > { %2274 = vmatpush.msra.mxu0 %v3810_v25  ;;  %v3855_v25 = vld [vmem:[%s6932_s5 + $0x988] sm:$0xff] }
 0x3f3   : > { %2275 = vmatpush.msra.mxu0 %v3808_v32  ;;  %v3887_v32 = vld [vmem:[%s6932_s5 + $0xa88] sm:$0xff] }
 0x3f5   : > { %2276 = vmatpush.msra.mxu0 %v3806_v36  ;;  %v3848_v36 = vld [vmem:[%s6932_s5 + $0x950] sm:$0xff] }
 0x3f7   : > { %2277 = vmatpush.msra.mxu0 %v3804_v38  ;;  %v3844_v38 = vld [vmem:[%s6932_s5 + $0x930] sm:$0xff] }
 0x3f9   : > { %2278 = vmatpush.msra.mxu0 %v3802_v35  ;;  %v3842_v35 = vld [vmem:[%s6932_s5 + $0x920] sm:$0xff] }
 0x3fb   : > { %2279 = vmatpush.msra.mxu0 %v3800_v40  ;;  %v3880_v40 = vld [vmem:[%s6932_s5 + $0xa50] sm:$0xff] }
 0x40e   : > { %v1963_v31 = vpop.f32.mrf.mxu3 }
 0x416   : > { %v2070_v37 = vpop.f32.mrf.mxu3 }
 0x417   : > { %2205 = vmatmul.f32.vlgmr.msra.gmra.mxu3 %v2070_v37  ;;  %2265 = vmatmul.f32.vlgmr.msrb.gmra.mxu2 %v2070_v37  ;;  %v3846_v37 = vld [vmem:[%s6932_s5 + $0x940] sm:$0xff] }
 0x418   : > { %3836 = vmatpush.msk.msra.mxu3 %vm1258_vm2, %v5126_v51  ;;  %v3798_v51 = vld [vmem:[%s6932_s5 + $0x808] sm:$0xff]  ;;  %2504 = vmatpush.msrb.mxu2 %v3908_v44  ;;  %v3876_v44 = vld [vmem:[%s6932_s5 + $0xa30] sm:$0xff] }
 0x419   : > { %2280 = vmatpush.msra.mxu0 %v3798_v51  ;;  %v3853_v51 = vld [vmem:[%s6932_s5 + $0x978] sm:$0xff] }
 0x41a   : > { %2370 = vmatpush.msra.mxu3 %v5135_v58  ;;  %v3794_v58 = vld [vmem:[%s6932_s5 + $0x7e8] sm:$0xff]  ;;  %2505 = vmatpush.msrb.mxu2 %v3906_v45  ;;  %v3849_v45 = vld [vmem:[%s6932_s5 + $0x958] sm:$0xff] }
 0x41b   : > { %2281 = vmatpush.msra.mxu0 %v3796_v41  ;;  %v3885_v41 = vld [vmem:[%s6932_s5 + $0xa78] sm:$0xff] }
 0x41c   : > { %2371 = vmatpush.msra.mxu3 %v5145_v61  ;;  %v3792_v61 = vld [vmem:[%s6932_s5 + $0x7d8] sm:$0xff]  ;;  %2506 = vmatpush.msrb.mxu2 %v3904_v48 }
 0x41d   : > { %2282 = vmatpush.msra.mxu0 %v3794_v58  ;;  %v3881_v48 = vld [vmem:[%s6932_s5 + $0xa58] sm:$0xff] }
 0x41e   : > { %2507 = vmatpush.msrb.mxu2 %v3902_v49  ;;  %v3874_v49 = vld [vmem:[%s6932_s5 + $0xa20] sm:$0xff] }
 0x41f   : > { %3835 = vmatmul.msk.f32.vlgmr.msra.gmra.mxu2 %vm1254_vm3, %v3831_v42  ;;  %2283 = vmatpush.msra.mxu0 %v3792_v61  ;;  %v3878_v61 = vld [vmem:[%s6932_s5 + $0xa40] sm:$0xff] }
 0x420   : > { %2532 = vmatpush.msra.mxu2 %v3901_v50  ;;  %v3847_v50 = vld [vmem:[%s6932_s5 + $0x948] sm:$0xff] }
 0x421   : > { %2284 = vmatpush.msra.mxu0 %v3790_v43  ;;  %v3883_v43 = vld [vmem:[%s6932_s5 + $0xa68] sm:$0xff] }
 0x422   : > { %2533 = vmatpush.msra.mxu2 %v3899_v8  ;;  %v3838_v8 = vld [vmem:[%s6932_s5 + $0x900] sm:$0xff] }
 0x424   : > { %2534 = vmatpush.msra.mxu2 %v3897_v39  ;;  %v3872_v39 = vld [vmem:[%s6932_s5 + $0xa10] sm:$0xff] }
 0x426   : > { %2535 = vmatpush.msra.mxu2 %v3895_v4 }
 0x428   : > { %2536 = vmatpush.msra.mxu2 %v3893_v54 }
 0x42a   : > { %2537 = vmatpush.msra.mxu2 %v3891_v28 }
 0x42e   : > { %v1943_v47 = vpop.f32.mrf.mxu0 }
 0x42f   : > { %v1964_v52 = vadd.f32 %v1963_v31, %v1943_v47  ;;  %v3889_v31 = vld [vmem:[%s6932_s5 + $0xa98] sm:$0xff]  ;;  %v3840_v47 = vld [vmem:[%s6932_s5 + $0x910] sm:$0xff] }
 0x430   : > { %2538 = vmatpush.msra.mxu2 %v3889_v31  ;;  %v3916_v31 = vld [vmem:[%s6930_s3 + $0x2] sm:$0x3] }
 0x432   : > { %2539 = vmatpush.msra.mxu2 %v3887_v32  ;;  %v2651_v32 = vld [vmem:[%s6933_s6 + $0x78] sm:$0xff] }
 0x434   : > { %v2003_v55 = vpop.f32.mrf.mxu2  ;;  %2540 = vmatpush.msra.mxu2 %v3885_v41 }
 0x436   : > { %v1983_v56 = vpop.f32.mrf.mxu1  ;;  %v2043_v57 = vpop.f32.mrf.mxu0  ;;  %2541 = vmatpush.msra.mxu2 %v3883_v43 }
 0x437   : > { %v1984_v12 = vadd.f32 %v1983_v56, %v1964_v52  ;;  %v3879_v52 = vld [vmem:[%s6932_s5 + $0xa48] sm:$0xff]  ;;  %v3877_v56 = vld [vmem:[%s6932_s5 + $0xa38] sm:$0xff] }
 0x438   : > { %2542 = vmatpush.msra.mxu2 %v3881_v48 }
 0x439   : > { %v6150_v60 = vadd.f32 %v1984_v12, %v5881_v53  ;;  %v3898_v53 = vld [vmem:[%s6932_s5 + $0xae0] sm:$0xff] }
 0x43a   : > { %2543 = vmatpush.msra.mxu2 %v3879_v52  ;;  %v3870_v12 = vld [vmem:[%s6932_s5 + $0xa00] sm:$0xff]  ;;  %v3947_v52 = vld [vmem:[%s6933_s6 + $0x1b0] sm:$0xff] }
 0x43c   : > { %2544 = vmatpush.msra.mxu2 %v3877_v56  ;;  %v3946_v56 = vld [vmem:[%s6933_s6 + $0x1a8] sm:$0xff] }
 0x43d   : > { %v2110_v1 = vpop.f32.mrf.mxu2 }
 0x43e   : > { %3829 = vmatmul.msk.f32.vlgmr.msrb.gmra.mxu0 %vm1538_vm4, %v2110_v1  ;;  %3830 = vmatmul.msk.f32.vlgmr.msrb.gmra.mxu3 %vm1538_vm4, %v2110_v1  ;;  %v2023_v3 = vpop.f32.mrf.mxu1  ;;  %v3875_v1 = vld [vmem:[%s6932_s5 + $0xa28] sm:$0xff] }
 0x43f   : > { %v2024_v18 = vadd.f32 %v2023_v3, %v2003_v55  ;;  %v2090_v5 = vpop.f32.mrf.mxu0  ;;  %2472 = vmatpush.msrb.mxu0 %v3900_v15  ;;  %2512 = vmatpush.msrb.mxu3 %v3869_v63  ;;  %v3845_v55 = vld [vmem:[%s6932_s5 + $0x938] sm:$0xff]  ;;  %v3843_v15 = vld [vmem:[%s6932_s5 + $0x928] sm:$0xff] }
 0x440   : > { %2225 = vmatmul.f32.vlgmr.msra.gmra.mxu1 %v2090_v5  ;;  %v3841_v3 = vld [vmem:[%s6932_s5 + $0x918] sm:$0xff]  ;;  %2545 = vmatpush.msra.mxu2 %v3875_v1  ;;  %v3931_v1 = vld [vmem:[%s6933_s6 + $0x130] sm:$0xff] }
 0x441   : > { %v2044_v11 = vadd.f32 %v2043_v57, %v2024_v18  ;;  %2452 = vmatpush.msra.mxu1 %v3868_v2  ;;  %2473 = vmatpush.msrb.mxu0 %v3898_v53  ;;  %v3909_v57 = vld [vmem:[%s6932_s5 + $0xb38] sm:$0xff]  ;;  %v3907_v2 = vld [vmem:[%s6932_s5 + $0xb28] sm:$0xff] }
 0x442   : > { %2513 = vmatpush.msrb.mxu3 %v3867_v6  ;;  %v3873_v53 = vld [vmem:[%s6932_s5 + $0xa18] sm:$0xff]  ;;  %v3839_v18 = vld [vmem:[%s6932_s5 + $0x908] sm:$0xff] }
 0x443   : > { %v6185_v16 = vadd.f32 %v2044_v11, %v5883_v24  ;;  %2453 = vmatpush.msra.mxu1 %v3866_v7  ;;  %2474 = vmatpush.msrb.mxu0 %v3896_v10  ;;  %v3860_v24 = vld [vmem:[%s6932_s5 + $0x9b0] sm:$0xff]  ;;  %v3871_v6 = vld [vmem:[%s6932_s5 + $0xa08] sm:$0xff] }
 0x444   : > { %2514 = vmatpush.msrb.mxu3 %v3865_v13  ;;  %2546 = vmatpush.msra.mxu2 %v3873_v53  ;;  %v3903_v7 = vld [vmem:[%s6932_s5 + $0xb08] sm:$0xff]  ;;  %v3944_v53 = vld [vmem:[%s6933_s6 + $0x198] sm:$0xff] }
 0x445   : > { %2454 = vmatpush.msra.mxu1 %v3864_v33  ;;  %2475 = vmatpush.msrb.mxu0 %v3894_v14 }
 0x446   : > { %2285 = vmatmul.f32.vlgmr.msra.gmra.mxu0 %v2090_v5  ;;  %3837 = vmatmul.msk.f32.vlgmr.msra.gmra.mxu3 %vm1254_vm3, %v3831_v42  ;;  %v3905_v5 = vld [vmem:[%s6932_s5 + $0xb18] sm:$0xff] }
 0x447   : > { %2455 = vmatpush.msra.mxu1 %v3862_v17  ;;  %2476 = vmatpush.msrb.mxu0 %v3892_v19 }
 0x448   : > { %3833 = vmatmul.msk.f32.vlgmr.msrb.gmra.mxu1 %vm1254_vm3, %v3831_v42  ;;  %2515 = vmatpush.msrb.mxu3 %v3863_v0  ;;  %v3851_v42 = vld [vmem:[%s6932_s5 + $0x968] sm:$0xff] }
 0x449   : > { %2456 = vmatpush.msra.mxu1 %v3860_v24  ;;  %2477 = vmatpush.msrb.mxu0 %v3890_v21 }
 0x44a   : > { %2516 = vmatpush.msrb.mxu3 %v3861_v46  ;;  %2547 = vmatpush.msra.mxu2 %v3871_v6  ;;  %v2659_v6 = vld [vmem:[%s6933_s6 + $0xb8] sm:$0xff] }
 0x44b   : > { %2457 = vmatpush.msra.mxu1 %v3858_v62  ;;  %2478 = vmatpush.msrb.mxu0 %v3888_v9 }
 0x44c   : > { %2517 = vmatpush.msrb.mxu3 %v3859_v22 }
 0x44d   : > { %2458 = vmatpush.msra.mxu1 %v3856_v26  ;;  %2479 = vmatpush.msrb.mxu0 %v3886_v20 }
 0x44e   : > { %2518 = vmatpush.msrb.mxu3 %v3857_v30 }
 0x44f   : > { %2459 = vmatpush.msra.mxu1 %v3854_v59  ;;  %2480 = vmatpush.msrb.mxu0 %v3884_v29 }
 0x450   : > { %2519 = vmatpush.msrb.mxu3 %v3855_v25 }
 0x451   : > { %2460 = vmatpush.msra.mxu1 %v3852_v34  ;;  %2481 = vmatpush.msrb.mxu0 %v3882_v23  ;;  %v2584_v23 = vld [vmem:[%s6930_s3] sm:$0x3] }
 0x452   : > { %2520 = vmatpush.msrb.mxu3 %v3853_v51  ;;  %v2649_v51 = vld [vmem:[%s6933_s6 + $0x68] sm:$0xff] }
 0x453   : > { %2461 = vmatpush.msra.mxu1 %v3850_v27  ;;  %2482 = vmatpush.msrb.mxu0 %v3880_v40 }
 0x454   : > { %2521 = vmatpush.msrb.mxu3 %v3851_v42  ;;  %v2648_v42 = vld [vmem:[%s6933_s6 + $0x60] sm:$0xff] }
 0x455   : > { %2462 = vmatpush.msra.mxu1 %v3848_v36  ;;  %2483 = vmatpush.msrb.mxu0 %v3878_v61  ;;  %v3935_v61 = vld [vmem:[%s6933_s6 + $0x150] sm:$0xff] }
 0x456   : > { %2522 = vmatpush.msrb.mxu3 %v3849_v45  ;;  %v2647_v45 = vld [vmem:[%s6933_s6 + $0x58] sm:$0xff] }
 0x457   : > { %2463 = vmatpush.msra.mxu1 %v3846_v37  ;;  %2484 = vmatpush.msrb.mxu0 %v3876_v44  ;;  %v3934_v44 = vld [vmem:[%s6933_s6 + $0x148] sm:$0xff] }
 0x458   : > { %2523 = vmatpush.msrb.mxu3 %v3847_v50  ;;  %v2646_v50 = vld [vmem:[%s6933_s6 + $0x50] sm:$0xff] }
 0x459   : > { %2464 = vmatpush.msra.mxu1 %v3844_v38  ;;  %2485 = vmatpush.msrb.mxu0 %v3874_v49  ;;  %v2650_v38 = vld [vmem:[%s6933_s6 + $0x70] sm:$0xff]  ;;  %v3948_v49 = vld [vmem:[%s6933_s6 + $0x1b8] sm:$0xff] }
 0x45a   : > { %2524 = vmatpush.msrb.mxu3 %v3845_v55  ;;  %v2662_v55 = vld [vmem:[%s6933_s6 + $0xd0] sm:$0xff] }
 0x45b   : > { %2465 = vmatpush.msra.mxu1 %v3842_v35  ;;  %2486 = vmatpush.msrb.mxu0 %v3872_v39  ;;  %v2645_v39 = vld [vmem:[%s6933_s6 + $0x48] sm:$0xff] }
 0x45c   : > { %2525 = vmatpush.msrb.mxu3 %v3843_v15  ;;  %v2661_v15 = vld [vmem:[%s6933_s6 + $0xc8] sm:$0xff] }
 0x45d   : > { %2466 = vmatpush.msra.mxu1 %v3840_v47  ;;  %2487 = vmatpush.msrb.mxu0 %v3870_v12  ;;  %v2663_v47 = vld [vmem:[%s6933_s6 + $0xd8] sm:$0xff]  ;;  %v2644_v12 = vld [vmem:[%s6933_s6 + $0x40] sm:$0xff] }
 0x45e   : > { %2526 = vmatpush.msrb.mxu3 %v3841_v3  ;;  %v2643_v3 = vld [vmem:[%s6933_s6 + $0x38] sm:$0xff] }
 0x45f   : > { %2467 = vmatpush.msra.mxu1 %v3838_v8  ;;  %v3933_v8 = vld [vmem:[%s6933_s6 + $0x140] sm:$0xff] }
 0x460   : > { %2527 = vmatpush.msrb.mxu3 %v3839_v18  ;;  %v3930_v18 = vld [vmem:[%s6933_s6 + $0x128] sm:$0xff] }
 0x461   : > { %2564 = vmatpush.msrb.mxu1 %v3909_v57  ;;  %v3932_v57 = vld [vmem:[%s6933_s6 + $0x138] sm:$0xff] }
 0x463   : > { %2565 = vmatpush.msrb.mxu1 %v3907_v2  ;;  %v2660_v2 = vld [vmem:[%s6933_s6 + $0xc0] sm:$0xff] }
 0x465   : > { %2566 = vmatpush.msrb.mxu1 %v3905_v5  ;;  %v2642_v5 = vld [vmem:[%s6933_s6 + $0x30] sm:$0xff] }
 0x467   : > { %2567 = vmatpush.msrb.mxu1 %v3903_v7  ;;  %v3943_v7 = vld [vmem:[%s6933_s6 + $0x190] sm:$0xff] }
 0x49a   : > { %v6279_v58 = vpop.f32.mrf.mxu2  ;;  %v2206_v10 = vpop.f32.mrf.mxu3 }
 0x4a2   : > { %v2353_v63 = vpop.f32.mrf.mxu2 }
 0x4a3   : > { %2488 = vmatmul.f32.vlgmr.msrb.gmra.mxu0 %v2353_v63 }
 0x4bb   : > { %v2246_v11 = vpop.f32.mrf.mxu0 }
 0x4bd   : > { %v2226_v13 = vpop.f32.mrf.mxu1 }
 0x4be   : > { %v2227_v33 = vadd.f32 %v2226_v13, %v2206_v10  ;;  %v3929_v10 = vld [vmem:[%s6933_s6 + $0x120] sm:$0xff]  ;;  %v2658_v13 = vld [vmem:[%s6933_s6 + $0xb0] sm:$0xff] }
 0x4c0   : > { %v2247_v14 = vadd.f32 %v2246_v11, %v2227_v33  ;;  %v2641_v11 = vld [vmem:[%s6933_s6 + $0x28] sm:$0xff] }
 0x4c1   : > { %v2306_v17 = vpop.f32.mrf.mxu3  ;;  %v3942_v33 = vld [vmem:[%s6933_s6 + $0x188] sm:$0xff] }
 0x4c2   : > { %v2309_v19 = vadd.f32 %v2247_v14, %v6150_v60  ;;  %v6364_v60 = vld [vmem:[%s6935_s8] sm:$0xff]  ;;  %v3928_v14 = vld [vmem:[%s6933_s6 + $0x118] sm:$0xff] }
 0x4c3   : > { %v2286_v24 = vpop.f32.mrf.mxu0  ;;  %v2574_v59 = vperm.slane %v6364_v60, 1  ;;  %v2575_v29 = vperm.slane %v6364_v60, 5 }
 0x4c4   : > { %v2287_v62 = vadd.f32 %v2286_v24, %v6279_v58  ;;  %v3936_v58 = vld [vmem:[%s6933_s6 + $0x158] sm:$0xff]  ;;  %v3941_v24 = vld [vmem:[%s6933_s6 + $0x180] sm:$0xff] }
 0x4c5   : > { %v2333_v21 = vpop.f32.mrf.mxu1  ;;  %v2578_v20 = vperm.slane %v2574_v59, 1  ;;  %v2579_v40 = vperm.slane %v2575_v29, 1  ;;  %v3925_v59 = vld [vmem:[%s6933_s6 + $0x100] sm:$0xff] }
 0x4c6   : > { %v2307_v0 = vadd.f32 %v2306_v17, %v2287_v62  ;;  %2468 = vmatmul.f32.vlgmr.msra.gmra.mxu1 %v2333_v21  ;;  %2528 = vmatmul.f32.vlgmr.msrb.gmra.mxu3 %v2333_v21  ;;  %v2640_v17 = vld [vmem:[%s6933_s6 + $0x20] sm:$0xff]  ;;  %v3927_v62 = vld [vmem:[%s6933_s6 + $0x110] sm:$0xff]  ;;  %v2639_v21 = vld [vmem:[%s6933_s6 + $0x18] sm:$0xff] }
 0x4c7   : > { %v3937_v29 = vld [vmem:[%s6933_s6 + $0x160] sm:$0xff] }
 0x4c8   : > { %v2310_v4 = vadd.f32 %v2307_v0, %v6185_v16  ;;  %v2656_v0 = vld [vmem:[%s6933_s6 + $0xa0] sm:$0xff] }
 0x4c9   : > { %v2373_v26 = vpop.f32.mrf.mxu3 }
 0x4ca   : > { %3910 = vmatmul.msk.f32.vlgmr.msrb.gmra.mxu2 %vm1538_vm4, %v2373_v26 }
 0x4cb   : > { %2742 = vmatpush.msrb.mxu2 %v3936_v58  ;;  %v3964_v58 = vld [vmem:[%s6933_s6 + $0x200] sm:$0xff] }
 0x4cd   : > { %2743 = vmatpush.msrb.mxu2 %v3935_v61  ;;  %v3963_v61 = vld [vmem:[%s6933_s6 + $0x1f8] sm:$0xff] }
 0x4ce   : > { %3911 = vmatmul.msk.f32.vlgmr.msrb.gmra.mxu1 %vm1538_vm4, %v2373_v26  ;;  %v3926_v26 = vld [vmem:[%s6933_s6 + $0x108] sm:$0xff] }
 0x4cf   : > { %2744 = vmatpush.msrb.mxu2 %v3934_v44  ;;  %v3960_v44 = vld [vmem:[%s6933_s6 + $0x1e0] sm:$0xff] }
 0x4d1   : > { %2745 = vmatpush.msrb.mxu2 %v3933_v8 }
 0x4d2   : > { %2548 = vmatmul.f32.vlgmr.msra.gmra.mxu2 %v2353_v63  ;;  %v3945_v63 = vld [vmem:[%s6933_s6 + $0x1a0] sm:$0xff] }
 0x4d3   : > { %2746 = vmatpush.msrb.mxu2 %v3932_v57  ;;  %v4003_v57 = vld [vmem:[%s6933_s6 + $0x308] sm:$0xff] }
 0x4d5   : > { %2747 = vmatpush.msrb.mxu2 %v3931_v1  ;;  %v4001_v1 = vld [vmem:[%s6933_s6 + $0x2f8] sm:$0xff] }
 0x4d7   : > { %2748 = vmatpush.msrb.mxu2 %v3930_v18  ;;  %v3999_v18 = vld [vmem:[%s6933_s6 + $0x2e8] sm:$0xff] }
 0x4d9   : > { %2749 = vmatpush.msrb.mxu2 %v3929_v10  ;;  %v3979_v10 = vld [vmem:[%s6933_s6 + $0x278] sm:$0xff] }
 0x4db   : > { %2750 = vmatpush.msrb.mxu2 %v3928_v14  ;;  %v4016_v14 = vld [vmem:[%s6933_s6 + $0x370] sm:$0xff] }
 0x4dd   : > { %2751 = vmatpush.msrb.mxu2 %v3927_v62  ;;  %v3973_v62 = vld [vmem:[%s6933_s6 + $0x248] sm:$0xff] }
 0x4df   : > { %2752 = vmatpush.msrb.mxu2 %v3926_v26  ;;  %v3997_v26 = vld [vmem:[%s6933_s6 + $0x2d8] sm:$0xff] }
 0x4e1   : > { %2753 = vmatpush.msrb.mxu2 %v3925_v59  ;;  %v4011_v59 = vld [vmem:[%s6933_s6 + $0x348] sm:$0xff] }
 0x520   : > { %v2489_v9 = vpop.f32.mrf.mxu0 }
 0x543   : > { %v2469_v46 = vpop.f32.mrf.mxu1 }
 0x544   : > { %v2490_v54 = vadd.f32 %v2489_v9, %v2469_v46  ;;  %v2638_v9 = vld [vmem:[%s6933_s6 + $0x10] sm:$0xff]  ;;  %v2655_v46 = vld [vmem:[%s6933_s6 + $0x98] sm:$0xff] }
 0x549   : > { %v2529_v28 = vpop.f32.mrf.mxu3 }
 0x54b   : > { %v2569_v37 = vpop.f32.mrf.mxu1 }
 0x54d   : > { %v2509_v34 = vpop.f32.mrf.mxu2 }
 0x54e   : > { %v2510_v27 = vadd.f32 %v2509_v34, %v2490_v54  ;;  %v3939_v54 = vld [vmem:[%s6933_s6 + $0x170] sm:$0xff]  ;;  %v2637_v34 = vld [vmem:[%s6933_s6 + $0x8] sm:$0xff] }
 0x550   : > { %v2572_v16 = vadd.f32 %v2510_v27, %v2309_v19  ;;  %v2657_v19 = vld [vmem:[%s6933_s6 + $0xa8] sm:$0xff]  ;;  %v2654_v27 = vld [vmem:[%s6933_s6 + $0x90] sm:$0xff] }
 0x552   : > { %v2580_v22 = vadd.f32 %v2578_v20, %v2572_v16  ;;  %v3938_v20 = vld [vmem:[%s6933_s6 + $0x168] sm:$0xff]  ;;  %v3924_v16 = vld [vmem:[%s6933_s6 + $0xf8] sm:$0xff] }
 0x553   : > { %2754 = vmatpush.msrb.mxu2 %v3924_v16  ;;  %v4009_v16 = vld [vmem:[%s6933_s6 + $0x338] sm:$0xff] }
 0x554   : > { %v6368_v30 = vmax.f32 %v2580_v22, 0.0  ;;  %v2636_v22 = vld [vmem:[%s6933_s6] sm:$0xff] }
 0x555   : > { %v2549_v25 = vpop.f32.mrf.mxu2 }
 0x556   : > { %v2550_v36 = vadd.f32 %v2549_v25, %v2529_v28  ;;  %3912 = vmatpush.msk.msra.mxu0 %vm2589_vm5, %v6368_v30  ;;  %3917 = vmatpush.msk.msra.mxu1 %vm2589_vm5, %v6368_v30  ;;  %v2653_v28 = vld [vmem:[%s6933_s6 + $0x88] sm:$0xff] }
 0x557   : > { %3918 = vmatmul.msk.f32.vlgmr.msra.gmra.mxu1 %vm2585_vm6, %v3916_v31  ;;  %3913 = vmatmul.msk.f32.vlgmr.msra.gmra.mxu0 %vm2585_vm6, %v2584_v23  ;;  %v3922_v25 = vld [vmem:[%s6933_s6 + $0xe8] sm:$0xff] }
 0x558   : > { %v2570_v35 = vadd.f32 %v2569_v37, %v2550_v36  ;;  %2785 = vmatpush.msrb.mxu1 %v2651_v32  ;;  %v3921_v32 = vld [vmem:[%s6933_s6 + $0xe0] sm:$0xff]  ;;  %v3971_v36 = vld [vmem:[%s6933_s6 + $0x238] sm:$0xff]  ;;  %v3970_v37 = vld [vmem:[%s6933_s6 + $0x230] sm:$0xff] }
 0x55a   : > { %v2573_v41 = vadd.f32 %v2570_v35, %v2310_v4  ;;  %2786 = vmatpush.msrb.mxu1 %v2650_v38  ;;  %v3940_v4 = vld [vmem:[%s6933_s6 + $0x178] sm:$0xff]  ;;  %v3969_v38 = vld [vmem:[%s6933_s6 + $0x228] sm:$0xff]  ;;  %v3968_v35 = vld [vmem:[%s6933_s6 + $0x220] sm:$0xff] }
 0x55c   : > { %v2581_v43 = vadd.f32 %v2579_v40, %v2573_v41  ;;  %2787 = vmatpush.msrb.mxu1 %v2649_v51  ;;  %v3967_v40 = vld [vmem:[%s6933_s6 + $0x218] sm:$0xff]  ;;  %v3966_v51 = vld [vmem:[%s6933_s6 + $0x210] sm:$0xff]  ;;  %v3965_v41 = vld [vmem:[%s6933_s6 + $0x208] sm:$0xff] }
 0x55e   : > { %v6406_v48 = vmax.f32 %v2581_v43, 0.0  ;;  %2788 = vmatpush.msrb.mxu1 %v2648_v42  ;;  %v3962_v42 = vld [vmem:[%s6933_s6 + $0x1f0] sm:$0xff]  ;;  %v3961_v43 = vld [vmem:[%s6933_s6 + $0x1e8] sm:$0xff] }
 0x560   : > { %2789 = vmatpush.msrb.mxu1 %v2647_v45  ;;  %3914 = vmatpush.msk.msra.mxu3 %vm2589_vm5, %v6406_v48  ;;  %v3959_v45 = vld [vmem:[%s6933_s6 + $0x1d8] sm:$0xff] }
 0x561   : > { %3919 = vmatpush.msk.msrb.mxu0 %vm2589_vm5, %v6406_v48  ;;  %3915 = vmatmul.msk.f32.vlgmr.msra.gmra.mxu3 %vm2585_vm6, %v2584_v23  ;;  %v3923_v23 = vld [vmem:[%s6933_s6 + $0xf0] sm:$0xff] }
 0x562   : > { %3920 = vmatmul.msk.f32.vlgmr.msrb.gmra.mxu0 %vm2585_vm6, %v3916_v31  ;;  %2766 = vmatpush.msrb.mxu3 %v3948_v49  ;;  %v2652_v31 = vld [vmem:[%s6933_s6 + $0x80] sm:$0xff]  ;;  %v3958_v49 = vld [vmem:[%s6933_s6 + $0x1d0] sm:$0xff] }
 0x563   : > { %2790 = vmatpush.msrb.mxu1 %v2646_v50  ;;  %2809 = vmatpush.msra.mxu0 %v2663_v47  ;;  %v3957_v50 = vld [vmem:[%s6933_s6 + $0x1c8] sm:$0xff]  ;;  %v3956_v47 = vld [vmem:[%s6933_s6 + $0x1c0] sm:$0xff] }
 0x564   : > { %2767 = vmatpush.msrb.mxu3 %v3947_v52  ;;  %2755 = vmatpush.msrb.mxu2 %v3923_v23 }
 0x565   : > { %2791 = vmatpush.msrb.mxu1 %v2645_v39  ;;  %2810 = vmatpush.msra.mxu0 %v2662_v55  ;;  %v4005_v39 = vld [vmem:[%s6933_s6 + $0x318] sm:$0xff]  ;;  %v4004_v55 = vld [vmem:[%s6933_s6 + $0x310] sm:$0xff] }
 0x566   : > { %2768 = vmatpush.msrb.mxu3 %v3946_v56  ;;  %2756 = vmatpush.msrb.mxu2 %v3922_v25  ;;  %v3985_v56 = vld [vmem:[%s6930_s3 + $0x6] sm:$0x3] }
 0x567   : > { %2792 = vmatpush.msrb.mxu1 %v2644_v12  ;;  %2811 = vmatpush.msra.mxu0 %v2661_v15  ;;  %v4002_v12 = vld [vmem:[%s6933_s6 + $0x300] sm:$0xff]  ;;  %v3983_v15 = vld [vmem:[%s6933_s6 + $0x298] sm:$0xff] }
 0x568   : > { %2769 = vmatpush.msrb.mxu3 %v3945_v63  ;;  %2757 = vmatpush.msrb.mxu2 %v3921_v32  ;;  %v3990_v25 = vld [vmem:[%s6933_s6 + $0x2a0] sm:$0xff] }
 0x569   : > { %2793 = vmatpush.msrb.mxu1 %v2643_v3  ;;  %2812 = vmatpush.msra.mxu0 %v2660_v2  ;;  %v3982_v3 = vld [vmem:[%s6933_s6 + $0x290] sm:$0xff]  ;;  %v4006_v32 = vld [vmem:[%s6933_s6 + $0x320] sm:$0xff] }
 0x56a   : > { %2770 = vmatpush.msrb.mxu3 %v3944_v53  ;;  %2902 = vmatpush.msra.mxu2 %v3971_v36  ;;  %v4000_v2 = vld [vmem:[%s6933_s6 + $0x2f0] sm:$0xff]  ;;  %v3981_v53 = vld [vmem:[%s6933_s6 + $0x288] sm:$0xff] }
 0x56b   : > { %2794 = vmatpush.msrb.mxu1 %v2642_v5  ;;  %2813 = vmatpush.msra.mxu0 %v2659_v6  ;;  %v3980_v6 = vld [vmem:[%s6933_s6 + $0x280] sm:$0xff] }
 0x56c   : > { %2771 = vmatpush.msrb.mxu3 %v3943_v7  ;;  %2903 = vmatpush.msra.mxu2 %v3970_v37  ;;  %v3951_v7 = vld [vmem:[%s6930_s3 + $0x4] sm:$0x3]  ;;  %v4051_v37 = vld [vmem:[%s6933_s6 + $0x458] sm:$0xff] }
 0x56d   : > { %2795 = vmatpush.msrb.mxu1 %v2641_v11  ;;  %2814 = vmatpush.msra.mxu0 %v2658_v13  ;;  %v3978_v11 = vld [vmem:[%s6933_s6 + $0x270] sm:$0xff]  ;;  %v3977_v13 = vld [vmem:[%s6933_s6 + $0x268] sm:$0xff] }
 0x56e   : > { %2772 = vmatpush.msrb.mxu3 %v3942_v33  ;;  %2904 = vmatpush.msra.mxu2 %v3969_v38  ;;  %v3976_v33 = vld [vmem:[%s6933_s6 + $0x260] sm:$0xff]  ;;  %v4050_v38 = vld [vmem:[%s6933_s6 + $0x450] sm:$0xff] }
 0x56f   : > { %2796 = vmatpush.msrb.mxu1 %v2640_v17  ;;  %2815 = vmatpush.msra.mxu0 %v2657_v19  ;;  %v3975_v17 = vld [vmem:[%s6933_s6 + $0x258] sm:$0xff]  ;;  %v4015_v19 = vld [vmem:[%s6933_s6 + $0x368] sm:$0xff] }
 0x570   : > { %2773 = vmatpush.msrb.mxu3 %v3941_v24  ;;  %2905 = vmatpush.msra.mxu2 %v3968_v35  ;;  %v3974_v24 = vld [vmem:[%s6933_s6 + $0x250] sm:$0xff]  ;;  %v4049_v35 = vld [vmem:[%s6933_s6 + $0x448] sm:$0xff] }
 0x571   : > { %2797 = vmatpush.msrb.mxu1 %v2639_v21  ;;  %2816 = vmatpush.msra.mxu0 %v2656_v0  ;;  %v3972_v21 = vld [vmem:[%s6933_s6 + $0x240] sm:$0xff] }
 0x572   : > { %2774 = vmatpush.msrb.mxu3 %v3940_v4  ;;  %2906 = vmatpush.msra.mxu2 %v3967_v40  ;;  %v3998_v0 = vld [vmem:[%s6933_s6 + $0x2e0] sm:$0xff] }
 0x573   : > { %2798 = vmatpush.msrb.mxu1 %v2638_v9  ;;  %2817 = vmatpush.msra.mxu0 %v2655_v46  ;;  %v4014_v4 = vld [vmem:[%s6933_s6 + $0x360] sm:$0xff]  ;;  %v4013_v9 = vld [vmem:[%s6933_s6 + $0x358] sm:$0xff]  ;;  %v4012_v46 = vld [vmem:[%s6933_s6 + $0x350] sm:$0xff] }
 0x574   : > { %2775 = vmatpush.msrb.mxu3 %v3939_v54  ;;  %2907 = vmatpush.msra.mxu2 %v3966_v51  ;;  %v3995_v54 = vld [vmem:[%s6933_s6 + $0x2c8] sm:$0xff]  ;;  %v4048_v40 = vld [vmem:[%s6933_s6 + $0x440] sm:$0xff] }
 0x575   : > { %2799 = vmatpush.msrb.mxu1 %v2637_v34  ;;  %2818 = vmatpush.msra.mxu0 %v2654_v27  ;;  %v3994_v34 = vld [vmem:[%s6933_s6 + $0x2c0] sm:$0xff] }
 0x576   : > { %2776 = vmatpush.msrb.mxu3 %v3938_v20  ;;  %2908 = vmatpush.msra.mxu2 %v3965_v41  ;;  %v4010_v27 = vld [vmem:[%s6933_s6 + $0x340] sm:$0xff]  ;;  %v3993_v20 = vld [vmem:[%s6933_s6 + $0x2b8] sm:$0xff] }
 0x577   : > { %2800 = vmatpush.msrb.mxu1 %v2636_v22  ;;  %2819 = vmatpush.msra.mxu0 %v2653_v28  ;;  %v3992_v22 = vld [vmem:[%s6933_s6 + $0x2b0] sm:$0xff] }
 0x578   : > { %2777 = vmatpush.msrb.mxu3 %v3937_v29  ;;  %2909 = vmatpush.msra.mxu2 %v3964_v58  ;;  %v4008_v28 = vld [vmem:[%s6933_s6 + $0x330] sm:$0xff]  ;;  %v3991_v29 = vld [vmem:[%s6933_s6 + $0x2a8] sm:$0xff] }
 0x579   : > { %3986 = vmatpush.msk.msra.mxu1 %vm2589_vm5, %v6368_v30  ;;  %2820 = vmatpush.msra.mxu0 %v2652_v31  ;;  %v4007_v31 = vld [vmem:[%s6933_s6 + $0x328] sm:$0xff] }
 0x57a   : > { %3952 = vmatpush.msk.msra.mxu3 %vm2589_vm5, %v6368_v30  ;;  %2910 = vmatpush.msra.mxu2 %v3963_v61 }
 0x57b   : > { %3954 = vmatpush.msk.msrb.mxu0 %vm2589_vm5, %v6406_v48 }
 0x57c   : > { %2911 = vmatpush.msra.mxu2 %v3962_v42 }
 0x57e   : > { %2912 = vmatpush.msra.mxu2 %v3961_v43 }
 0x580   : > { %2913 = vmatpush.msra.mxu2 %v3960_v44  ;;  %v4039_v44 = vld [vmem:[%s6933_s6 + $0x3f8] sm:$0xff] }
 0x582   : > { %2914 = vmatpush.msra.mxu2 %v3959_v45 }
 0x584   : > { %2915 = vmatpush.msra.mxu2 %v3958_v49 }
 0x586   : > { %2916 = vmatpush.msra.mxu2 %v3957_v50  ;;  %v4038_v50 = vld [vmem:[%s6933_s6 + $0x3f0] sm:$0xff] }
 0x588   : > { %2917 = vmatpush.msra.mxu2 %v3956_v47  ;;  %v4037_v47 = vld [vmem:[%s6933_s6 + $0x3e8] sm:$0xff] }
 0x5d4   : > { %v2686_v52 = vpop.f32.mrf.mxu1  ;;  %v2613_v8 = vpop.f32.mrf.mxu0 }
 0x5d5   : > { %2758 = vmatmul.f32.vlgmr.msrb.gmra.mxu2 %v2686_v52  ;;  %2801 = vmatmul.f32.vlgmr.msrb.gmra.mxu1 %v2613_v8  ;;  %v4036_v52 = vld [vmem:[%s6933_s6 + $0x3e0] sm:$0xff]  ;;  %v4019_v8 = vld [vmem:[%s6930_s3 + $0x8] sm:$0x3] }
 0x5d6   : > { %4022 = vmatpush.msk.msrb.mxu2 %vm2589_vm5, %v6406_v48  ;;  %3020 = vmatpush.msrb.mxu1 %v4005_v39  ;;  %v4035_v39 = vld [vmem:[%s6933_s6 + $0x3d8] sm:$0xff] }
 0x5d8   : > { %3021 = vmatpush.msrb.mxu1 %v4004_v55 }
 0x5da   : > { %3022 = vmatpush.msrb.mxu1 %v4003_v57  ;;  %v4033_v57 = vld [vmem:[%s6933_s6 + $0x3c8] sm:$0xff] }
 0x5dc   : > { %3023 = vmatpush.msrb.mxu1 %v4002_v12  ;;  %v4032_v12 = vld [vmem:[%s6933_s6 + $0x3c0] sm:$0xff] }
 0x5dd   : > { %3987 = vmatmul.msk.f32.vlgmr.msra.gmra.mxu1 %vm2585_vm6, %v3985_v56 }
 0x5de   : > { %3024 = vmatpush.msrb.mxu1 %v4001_v1  ;;  %v4029_v1 = vld [vmem:[%s6933_s6 + $0x3a8] sm:$0xff] }
 0x5df   : > { %v2706_v63 = vpop.f32.mrf.mxu0 }
 0x5e0   : > { %3949 = vmatmul.msk.f32.vlgmr.msrb.gmra.mxu3 %vm2738_vm7, %v2706_v63  ;;  %3025 = vmatpush.msrb.mxu1 %v4000_v2  ;;  %v4030_v63 = vld [vmem:[%s6933_s6 + $0x3b0] sm:$0xff]  ;;  %v4047_v2 = vld [vmem:[%s6933_s6 + $0x438] sm:$0xff] }
 0x5e1   : > { %2926 = vmatpush.msrb.mxu3 %v3983_v15  ;;  %v4031_v15 = vld [vmem:[%s6933_s6 + $0x3b8] sm:$0xff] }
 0x5e2   : > { %3026 = vmatpush.msrb.mxu1 %v3999_v18  ;;  %v4046_v18 = vld [vmem:[%s6933_s6 + $0x430] sm:$0xff] }
 0x5e3   : > { %2927 = vmatpush.msrb.mxu3 %v3982_v3  ;;  %v4028_v3 = vld [vmem:[%s6933_s6 + $0x3a0] sm:$0xff] }
 0x5e4   : > { %v2633_v5 = vpop.f32.mrf.mxu3  ;;  %3027 = vmatpush.msrb.mxu1 %v3998_v0 }
 0x5e5   : > { %2928 = vmatpush.msrb.mxu3 %v3981_v53  ;;  %3950 = vmatmul.msk.f32.vlgmr.msra.gmra.mxu0 %vm2738_vm7, %v2633_v5  ;;  %v4027_v53 = vld [vmem:[%s6933_s6 + $0x398] sm:$0xff]  ;;  %v4026_v5 = vld [vmem:[%s6933_s6 + $0x390] sm:$0xff] }
 0x5e6   : > { %3988 = vmatpush.msk.msra.mxu0 %vm2589_vm5, %v6406_v48  ;;  %v4017_v48 = vld [vmem:[%s6933_s6 + $0x378] sm:$0xff]  ;;  %3028 = vmatpush.msrb.mxu1 %v3997_v26 }
 0x5e7   : > { %2929 = vmatpush.msrb.mxu3 %v3980_v6  ;;  %v4045_v6 = vld [vmem:[%s6933_s6 + $0x428] sm:$0xff] }
 0x5e8   : > { %3953 = vmatmul.msk.f32.vlgmr.msra.gmra.mxu3 %vm2585_vm6, %v3951_v7 }
 0x5e9   : > { %2930 = vmatpush.msrb.mxu3 %v3979_v10  ;;  %v4044_v10 = vld [vmem:[%s6933_s6 + $0x420] sm:$0xff] }
 0x5eb   : > { %2931 = vmatpush.msrb.mxu3 %v3978_v11  ;;  %v4024_v11 = vld [vmem:[%s6933_s6 + $0x380] sm:$0xff] }
 0x5ed   : > { %2932 = vmatpush.msrb.mxu3 %v3977_v13  ;;  %3955 = vmatmul.msk.f32.vlgmr.msrb.gmra.mxu0 %vm2585_vm6, %v3951_v7  ;;  %v4025_v7 = vld [vmem:[%s6933_s6 + $0x388] sm:$0xff]  ;;  %v4043_v13 = vld [vmem:[%s6933_s6 + $0x418] sm:$0xff] }
 0x5ee   : > { %3044 = vmatpush.msrb.mxu0 %v4017_v48  ;;  %v3189_v48 = vld [vmem:[%s6934_s7 + $0x38] sm:$0xff] }
 0x5ef   : > { %2933 = vmatpush.msrb.mxu3 %v3976_v33  ;;  %v4061_v33 = vld [vmem:[%s6934_s7 + $0x78] sm:$0xff] }
 0x5f0   : > { %3045 = vmatpush.msrb.mxu0 %v4016_v14  ;;  %v3188_v14 = vld [vmem:[%s6934_s7 + $0x30] sm:$0xff] }
 0x5f1   : > { %2934 = vmatpush.msrb.mxu3 %v3975_v17  ;;  %v4060_v17 = vld [vmem:[%s6934_s7 + $0x70] sm:$0xff] }
 0x5f2   : > { %3046 = vmatpush.msrb.mxu0 %v4015_v19  ;;  %v4042_v19 = vld [vmem:[%s6933_s6 + $0x410] sm:$0xff] }
 0x5f3   : > { %2935 = vmatpush.msrb.mxu3 %v3974_v24  ;;  %v3187_v24 = vld [vmem:[%s6934_s7 + $0x28] sm:$0xff] }
 0x5f4   : > { %3047 = vmatpush.msrb.mxu0 %v4014_v4 }
 0x5f5   : > { %2936 = vmatpush.msrb.mxu3 %v3973_v62  ;;  %3989 = vmatmul.msk.f32.vlgmr.msra.gmra.mxu0 %vm2585_vm6, %v3985_v56  ;;  %v4034_v56 = vld [vmem:[%s6933_s6 + $0x3d0] sm:$0xff]  ;;  %v4041_v62 = vld [vmem:[%s6933_s6 + $0x408] sm:$0xff] }
 0x5f6   : > { %3048 = vmatpush.msrb.mxu0 %v4013_v9 }
 0x5f7   : > { %2937 = vmatpush.msrb.mxu3 %v3972_v21  ;;  %v4040_v21 = vld [vmem:[%s6933_s6 + $0x400] sm:$0xff] }
 0x5f8   : > { %3049 = vmatpush.msrb.mxu0 %v4012_v46 }
 0x5f9   : > { %4020 = vmatpush.msk.msra.mxu3 %vm2589_vm5, %v6368_v30  ;;  %v3996_v30 = vld [vmem:[%s6933_s6 + $0x2d0] sm:$0xff] }
 0x5fa   : > { %3029 = vmatpush.msrb.mxu1 %v3996_v30  ;;  %3050 = vmatpush.msrb.mxu0 %v4011_v59  ;;  %v4059_v59 = vld [vmem:[%s6934_s7 + $0x68] sm:$0xff] }
 0x5fc   : > { %3030 = vmatpush.msrb.mxu1 %v3995_v54  ;;  %3051 = vmatpush.msrb.mxu0 %v4010_v27  ;;  %v3186_v54 = vld [vmem:[%s6934_s7 + $0x20] sm:$0xff] }
 0x5fd   : > { %v4058_v27 = vld [vmem:[%s6934_s7 + $0x60] sm:$0xff] }
 0x5fe   : > { %3031 = vmatpush.msrb.mxu1 %v3994_v34  ;;  %3052 = vmatpush.msrb.mxu0 %v4009_v16  ;;  %v3185_v34 = vld [vmem:[%s6934_s7 + $0x18] sm:$0xff] }
 0x5ff   : > { %v4057_v16 = vld [vmem:[%s6934_s7 + $0x58] sm:$0xff] }
 0x600   : > { %3032 = vmatpush.msrb.mxu1 %v3993_v20  ;;  %3053 = vmatpush.msrb.mxu0 %v4008_v28  ;;  %v3184_v20 = vld [vmem:[%s6934_s7 + $0x10] sm:$0xff] }
 0x601   : > { %v4056_v28 = vld [vmem:[%s6934_s7 + $0x50] sm:$0xff] }
 0x602   : > { %3033 = vmatpush.msrb.mxu1 %v3992_v22  ;;  %3054 = vmatpush.msrb.mxu0 %v4007_v31  ;;  %v3183_v22 = vld [vmem:[%s6934_s7 + $0x8] sm:$0xff] }
 0x603   : > { %v4055_v31 = vld [vmem:[%s6934_s7 + $0x48] sm:$0xff] }
 0x604   : > { %3034 = vmatpush.msrb.mxu1 %v3991_v29  ;;  %3055 = vmatpush.msrb.mxu0 %v4006_v32  ;;  %v3182_v29 = vld [vmem:[%s6934_s7] sm:$0xff] }
 0x606   : > { %3035 = vmatpush.msrb.mxu1 %v3990_v25  ;;  %3162 = vmatpush.msra.mxu0 %v4051_v37 }
 0x608   : > { %3163 = vmatpush.msra.mxu0 %v4050_v38  ;;  %3238 = vmatpush.msra.mxu1 %v4061_v33 }
 0x60a   : > { %3164 = vmatpush.msra.mxu0 %v4049_v35  ;;  %3239 = vmatpush.msra.mxu1 %v4060_v17 }
 0x60c   : > { %3165 = vmatpush.msra.mxu0 %v4048_v40  ;;  %3240 = vmatpush.msra.mxu1 %v4059_v59 }
 0x60e   : > { %3166 = vmatpush.msra.mxu0 %v4047_v2  ;;  %3241 = vmatpush.msra.mxu1 %v4058_v27 }
 0x610   : > { %3167 = vmatpush.msra.mxu0 %v4046_v18  ;;  %3242 = vmatpush.msra.mxu1 %v4057_v16 }
 0x612   : > { %3168 = vmatpush.msra.mxu0 %v4045_v6  ;;  %3243 = vmatpush.msra.mxu1 %v4056_v28 }
 0x614   : > { %3169 = vmatpush.msra.mxu0 %v4044_v10  ;;  %3244 = vmatpush.msra.mxu1 %v4055_v31 }
 0x616   : > { %3170 = vmatpush.msra.mxu0 %v4043_v13 }
 0x618   : > { %3171 = vmatpush.msra.mxu0 %v4042_v19 }
 0x61a   : > { %3172 = vmatpush.msra.mxu0 %v4041_v62 }
 0x61c   : > { %3173 = vmatpush.msra.mxu0 %v4040_v21 }
 0x652   : > { %v2802_v23 = vpop.f32.mrf.mxu1 }
 0x658   : > { %v2759_v51 = vpop.f32.mrf.mxu2 }
 0x65a   : > { %v2965_v36 = vpop.f32.mrf.mxu1 }
 0x65b   : > { %3036 = vmatmul.f32.vlgmr.msrb.gmra.mxu1 %v2965_v36 }
 0x662   : > { %v2822_v41 = vpop.f32.mrf.mxu0 }
 0x663   : > { %v2779_v58 = vpop.f32.mrf.mxu3 }
 0x664   : > { %v2780_v61 = vadd.f32 %v2779_v58, %v2759_v51  ;;  %v3179_v51 = vperm.slane %v6364_v60, 2 }
 0x666   : > { %v2803_v42 = vadd.f32 %v2802_v23, %v2780_v61  ;;  %v4054_v23 = vld [vmem:[%s6934_s7 + $0x40] sm:$0xff] }
 0x667   : > { %3245 = vmatpush.msra.mxu1 %v4054_v23 }
 0x668   : > { %v6762_v43 = vadd.f32 %v2822_v41, %v2803_v42 }
 0x66a   : > { %v2867_v45 = vpop.f32.mrf.mxu0 }
 0x66b   : > { %v2847_v49 = vpop.f32.mrf.mxu3  ;;  %3984 = vmatmul.msk.f32.vlgmr.msrb.gmra.mxu3 %vm2738_vm7, %v2867_v45 }
 0x66c   : > { %2918 = vmatmul.f32.vlgmr.msra.gmra.mxu2 %v2847_v49  ;;  %3138 = vmatpush.msrb.mxu3 %v4039_v44 }
 0x66d   : > { %3202 = vmatpush.msra.mxu2 %v3189_v48 }
 0x66e   : > { %3139 = vmatpush.msrb.mxu3 %v4038_v50 }
 0x66f   : > { %3203 = vmatpush.msra.mxu2 %v3188_v14 }
 0x670   : > { %3140 = vmatpush.msrb.mxu3 %v4037_v47 }
 0x671   : > { %3204 = vmatpush.msra.mxu2 %v3187_v24 }
 0x672   : > { %v2985_v55 = vpop.f32.mrf.mxu0  ;;  %3141 = vmatpush.msrb.mxu3 %v4036_v52 }
 0x673   : > { %4018 = vmatmul.msk.f32.vlgmr.msrb.gmra.mxu0 %vm2738_vm7, %v2985_v55  ;;  %4021 = vmatmul.msk.f32.vlgmr.msra.gmra.mxu3 %vm2585_vm6, %v4019_v8 }
 0x674   : > { %4023 = vmatmul.msk.f32.vlgmr.msrb.gmra.mxu2 %vm2585_vm6, %v4019_v8  ;;  %3142 = vmatpush.msrb.mxu3 %v4035_v39 }
 0x675   : > { %3205 = vmatpush.msra.mxu2 %v3186_v54 }
 0x676   : > { %3143 = vmatpush.msrb.mxu3 %v4034_v56 }
 0x677   : > { %3206 = vmatpush.msra.mxu2 %v3185_v34 }
 0x678   : > { %3144 = vmatpush.msrb.mxu3 %v4033_v57 }
 0x679   : > { %3207 = vmatpush.msra.mxu2 %v3184_v20 }
 0x67a   : > { %3145 = vmatpush.msrb.mxu3 %v4032_v12 }
 0x67b   : > { %3208 = vmatpush.msra.mxu2 %v3183_v22 }
 0x67c   : > { %3146 = vmatpush.msrb.mxu3 %v4031_v15 }
 0x67d   : > { %3209 = vmatpush.msra.mxu2 %v3182_v29 }
 0x67e   : > { %3147 = vmatpush.msrb.mxu3 %v4030_v63 }
 0x680   : > { %3148 = vmatpush.msrb.mxu3 %v4029_v1 }
 0x682   : > { %3149 = vmatpush.msrb.mxu3 %v4028_v3 }
 0x684   : > { %3150 = vmatpush.msrb.mxu3 %v4027_v53 }
 0x686   : > { %3151 = vmatpush.msrb.mxu3 %v4026_v5 }
 0x688   : > { %3152 = vmatpush.msrb.mxu3 %v4025_v7 }
 0x68a   : > { %3153 = vmatpush.msrb.mxu3 %v4024_v11 }
 0x6d8   : > { %v3037_v32 = vpop.f32.mrf.mxu1 }
 0x6ee   : > { %v2939_v0 = vpop.f32.mrf.mxu3 }
 0x6ef   : > { %v2919_v4 = vpop.f32.mrf.mxu2 }
 0x6f0   : > { %v2940_v26 = vadd.f32 %v2939_v0, %v2919_v4  ;;  %v3057_v25 = vpop.f32.mrf.mxu0 }
 0x6f1   : > { %v3058_v36 = vadd.f32 %v3057_v25, %v3037_v32 }
 0x6f2   : > { %v2942_v9 = vadd.f32 %v2940_v26, %v6762_v43 }
 0x6f4   : > { %v3060_v35 = vadd.f32 %v3058_v36, %v2942_v9 }
 0x6f6   : > { %v3083_v30 = vpop.f32.mrf.mxu3 }
 0x6f7   : > { %3154 = vmatmul.f32.vlgmr.msrb.gmra.mxu3 %v3083_v30  ;;  %v3103_v46 = vpop.f32.mrf.mxu2 }
 0x6f8   : > { %4052 = vmatmul.msk.f32.vlgmr.msra.gmra.mxu0 %vm2738_vm7, %v3103_v46 }
 0x775   : > { %v3175_v37 = vpop.f32.mrf.mxu0 }
 0x77a   : > { %v3155_v38 = vpop.f32.mrf.mxu3 }
 0x77b   : > { %v3176_v40 = vadd.f32 %v3175_v37, %v3155_v38 }
 0x77d   : > { %v3178_v41 = vadd.f32 %v3176_v40, %v3060_v35 }
 0x77f   : > { %v3180_v58 = vadd.f32 %v3179_v51, %v3178_v41 }
 0x781   : > { %v3181_v61 = vmax.f32 %v3180_v58, 0.0 }
 0x783   : > { %v3227_v42 = vrot.slane %v3181_v61, 1  ;;  %4053 = vmatmul.msk.f32.vlgmr.msra.gmra.mxu2 %vm3190_vm8, %v3181_v61 }
 0x785   : > { %4062 = vmatmul.msk.f32.vlgmr.msra.gmra.mxu1 %vm3190_vm8, %v3227_v42 }
 0x802   : > { %v3247_v43 = vpop.f32.mrf.mxu1 }
 0x803   : > { %v3251_v49 = vrot.slane %v3247_v43, 5 }
 0x806   : > { %v3211_v44 = vpop.f32.mrf.mxu2 }
 0x807   : > { %v3215_v45 = vrot.slane %v3211_v44, 5 }
 0x809   : > { %v3217_v50 = vadd.f32 %v6364_v60, %v3215_v45 }
 0x80b   : > { %v3253_v47 = vadd.f32 %v3251_v49, %v3217_v50 }
 0x80d   : > { %3254 = vst [vmem:[%s324_s26 - $0x3] sm:$0x8] %v3253_v47 }
 0x80e   : > { %4133 = shalt.err (!%p4130_p3)
}
 0x80f   : > { %4066 = dma.vmem_to_hbm [thread:$0]  (%p4258_p5), %s3267_s23, 16, %s3269_s24, %s3256_s25  }
 0x810 PF: > { %p4072_p4 = scmp.ge.s32.totalorder %s4168_s12, 2  ;;  %s3280_s18 = sand.u32 1, %s4156_s30  }
 0x811   : > { %s3281_s17 = scalar_lea.sflag [#allocation3], %s3280_s18 }
 0x812   : > { %p4069_p7 = pnand %p4072_p4, %p4262_p6 }
 0x814   : > { %p4070_p8 = pneg %p4069_p7 }
 0x816   : > { %4151 = dma.done.wait (%p4070_p8), %s3281_s17, 16  }
 0x817   : > { %4153 = vsyncadd (%p4070_p8), %s3281_s17, 4294967280  ;;  %s6940_s22 = sld [smem:[#allocation5_spill]]  ;;  %p19_p9 = scmp.ge.s32.totalorder %s4245_s15, 4  }
 0x818   : > { %s6941_s30 = smov %s4160_s10  ;;  %s6942_s10 = smov %s4164_s11 }
 0x819   : > { %s6944_s12 = smov %s4245_s15  ;;  %21 = sbr.rel (!%p19_p9) target bundleno = 3 (0x3), region = 116 }
 0x81d   : > { %s6943_s11 = smov %s6940_s22 }
 0x81e   :  { %3286 = vsyncpa [#allocation3], 1 }
 0x81f   :  { %3288 = vsyncpa [#allocation3 + $0x1], 1 }

</bundles_post_ra>
